<compile_context>
chip_gen: v7x
topology: tpu7x:2x2x1
jax: 0.10.0
libtpu: 0.0.40
codegen_flags: <defaults>
</compile_context>

<pallas_src>
import functools

import jax
import jax.numpy as jnp
from jax.experimental import pallas as pl
from jax.experimental.pallas import tpu as pltpu


# ------------------------------ Pallas kernels ------------------------------

def _conv_row_kernel(x_ref, w_ref, b_ref, o_ref, acc_ref, *,
                     kh, kw, stride, wo, relu):
    """One conv output row for one image at kernel-row tap di = program_id(2).

    x_ref  : (1, stride, Wq, Cin)  phase-split padded input row (ho*stride + di)
    w_ref  : (kh*kw, Cin, Cout)    packed bf16 weights, VMEM-resident
    b_ref  : (1, Cout)             f32 bias, VMEM-resident
    o_ref  : (1, 1, Wo, Cout)      output row ho (same block across all di)
    acc_ref: (Wo, Cout) f32        accumulator scratch
    """
    di = pl.program_id(2)

    @pl.when(di == 0)
    def _init():
        acc_ref[...] = jnp.zeros_like(acc_ref)

    acc = acc_ref[...]
    for dj in range(kw):                                           # width taps
        win = x_ref[0, dj % stride, pl.ds(dj // stride, wo), :]    # (Wo, Cin)
        w_tap = w_ref[di * kw + dj]                                # (Cin, Cout)
        acc = acc + jnp.dot(win, w_tap, preferred_element_type=jnp.float32)
    acc_ref[...] = acc

    @pl.when(di == kh - 1)
    def _finalize():
        r = acc_ref[...] + b_ref[...]
        if relu:
            r = jnp.maximum(r, 0.0)
        o_ref[0, 0] = r.astype(o_ref.dtype)


def _maxpool_row_kernel(*refs, k, stride, wo):
    """One pooled output row: max over a k x k window with the given stride.

    refs[:k] : (1, stride, Wq, C) phase-split input rows ho*stride + {0..k-1}
    refs[k]  : (1, 1, Wo, C)      pooled output row
    """
    row_refs, o_ref = refs[:k], refs[k]
    res = None
    for ref in row_refs:
        for dw in range(k):
            v = ref[0, dw % stride, pl.ds(dw // stride, wo), :]    # (Wo, C)
            res = v if res is None else jnp.maximum(res, v)
    o_ref[0, 0] = res.astype(o_ref.dtype)


# ------------------------------ layer wrappers -------------------------------

def _phase_split_rows(x, s):
    """(N,H,W,C) -> (N*H, s, ceil(W/s), C); x[n,h,w,c] -> out[n*H+h, w%s, w//s, c].

    Cheap one-time layout plumbing (no k*k expansion) so the kernels only need
    static slices for strided-width convolution / pooling.
    """
    N, H, W, C = x.shape
    w_pad = -(-W // s) * s
    if w_pad != W:
        x = jnp.pad(x, ((0, 0), (0, 0), (0, w_pad - W), (0, 0)))
    x = x.reshape(N * H, w_pad // s, s, C)
    return jnp.transpose(x, (0, 2, 1, 3))


def conv2d_pallas(x, w_packed, b_packed, *, kh, kw, stride, pad, relu,
                  out_dtype=jnp.bfloat16):
    """x: (N,H,W,Cin) bf16 NHWC.  w_packed: (kh*kw,Cin,Cout) bf16.  b: (1,Cout) f32."""
    N, H, W, Cin = x.shape
    Cout = w_packed.shape[-1]
    Hp, Wp = H + 2 * pad, W + 2 * pad
    Ho = (Hp - kh) // stride + 1
    Wo = (Wp - kw) // stride + 1

    xp = jnp.pad(x, ((0, 0), (pad, pad), (pad, pad), (0, 0)))
    xs = _phase_split_rows(xp, stride)                 # (N*Hp, s, Wq, Cin)
    Wq = xs.shape[2]

    def x_index_map(n, ho, di):
        return (n * Hp + ho * stride + di, 0, 0, 0)

    kernel = functools.partial(_conv_row_kernel, kh=kh, kw=kw, stride=stride,
                               wo=Wo, relu=relu)
    return pl.pallas_call(
        kernel,
        grid=(N, Ho, kh),
        in_specs=[
            pl.BlockSpec((1, stride, Wq, Cin), x_index_map),
            pl.BlockSpec(w_packed.shape, lambda n, ho, di: (0, 0, 0)),
            pl.BlockSpec(b_packed.shape, lambda n, ho, di: (0, 0)),
        ],
        out_specs=pl.BlockSpec((1, 1, Wo, Cout), lambda n, ho, di: (n, ho, 0, 0)),
        out_shape=jax.ShapeDtypeStruct((N, Ho, Wo, Cout), out_dtype),
        scratch_shapes=[pltpu.VMEM((Wo, Cout), jnp.float32)],
        compiler_params=pltpu.CompilerParams(
            dimension_semantics=("parallel", "parallel", "arbitrary")),
    )(xs, w_packed, b_packed)


def maxpool_pallas(x, *, k=3, stride=2):
    """PyTorch MaxPool2d(k, stride) (floor mode, no padding) on NHWC input."""
    N, H, W, C = x.shape
    Ho = (H - k) // stride + 1
    Wo = (W - k) // stride + 1
    xs = _phase_split_rows(x, stride)                  # (N*H, s, Wq, C)
    Wq = xs.shape[2]

    def make_row_map(dr):
        return lambda n, ho: (n * H + ho * stride + dr, 0, 0, 0)

    kernel = functools.partial(_maxpool_row_kernel, k=k, stride=stride, wo=Wo)
    return pl.pallas_call(
        kernel,
        grid=(N, Ho),
        in_specs=[pl.BlockSpec((1, stride, Wq, C), make_row_map(dr))
                  for dr in range(k)],
        out_specs=pl.BlockSpec((1, 1, Wo, C), lambda n, ho: (n, ho, 0, 0)),
        out_shape=jax.ShapeDtypeStruct((N, Ho, Wo, C), x.dtype),
        compiler_params=pltpu.CompilerParams(
            dimension_semantics=("parallel", "parallel")),
    )(*([xs] * k))


# ------------------------------ full forward ---------------------------------

_FE_LAYERS = (
    # name, kh, kw, stride, pad, relu
    ("1", 11, 11, 4, 2, True),
    ("2", 5, 5, 1, 2, True),
    ("3", 3, 3, 1, 1, True),
    ("4", 3, 3, 1, 1, True),
    ("5", 3, 3, 1, 1, False),
)


def pack_params(params):
    """One-time packing (hoisted out of the forward path):
       OIHW f32 weights -> (kh*kw, Cin, Cout) bf16; bias -> (1, Cout) f32."""
    packed = {}
    for name, kh, kw, _, _, _ in _FE_LAYERS:
        w = params["w" + name]                       # (Cout, Cin, kh, kw)
        Cout, Cin = w.shape[0], w.shape[1]
        wk = jnp.transpose(w, (2, 3, 1, 0)).reshape(kh * kw, Cin, Cout)
        packed["w" + name] = wk.astype(jnp.bfloat16)
        packed["b" + name] = params["b" + name].reshape(1, Cout).astype(jnp.float32)
    return packed


def alexnet_fe_forward(x_nchw, packed):
    x = jnp.transpose(x_nchw, (0, 2, 3, 1)).astype(jnp.bfloat16)   # NCHW -> NHWC
    for i, (name, kh, kw, stride, pad, relu) in enumerate(_FE_LAYERS):
        last = i == len(_FE_LAYERS) - 1
        x = conv2d_pallas(x, packed["w" + name], packed["b" + name],
                          kh=kh, kw=kw, stride=stride, pad=pad, relu=relu,
                          out_dtype=jnp.float32 if last else jnp.bfloat16)
        if name in ("1", "2"):
            x = maxpool_pallas(x, k=3, stride=2)
    return jnp.transpose(x, (0, 3, 1, 2))                          # NHWC -> NCHW


def init_params(key):
    shapes = [
        ("w1", (64, 3, 11, 11)), ("b1", (64,)),
        ("w2", (192, 64, 5, 5)), ("b2", (192,)),
        ("w3", (384, 192, 3, 3)), ("b3", (384,)),
        ("w4", (256, 384, 3, 3)), ("b4", (256,)),
        ("w5", (256, 256, 3, 3)), ("b5", (256,)),
    ]
    params = {}
    keys = jax.random.split(key, len(shapes))
    for (name, shp), k in zip(shapes, keys):
        if name.startswith("w"):
            fan_in = shp[1] * shp[2] * shp[3]
            params[name] = (jax.random.normal(k, shp, jnp.float32)
                            / jnp.sqrt(float(fan_in)))
        else:
            params[name] = jax.random.normal(k, shp, jnp.float32) * 0.01
    return params


# pure-JAX reference (correctness check only)
def _reference_forward(x_nchw, p):
    dn = ("NCHW", "OIHW", "NCHW")

    def conv(x, w, b, stride, pad):
        y = jax.lax.conv_general_dilated(
            x, w, (stride, stride), [(pad, pad), (pad, pad)],
            dimension_numbers=dn)
        return y + b[None, :, None, None]

    def pool(x):
        return jax.lax.reduce_window(x, -jnp.inf, jax.lax.max,
                                     (1, 1, 3, 3), (1, 1, 2, 2), "VALID")

    x = jax.nn.relu(conv(x_nchw, p["w1"], p["b1"], 4, 2)); x = pool(x)
    x = jax.nn.relu(conv(x, p["w2"], p["b2"], 1, 2)); x = pool(x)
    x = jax.nn.relu(conv(x, p["w3"], p["b3"], 1, 1))
    x = jax.nn.relu(conv(x, p["w4"], p["b4"], 1, 1))
    x = conv(x, p["w5"], p["b5"], 1, 1)
    return x


if __name__ == "__main__":
    key = jax.random.PRNGKey(0)
    kx, kp = jax.random.split(key)
    params = init_params(kp)
    packed = pack_params(params)          # one-time weight packing (not per-forward)

    # AlexNet features need 3 input channels; 64x64 is the smallest spatial size
    # that keeps every layer non-degenerate while staying small (batch=2).
    x = jax.random.normal(kx, (2, 3, 64, 64), jnp.float32)

    fwd = jax.jit(alexnet_fe_forward)
    out = jax.block_until_ready(fwd(x, packed))

    assert out.shape == (2, 256, 3, 3), out.shape

    ref = _reference_forward(x, params)
    max_err = float(jnp.max(jnp.abs(out - ref)))
    assert jnp.allclose(out, ref, atol=5e-2, rtol=5e-2), max_err

    print("KERNEL_OK")
</pallas_src>

<mosaic_0001>
module attributes {stable_mosaic.version = 11 : i64} {
  func.func @_conv_row_kernel(%arg0: i32, %arg1: i32, %arg2: i32, %arg3: memref<1x4x17x3xbf16, #tpu.memory_space<vmem>>, %arg4: memref<121x3x64xbf16, #tpu.memory_space<vmem>>, %arg5: memref<1x64xf32, #tpu.memory_space<vmem>>, %arg6: memref<1x1x15x64xbf16, #tpu.memory_space<vmem>>, %arg7: memref<15x64xf32, #tpu.memory_space<vmem>>) attributes {dimension_semantics = [#tpu.dimension_semantics<parallel>, #tpu.dimension_semantics<parallel>, #tpu.dimension_semantics<arbitrary>], iteration_bounds = array<i64: 2, 15, 11>, scalar_prefetch = 0 : i64, scratch_operands = 1 : i64, tpu.core_type = #tpu.core_type<tc>, window_params = [{transform_indices = @transform_0, window_bounds = array<i64: 1, 4, 17, 3>}, {pipeline_mode = #tpu.pipeline_mode<synchronous>, transform_indices = @transform_1, window_bounds = array<i64: 121, 3, 64>}, {pipeline_mode = #tpu.pipeline_mode<synchronous>, transform_indices = @transform_2, window_bounds = array<i64: 1, 64>}, {transform_indices = @transform_3, window_bounds = array<i64: 1, 1, 15, 64>}]} {
    %c0_i32 = arith.constant 0 : i32
    %0 = arith.cmpi eq, %arg2, %c0_i32 : i32
    %1 = arith.extui %0 : i1 to i32
    %c0_i32_0 = arith.constant 0 : i32
    %2 = arith.cmpi ne, %1, %c0_i32_0 : i32
    scf.if %2 {
      %cst_90 = arith.constant 0.000000e+00 : f32
      %107 = vector.broadcast %cst_90 : f32 to vector<15x64xf32>
      %c0_91 = arith.constant 0 : index
      %c0_92 = arith.constant 0 : index
      %108 = vector.load %arg7[%c0_91, %c0_92] : memref<15x64xf32, #tpu.memory_space<vmem>>, vector<15x64xf32>
      tpu.vector_store %arg7[%c0_91, %c0_92], %107 {strides = array<i32>} : memref<15x64xf32, #tpu.memory_space<vmem>>, vector<15x64xf32>,
    } else {
    }
    %c0 = arith.constant 0 : index
    %c0_1 = arith.constant 0 : index
    %3 = vector.load %arg7[%c0, %c0_1] : memref<15x64xf32, #tpu.memory_space<vmem>>, vector<15x64xf32>
    %c0_2 = arith.constant 0 : index
    %c0_3 = arith.constant 0 : index
    %c0_4 = arith.constant 0 : index
    %c0_5 = arith.constant 0 : index
    %4 = vector.load %arg3[%c0_2, %c0_3, %c0_4, %c0_5] : memref<1x4x17x3xbf16, #tpu.memory_space<vmem>>, vector<1x1x15x3xbf16>
    %5 = vector.shape_cast %4 : vector<1x1x15x3xbf16> to vector<15x3xbf16>
    %c11_i32 = arith.constant 11 : i32
    %6 = arith.muli %arg2, %c11_i32 : i32
    %c0_i32_6 = arith.constant 0 : i32
    %7 = arith.addi %6, %c0_i32_6 : i32
    %8 = arith.index_cast %7 : i32 to index
    %c0_7 = arith.constant 0 : index
    %c0_8 = arith.constant 0 : index
    %9 = vector.load %arg4[%8, %c0_7, %c0_8] : memref<121x3x64xbf16, #tpu.memory_space<vmem>>, vector<1x3x64xbf16>
    %10 = vector.shape_cast %9 : vector<1x3x64xbf16> to vector<3x64xbf16>
    %cst = arith.constant dense<0.000000e+00> : vector<15x64xf32>
    %11 = tpu.matmul %5, %10, %cst {dimension_numbers = #tpu.dot_dimension_numbers<[1], [0], [0], [1], [0, 0, 1, 1], [], []>} : vector<15x3xbf16>, vector<3x64xbf16>, vector<15x64xf32> -> vector<15x64xf32>
    %12 = arith.addf %3, %11 : vector<15x64xf32>
    %c0_9 = arith.constant 0 : index
    %c1 = arith.constant 1 : index
    %c0_10 = arith.constant 0 : index
    %c0_11 = arith.constant 0 : index
    %13 = vector.load %arg3[%c0_9, %c1, %c0_10, %c0_11] : memref<1x4x17x3xbf16, #tpu.memory_space<vmem>>, vector<1x1x15x3xbf16>
    %14 = vector.shape_cast %13 : vector<1x1x15x3xbf16> to vector<15x3xbf16>
    %c11_i32_12 = arith.constant 11 : i32
    %15 = arith.muli %arg2, %c11_i32_12 : i32
    %c1_i32 = arith.constant 1 : i32
    %16 = arith.addi %15, %c1_i32 : i32
    %17 = arith.index_cast %16 : i32 to index
    %c0_13 = arith.constant 0 : index
    %c0_14 = arith.constant 0 : index
    %18 = vector.load %arg4[%17, %c0_13, %c0_14] : memref<121x3x64xbf16, #tpu.memory_space<vmem>>, vector<1x3x64xbf16>
    %19 = vector.shape_cast %18 : vector<1x3x64xbf16> to vector<3x64xbf16>
    %cst_15 = arith.constant dense<0.000000e+00> : vector<15x64xf32>
    %20 = tpu.matmul %14, %19, %cst_15 {dimension_numbers = #tpu.dot_dimension_numbers<[1], [0], [0], [1], [0, 0, 1, 1], [], []>} : vector<15x3xbf16>, vector<3x64xbf16>, vector<15x64xf32> -> vector<15x64xf32>
    %21 = arith.addf %12, %20 : vector<15x64xf32>
    %c0_16 = arith.constant 0 : index
    %c2 = arith.constant 2 : index
    %c0_17 = arith.constant 0 : index
    %c0_18 = arith.constant 0 : index
    %22 = vector.load %arg3[%c0_16, %c2, %c0_17, %c0_18] : memref<1x4x17x3xbf16, #tpu.memory_space<vmem>>, vector<1x1x15x3xbf16>
    %23 = vector.shape_cast %22 : vector<1x1x15x3xbf16> to vector<15x3xbf16>
    %c11_i32_19 = arith.constant 11 : i32
    %24 = arith.muli %arg2, %c11_i32_19 : i32
    %c2_i32 = arith.constant 2 : i32
    %25 = arith.addi %24, %c2_i32 : i32
    %26 = arith.index_cast %25 : i32 to index
    %c0_20 = arith.constant 0 : index
    %c0_21 = arith.constant 0 : index
    %27 = vector.load %arg4[%26, %c0_20, %c0_21] : memref<121x3x64xbf16, #tpu.memory_space<vmem>>, vector<1x3x64xbf16>
    %28 = vector.shape_cast %27 : vector<1x3x64xbf16> to vector<3x64xbf16>
    %cst_22 = arith.constant dense<0.000000e+00> : vector<15x64xf32>
    %29 = tpu.matmul %23, %28, %cst_22 {dimension_numbers = #tpu.dot_dimension_numbers<[1], [0], [0], [1], [0, 0, 1, 1], [], []>} : vector<15x3xbf16>, vector<3x64xbf16>, vector<15x64xf32> -> vector<15x64xf32>
    %30 = arith.addf %21, %29 : vector<15x64xf32>
    %c0_23 = arith.constant 0 : index
    %c3 = arith.constant 3 : index
    %c0_24 = arith.constant 0 : index
    %c0_25 = arith.constant 0 : index
    %31 = vector.load %arg3[%c0_23, %c3, %c0_24, %c0_25] : memref<1x4x17x3xbf16, #tpu.memory_space<vmem>>, vector<1x1x15x3xbf16>
    %32 = vector.shape_cast %31 : vector<1x1x15x3xbf16> to vector<15x3xbf16>
    %c11_i32_26 = arith.constant 11 : i32
    %33 = arith.muli %arg2, %c11_i32_26 : i32
    %c3_i32 = arith.constant 3 : i32
    %34 = arith.addi %33, %c3_i32 : i32
    %35 = arith.index_cast %34 : i32 to index
    %c0_27 = arith.constant 0 : index
    %c0_28 = arith.constant 0 : index
    %36 = vector.load %arg4[%35, %c0_27, %c0_28] : memref<121x3x64xbf16, #tpu.memory_space<vmem>>, vector<1x3x64xbf16>
    %37 = vector.shape_cast %36 : vector<1x3x64xbf16> to vector<3x64xbf16>
    %cst_29 = arith.constant dense<0.000000e+00> : vector<15x64xf32>
    %38 = tpu.matmul %32, %37, %cst_29 {dimension_numbers = #tpu.dot_dimension_numbers<[1], [0], [0], [1], [0, 0, 1, 1], [], []>} : vector<15x3xbf16>, vector<3x64xbf16>, vector<15x64xf32> -> vector<15x64xf32>
    %39 = arith.addf %30, %38 : vector<15x64xf32>
    %c0_30 = arith.constant 0 : index
    %c0_31 = arith.constant 0 : index
    %c1_32 = arith.constant 1 : index
    %c0_33 = arith.constant 0 : index
    %40 = vector.load %arg3[%c0_30, %c0_31, %c1_32, %c0_33] : memref<1x4x17x3xbf16, #tpu.memory_space<vmem>>, vector<1x1x15x3xbf16>
    %41 = vector.shape_cast %40 : vector<1x1x15x3xbf16> to vector<15x3xbf16>
    %c11_i32_34 = arith.constant 11 : i32
    %42 = arith.muli %arg2, %c11_i32_34 : i32
    %c4_i32 = arith.constant 4 : i32
    %43 = arith.addi %42, %c4_i32 : i32
    %44 = arith.index_cast %43 : i32 to index
    %c0_35 = arith.constant 0 : index
    %c0_36 = arith.constant 0 : index
    %45 = vector.load %arg4[%44, %c0_35, %c0_36] : memref<121x3x64xbf16, #tpu.memory_space<vmem>>, vector<1x3x64xbf16>
    %46 = vector.shape_cast %45 : vector<1x3x64xbf16> to vector<3x64xbf16>
    %cst_37 = arith.constant dense<0.000000e+00> : vector<15x64xf32>
    %47 = tpu.matmul %41, %46, %cst_37 {dimension_numbers = #tpu.dot_dimension_numbers<[1], [0], [0], [1], [0, 0, 1, 1], [], []>} : vector<15x3xbf16>, vector<3x64xbf16>, vector<15x64xf32> -> vector<15x64xf32>
    %48 = arith.addf %39, %47 : vector<15x64xf32>
    %c0_38 = arith.constant 0 : index
    %c1_39 = arith.constant 1 : index
    %c1_40 = arith.constant 1 : index
    %c0_41 = arith.constant 0 : index
    %49 = vector.load %arg3[%c0_38, %c1_39, %c1_40, %c0_41] : memref<1x4x17x3xbf16, #tpu.memory_space<vmem>>, vector<1x1x15x3xbf16>
    %50 = vector.shape_cast %49 : vector<1x1x15x3xbf16> to vector<15x3xbf16>
    %c11_i32_42 = arith.constant 11 : i32
    %51 = arith.muli %arg2, %c11_i32_42 : i32
    %c5_i32 = arith.constant 5 : i32
    %52 = arith.addi %51, %c5_i32 : i32
    %53 = arith.index_cast %52 : i32 to index
    %c0_43 = arith.constant 0 : index
    %c0_44 = arith.constant 0 : index
    %54 = vector.load %arg4[%53, %c0_43, %c0_44] : memref<121x3x64xbf16, #tpu.memory_space<vmem>>, vector<1x3x64xbf16>
    %55 = vector.shape_cast %54 : vector<1x3x64xbf16> to vector<3x64xbf16>
    %cst_45 = arith.constant dense<0.000000e+00> : vector<15x64xf32>
    %56 = tpu.matmul %50, %55, %cst_45 {dimension_numbers = #tpu.dot_dimension_numbers<[1], [0], [0], [1], [0, 0, 1, 1], [], []>} : vector<15x3xbf16>, vector<3x64xbf16>, vector<15x64xf32> -> vector<15x64xf32>
    %57 = arith.addf %48, %56 : vector<15x64xf32>
    %c0_46 = arith.constant 0 : index
    %c2_47 = arith.constant 2 : index
    %c1_48 = arith.constant 1 : index
    %c0_49 = arith.constant 0 : index
    %58 = vector.load %arg3[%c0_46, %c2_47, %c1_48, %c0_49] : memref<1x4x17x3xbf16, #tpu.memory_space<vmem>>, vector<1x1x15x3xbf16>
    %59 = vector.shape_cast %58 : vector<1x1x15x3xbf16> to vector<15x3xbf16>
    %c11_i32_50 = arith.constant 11 : i32
    %60 = arith.muli %arg2, %c11_i32_50 : i32
    %c6_i32 = arith.constant 6 : i32
    %61 = arith.addi %60, %c6_i32 : i32
    %62 = arith.index_cast %61 : i32 to index
    %c0_51 = arith.constant 0 : index
    %c0_52 = arith.constant 0 : index
    %63 = vector.load %arg4[%62, %c0_51, %c0_52] : memref<121x3x64xbf16, #tpu.memory_space<vmem>>, vector<1x3x64xbf16>
    %64 = vector.shape_cast %63 : vector<1x3x64xbf16> to vector<3x64xbf16>
    %cst_53 = arith.constant dense<0.000000e+00> : vector<15x64xf32>
    %65 = tpu.matmul %59, %64, %cst_53 {dimension_numbers = #tpu.dot_dimension_numbers<[1], [0], [0], [1], [0, 0, 1, 1], [], []>} : vector<15x3xbf16>, vector<3x64xbf16>, vector<15x64xf32> -> vector<15x64xf32>
    %66 = arith.addf %57, %65 : vector<15x64xf32>
    %c0_54 = arith.constant 0 : index
    %c3_55 = arith.constant 3 : index
    %c1_56 = arith.constant 1 : index
    %c0_57 = arith.constant 0 : index
    %67 = vector.load %arg3[%c0_54, %c3_55, %c1_56, %c0_57] : memref<1x4x17x3xbf16, #tpu.memory_space<vmem>>, vector<1x1x15x3xbf16>
    %68 = vector.shape_cast %67 : vector<1x1x15x3xbf16> to vector<15x3xbf16>
    %c11_i32_58 = arith.constant 11 : i32
    %69 = arith.muli %arg2, %c11_i32_58 : i32
    %c7_i32 = arith.constant 7 : i32
    %70 = arith.addi %69, %c7_i32 : i32
    %71 = arith.index_cast %70 : i32 to index
    %c0_59 = arith.constant 0 : index
    %c0_60 = arith.constant 0 : index
    %72 = vector.load %arg4[%71, %c0_59, %c0_60] : memref<121x3x64xbf16, #tpu.memory_space<vmem>>, vector<1x3x64xbf16>
    %73 = vector.shape_cast %72 : vector<1x3x64xbf16> to vector<3x64xbf16>
    %cst_61 = arith.constant dense<0.000000e+00> : vector<15x64xf32>
    %74 = tpu.matmul %68, %73, %cst_61 {dimension_numbers = #tpu.dot_dimension_numbers<[1], [0], [0], [1], [0, 0, 1, 1], [], []>} : vector<15x3xbf16>, vector<3x64xbf16>, vector<15x64xf32> -> vector<15x64xf32>
    %75 = arith.addf %66, %74 : vector<15x64xf32>
    %c0_62 = arith.constant 0 : index
    %c0_63 = arith.constant 0 : index
    %c2_64 = arith.constant 2 : index
    %c0_65 = arith.constant 0 : index
    %76 = vector.load %arg3[%c0_62, %c0_63, %c2_64, %c0_65] : memref<1x4x17x3xbf16, #tpu.memory_space<vmem>>, vector<1x1x15x3xbf16>
    %77 = vector.shape_cast %76 : vector<1x1x15x3xbf16> to vector<15x3xbf16>
    %c11_i32_66 = arith.constant 11 : i32
    %78 = arith.muli %arg2, %c11_i32_66 : i32
    %c8_i32 = arith.constant 8 : i32
    %79 = arith.addi %78, %c8_i32 : i32
    %80 = arith.index_cast %79 : i32 to index
    %c0_67 = arith.constant 0 : index
    %c0_68 = arith.constant 0 : index
    %81 = vector.load %arg4[%80, %c0_67, %c0_68] : memref<121x3x64xbf16, #tpu.memory_space<vmem>>, vector<1x3x64xbf16>
    %82 = vector.shape_cast %81 : vector<1x3x64xbf16> to vector<3x64xbf16>
    %cst_69 = arith.constant dense<0.000000e+00> : vector<15x64xf32>
    %83 = tpu.matmul %77, %82, %cst_69 {dimension_numbers = #tpu.dot_dimension_numbers<[1], [0], [0], [1], [0, 0, 1, 1], [], []>} : vector<15x3xbf16>, vector<3x64xbf16>, vector<15x64xf32> -> vector<15x64xf32>
    %84 = arith.addf %75, %83 : vector<15x64xf32>
    %c0_70 = arith.constant 0 : index
    %c1_71 = arith.constant 1 : index
    %c2_72 = arith.constant 2 : index
    %c0_73 = arith.constant 0 : index
    %85 = vector.load %arg3[%c0_70, %c1_71, %c2_72, %c0_73] : memref<1x4x17x3xbf16, #tpu.memory_space<vmem>>, vector<1x1x15x3xbf16>
    %86 = vector.shape_cast %85 : vector<1x1x15x3xbf16> to vector<15x3xbf16>
    %c11_i32_74 = arith.constant 11 : i32
    %87 = arith.muli %arg2, %c11_i32_74 : i32
    %c9_i32 = arith.constant 9 : i32
    %88 = arith.addi %87, %c9_i32 : i32
    %89 = arith.index_cast %88 : i32 to index
    %c0_75 = arith.constant 0 : index
    %c0_76 = arith.constant 0 : index
    %90 = vector.load %arg4[%89, %c0_75, %c0_76] : memref<121x3x64xbf16, #tpu.memory_space<vmem>>, vector<1x3x64xbf16>
    %91 = vector.shape_cast %90 : vector<1x3x64xbf16> to vector<3x64xbf16>
    %cst_77 = arith.constant dense<0.000000e+00> : vector<15x64xf32>
    %92 = tpu.matmul %86, %91, %cst_77 {dimension_numbers = #tpu.dot_dimension_numbers<[1], [0], [0], [1], [0, 0, 1, 1], [], []>} : vector<15x3xbf16>, vector<3x64xbf16>, vector<15x64xf32> -> vector<15x64xf32>
    %93 = arith.addf %84, %92 : vector<15x64xf32>
    %c0_78 = arith.constant 0 : index
    %c2_79 = arith.constant 2 : index
    %c2_80 = arith.constant 2 : index
    %c0_81 = arith.constant 0 : index
    %94 = vector.load %arg3[%c0_78, %c2_79, %c2_80, %c0_81] : memref<1x4x17x3xbf16, #tpu.memory_space<vmem>>, vector<1x1x15x3xbf16>
    %95 = vector.shape_cast %94 : vector<1x1x15x3xbf16> to vector<15x3xbf16>
    %c11_i32_82 = arith.constant 11 : i32
    %96 = arith.muli %arg2, %c11_i32_82 : i32
    %c10_i32 = arith.constant 10 : i32
    %97 = arith.addi %96, %c10_i32 : i32
    %98 = arith.index_cast %97 : i32 to index
    %c0_83 = arith.constant 0 : index
    %c0_84 = arith.constant 0 : index
    %99 = vector.load %arg4[%98, %c0_83, %c0_84] : memref<121x3x64xbf16, #tpu.memory_space<vmem>>, vector<1x3x64xbf16>
    %100 = vector.shape_cast %99 : vector<1x3x64xbf16> to vector<3x64xbf16>
    %cst_85 = arith.constant dense<0.000000e+00> : vector<15x64xf32>
    %101 = tpu.matmul %95, %100, %cst_85 {dimension_numbers = #tpu.dot_dimension_numbers<[1], [0], [0], [1], [0, 0, 1, 1], [], []>} : vector<15x3xbf16>, vector<3x64xbf16>, vector<15x64xf32> -> vector<15x64xf32>
    %102 = arith.addf %93, %101 : vector<15x64xf32>
    %c0_86 = arith.constant 0 : index
    %c0_87 = arith.constant 0 : index
    %103 = vector.load %arg7[%c0_86, %c0_87] : memref<15x64xf32, #tpu.memory_space<vmem>>, vector<15x64xf32>
    tpu.vector_store %arg7[%c0_86, %c0_87], %102 {strides = array<i32>} : memref<15x64xf32, #tpu.memory_space<vmem>>, vector<15x64xf32>,
    %c10_i32_88 = arith.constant 10 : i32
    %104 = arith.cmpi eq, %arg2, %c10_i32_88 : i32
    %105 = arith.extui %104 : i1 to i32
    %c0_i32_89 = arith.constant 0 : i32
    %106 = arith.cmpi ne, %105, %c0_i32_89 : i32
    scf.if %106 {
      %c0_90 = arith.constant 0 : index
      %c0_91 = arith.constant 0 : index
      %107 = vector.load %arg7[%c0_90, %c0_91] : memref<15x64xf32, #tpu.memory_space<vmem>>, vector<15x64xf32>
      %c0_92 = arith.constant 0 : index
      %c0_93 = arith.constant 0 : index
      %108 = vector.load %arg5[%c0_92, %c0_93] : memref<1x64xf32, #tpu.memory_space<vmem>>, vector<1x64xf32>
      %109 = vector.broadcast %108 : vector<1x64xf32> to vector<15x64xf32>
      %110 = arith.addf %107, %109 : vector<15x64xf32>
      %cst_94 = arith.constant 0.000000e+00 : f32
      %111 = vector.broadcast %cst_94 : f32 to vector<15x64xf32>
      %112 = arith.maximumf %110, %111 : vector<15x64xf32>
      %113 = arith.truncf %112 : vector<15x64xf32> to vector<15x64xbf16>
      %c0_95 = arith.constant 0 : index
      %c0_96 = arith.constant 0 : index
      %c0_97 = arith.constant 0 : index
      %c0_98 = arith.constant 0 : index
      %114 = vector.load %arg6[%c0_95, %c0_96, %c0_97, %c0_98] : memref<1x1x15x64xbf16, #tpu.memory_space<vmem>>, vector<1x1x15x64xbf16>
      %115 = vector.shape_cast %114 : vector<1x1x15x64xbf16> to vector<15x64xbf16>
      %116 = vector.shape_cast %113 : vector<15x64xbf16> to vector<1x1x15x64xbf16>
      tpu.vector_store %arg6[%c0_95, %c0_96, %c0_97, %c0_98], %116 {strides = array<i32>} : memref<1x1x15x64xbf16, #tpu.memory_space<vmem>>, vector<1x1x15x64xbf16>,
    } else {
    }
    return
  }
  func.func @transform_0(%arg0: i32, %arg1: i32, %arg2: i32) -> (i32, i32, i32, i32) {
    %c68_i32 = arith.constant 68 : i32
    %0 = arith.muli %arg0, %c68_i32 : i32
    %c4_i32 = arith.constant 4 : i32
    %1 = arith.muli %arg1, %c4_i32 : i32
    %2 = arith.addi %0, %1 : i32
    %3 = arith.addi %2, %arg2 : i32
    %c0_i32 = arith.constant 0 : i32
    %c0_i32_0 = arith.constant 0 : i32
    %c0_i32_1 = arith.constant 0 : i32
    %c0_i32_2 = arith.constant 0 : i32
    return %3, %c0_i32, %c0_i32_0, %c0_i32_1 : i32, i32, i32, i32
  }
  func.func @transform_1(%arg0: i32, %arg1: i32, %arg2: i32) -> (i32, i32, i32) {
    %c0_i32 = arith.constant 0 : i32
    %c0_i32_0 = arith.constant 0 : i32
    %c0_i32_1 = arith.constant 0 : i32
    %c0_i32_2 = arith.constant 0 : i32
    return %c0_i32, %c0_i32_0, %c0_i32_1 : i32, i32, i32
  }
  func.func @transform_2(%arg0: i32, %arg1: i32, %arg2: i32) -> (i32, i32) {
    %c0_i32 = arith.constant 0 : i32
    %c0_i32_0 = arith.constant 0 : i32
    %c0_i32_1 = arith.constant 0 : i32
    return %c0_i32, %c0_i32_0 : i32, i32
  }
  func.func @transform_3(%arg0: i32, %arg1: i32, %arg2: i32) -> (i32, i32, i32, i32) {
    %c0_i32 = arith.constant 0 : i32
    %c0_i32_0 = arith.constant 0 : i32
    %c0_i32_1 = arith.constant 0 : i32
    return %arg0, %arg1, %c0_i32, %c0_i32_0 : i32, i32, i32, i32
  }
}

module attributes {stable_mosaic.version = 11 : i64} {
  func.func @_maxpool_row_kernel(%arg0: i32, %arg1: i32, %arg2: memref<1x2x8x64xbf16, #tpu.memory_space<vmem>>, %arg3: memref<1x2x8x64xbf16, #tpu.memory_space<vmem>>, %arg4: memref<1x2x8x64xbf16, #tpu.memory_space<vmem>>, %arg5: memref<1x1x7x64xbf16, #tpu.memory_space<vmem>>) attributes {dimension_semantics = [#tpu.dimension_semantics<parallel>, #tpu.dimension_semantics<parallel>], iteration_bounds = array<i64: 2, 7>, scalar_prefetch = 0 : i64, scratch_operands = 0 : i64, tpu.core_type = #tpu.core_type<tc>, window_params = [{transform_indices = @transform_0, window_bounds = array<i64: 1, 2, 8, 64>}, {transform_indices = @transform_1, window_bounds = array<i64: 1, 2, 8, 64>}, {transform_indices = @transform_2, window_bounds = array<i64: 1, 2, 8, 64>}, {transform_indices = @transform_3, window_bounds = array<i64: 1, 1, 7, 64>}]} {
    %c0 = arith.constant 0 : index
    %c0_0 = arith.constant 0 : index
    %c0_1 = arith.constant 0 : index
    %c0_2 = arith.constant 0 : index
    %0 = vector.load %arg2[%c0, %c0_0, %c0_1, %c0_2] : memref<1x2x8x64xbf16, #tpu.memory_space<vmem>>, vector<1x1x7x64xbf16>
    %1 = vector.shape_cast %0 : vector<1x1x7x64xbf16> to vector<7x64xbf16>
    %c0_3 = arith.constant 0 : index
    %c1 = arith.constant 1 : index
    %c0_4 = arith.constant 0 : index
    %c0_5 = arith.constant 0 : index
    %2 = vector.load %arg2[%c0_3, %c1, %c0_4, %c0_5] : memref<1x2x8x64xbf16, #tpu.memory_space<vmem>>, vector<1x1x7x64xbf16>
    %3 = vector.shape_cast %2 : vector<1x1x7x64xbf16> to vector<7x64xbf16>
    %4 = arith.maximumf %1, %3 : vector<7x64xbf16>
    %c0_6 = arith.constant 0 : index
    %c0_7 = arith.constant 0 : index
    %c1_8 = arith.constant 1 : index
    %c0_9 = arith.constant 0 : index
    %5 = vector.load %arg2[%c0_6, %c0_7, %c1_8, %c0_9] : memref<1x2x8x64xbf16, #tpu.memory_space<vmem>>, vector<1x1x7x64xbf16>
    %6 = vector.shape_cast %5 : vector<1x1x7x64xbf16> to vector<7x64xbf16>
    %7 = arith.maximumf %4, %6 : vector<7x64xbf16>
    %c0_10 = arith.constant 0 : index
    %c0_11 = arith.constant 0 : index
    %c0_12 = arith.constant 0 : index
    %c0_13 = arith.constant 0 : index
    %8 = vector.load %arg3[%c0_10, %c0_11, %c0_12, %c0_13] : memref<1x2x8x64xbf16, #tpu.memory_space<vmem>>, vector<1x1x7x64xbf16>
    %9 = vector.shape_cast %8 : vector<1x1x7x64xbf16> to vector<7x64xbf16>
    %10 = arith.maximumf %7, %9 : vector<7x64xbf16>
    %c0_14 = arith.constant 0 : index
    %c1_15 = arith.constant 1 : index
    %c0_16 = arith.constant 0 : index
    %c0_17 = arith.constant 0 : index
    %11 = vector.load %arg3[%c0_14, %c1_15, %c0_16, %c0_17] : memref<1x2x8x64xbf16, #tpu.memory_space<vmem>>, vector<1x1x7x64xbf16>
    %12 = vector.shape_cast %11 : vector<1x1x7x64xbf16> to vector<7x64xbf16>
    %13 = arith.maximumf %10, %12 : vector<7x64xbf16>
    %c0_18 = arith.constant 0 : index
    %c0_19 = arith.constant 0 : index
    %c1_20 = arith.constant 1 : index
    %c0_21 = arith.constant 0 : index
    %14 = vector.load %arg3[%c0_18, %c0_19, %c1_20, %c0_21] : memref<1x2x8x64xbf16, #tpu.memory_space<vmem>>, vector<1x1x7x64xbf16>
    %15 = vector.shape_cast %14 : vector<1x1x7x64xbf16> to vector<7x64xbf16>
    %16 = arith.maximumf %13, %15 : vector<7x64xbf16>
    %c0_22 = arith.constant 0 : index
    %c0_23 = arith.constant 0 : index
    %c0_24 = arith.constant 0 : index
    %c0_25 = arith.constant 0 : index
    %17 = vector.load %arg4[%c0_22, %c0_23, %c0_24, %c0_25] : memref<1x2x8x64xbf16, #tpu.memory_space<vmem>>, vector<1x1x7x64xbf16>
    %18 = vector.shape_cast %17 : vector<1x1x7x64xbf16> to vector<7x64xbf16>
    %19 = arith.maximumf %16, %18 : vector<7x64xbf16>
    %c0_26 = arith.constant 0 : index
    %c1_27 = arith.constant 1 : index
    %c0_28 = arith.constant 0 : index
    %c0_29 = arith.constant 0 : index
    %20 = vector.load %arg4[%c0_26, %c1_27, %c0_28, %c0_29] : memref<1x2x8x64xbf16, #tpu.memory_space<vmem>>, vector<1x1x7x64xbf16>
    %21 = vector.shape_cast %20 : vector<1x1x7x64xbf16> to vector<7x64xbf16>
    %22 = arith.maximumf %19, %21 : vector<7x64xbf16>
    %c0_30 = arith.constant 0 : index
    %c0_31 = arith.constant 0 : index
    %c1_32 = arith.constant 1 : index
    %c0_33 = arith.constant 0 : index
    %23 = vector.load %arg4[%c0_30, %c0_31, %c1_32, %c0_33] : memref<1x2x8x64xbf16, #tpu.memory_space<vmem>>, vector<1x1x7x64xbf16>
    %24 = vector.shape_cast %23 : vector<1x1x7x64xbf16> to vector<7x64xbf16>
    %25 = arith.maximumf %22, %24 : vector<7x64xbf16>
    %c0_34 = arith.constant 0 : index
    %c0_35 = arith.constant 0 : index
    %c0_36 = arith.constant 0 : index
    %c0_37 = arith.constant 0 : index
    %26 = vector.load %arg5[%c0_34, %c0_35, %c0_36, %c0_37] : memref<1x1x7x64xbf16, #tpu.memory_space<vmem>>, vector<1x1x7x64xbf16>
    %27 = vector.shape_cast %26 : vector<1x1x7x64xbf16> to vector<7x64xbf16>
    %28 = vector.shape_cast %25 : vector<7x64xbf16> to vector<1x1x7x64xbf16>
    tpu.vector_store %arg5[%c0_34, %c0_35, %c0_36, %c0_37], %28 {strides = array<i32>} : memref<1x1x7x64xbf16, #tpu.memory_space<vmem>>, vector<1x1x7x64xbf16>,
    return
  }
  func.func @transform_0(%arg0: i32, %arg1: i32) -> (i32, i32, i32, i32) {
    %c15_i32 = arith.constant 15 : i32
    %0 = arith.muli %arg0, %c15_i32 : i32
    %c2_i32 = arith.constant 2 : i32
    %1 = arith.muli %arg1, %c2_i32 : i32
    %2 = arith.addi %0, %1 : i32
    %c0_i32 = arith.constant 0 : i32
    %3 = arith.addi %2, %c0_i32 : i32
    %c0_i32_0 = arith.constant 0 : i32
    %c0_i32_1 = arith.constant 0 : i32
    %c0_i32_2 = arith.constant 0 : i32
    %c0_i32_3 = arith.constant 0 : i32
    return %3, %c0_i32_0, %c0_i32_1, %c0_i32_2 : i32, i32, i32, i32
  }
  func.func @transform_1(%arg0: i32, %arg1: i32) -> (i32, i32, i32, i32) {
    %c15_i32 = arith.constant 15 : i32
    %0 = arith.muli %arg0, %c15_i32 : i32
    %c2_i32 = arith.constant 2 : i32
    %1 = arith.muli %arg1, %c2_i32 : i32
    %2 = arith.addi %0, %1 : i32
    %c1_i32 = arith.constant 1 : i32
    %3 = arith.addi %2, %c1_i32 : i32
    %c0_i32 = arith.constant 0 : i32
    %c0_i32_0 = arith.constant 0 : i32
    %c0_i32_1 = arith.constant 0 : i32
    %c0_i32_2 = arith.constant 0 : i32
    return %3, %c0_i32, %c0_i32_0, %c0_i32_1 : i32, i32, i32, i32
  }
  func.func @transform_2(%arg0: i32, %arg1: i32) -> (i32, i32, i32, i32) {
    %c15_i32 = arith.constant 15 : i32
    %0 = arith.muli %arg0, %c15_i32 : i32
    %c2_i32 = arith.constant 2 : i32
    %1 = arith.muli %arg1, %c2_i32 : i32
    %2 = arith.addi %0, %1 : i32
    %c2_i32_0 = arith.constant 2 : i32
    %3 = arith.addi %2, %c2_i32_0 : i32
    %c0_i32 = arith.constant 0 : i32
    %c0_i32_1 = arith.constant 0 : i32
    %c0_i32_2 = arith.constant 0 : i32
    %c0_i32_3 = arith.constant 0 : i32
    return %3, %c0_i32, %c0_i32_1, %c0_i32_2 : i32, i32, i32, i32
  }
  func.func @transform_3(%arg0: i32, %arg1: i32) -> (i32, i32, i32, i32) {
    %c0_i32 = arith.constant 0 : i32
    %c0_i32_0 = arith.constant 0 : i32
    %c0_i32_1 = arith.constant 0 : i32
    return %arg0, %arg1, %c0_i32, %c0_i32_0 : i32, i32, i32, i32
  }
}

module attributes {stable_mosaic.version = 11 : i64} {
  func.func @_conv_row_kernel(%arg0: i32, %arg1: i32, %arg2: i32, %arg3: memref<1x1x11x64xbf16, #tpu.memory_space<vmem>>, %arg4: memref<25x64x192xbf16, #tpu.memory_space<vmem>>, %arg5: memref<1x192xf32, #tpu.memory_space<vmem>>, %arg6: memref<1x1x7x192xbf16, #tpu.memory_space<vmem>>, %arg7: memref<7x192xf32, #tpu.memory_space<vmem>>) attributes {dimension_semantics = [#tpu.dimension_semantics<parallel>, #tpu.dimension_semantics<parallel>, #tpu.dimension_semantics<arbitrary>], iteration_bounds = array<i64: 2, 7, 5>, scalar_prefetch = 0 : i64, scratch_operands = 1 : i64, tpu.core_type = #tpu.core_type<tc>, window_params = [{transform_indices = @transform_0, window_bounds = array<i64: 1, 1, 11, 64>}, {pipeline_mode = #tpu.pipeline_mode<synchronous>, transform_indices = @transform_1, window_bounds = array<i64: 25, 64, 192>}, {pipeline_mode = #tpu.pipeline_mode<synchronous>, transform_indices = @transform_2, window_bounds = array<i64: 1, 192>}, {transform_indices = @transform_3, window_bounds = array<i64: 1, 1, 7, 192>}]} {
    %c0_i32 = arith.constant 0 : i32
    %0 = arith.cmpi eq, %arg2, %c0_i32 : i32
    %1 = arith.extui %0 : i1 to i32
    %c0_i32_0 = arith.constant 0 : i32
    %2 = arith.cmpi ne, %1, %c0_i32_0 : i32
    scf.if %2 {
      %cst_41 = arith.constant 0.000000e+00 : f32
      %53 = vector.broadcast %cst_41 : f32 to vector<7x192xf32>
      %c0_42 = arith.constant 0 : index
      %c0_43 = arith.constant 0 : index
      %54 = vector.load %arg7[%c0_42, %c0_43] : memref<7x192xf32, #tpu.memory_space<vmem>>, vector<7x192xf32>
      tpu.vector_store %arg7[%c0_42, %c0_43], %53 {strides = array<i32>} : memref<7x192xf32, #tpu.memory_space<vmem>>, vector<7x192xf32>,
    } else {
    }
    %c0 = arith.constant 0 : index
    %c0_1 = arith.constant 0 : index
    %3 = vector.load %arg7[%c0, %c0_1] : memref<7x192xf32, #tpu.memory_space<vmem>>, vector<7x192xf32>
    %c0_2 = arith.constant 0 : index
    %c0_3 = arith.constant 0 : index
    %c0_4 = arith.constant 0 : index
    %c0_5 = arith.constant 0 : index
    %4 = vector.load %arg3[%c0_2, %c0_3, %c0_4, %c0_5] : memref<1x1x11x64xbf16, #tpu.memory_space<vmem>>, vector<1x1x7x64xbf16>
    %5 = vector.shape_cast %4 : vector<1x1x7x64xbf16> to vector<7x64xbf16>
    %c5_i32 = arith.constant 5 : i32
    %6 = arith.muli %arg2, %c5_i32 : i32
    %c0_i32_6 = arith.constant 0 : i32
    %7 = arith.addi %6, %c0_i32_6 : i32
    %8 = arith.index_cast %7 : i32 to index
    %c0_7 = arith.constant 0 : index
    %c0_8 = arith.constant 0 : index
    %9 = vector.load %arg4[%8, %c0_7, %c0_8] : memref<25x64x192xbf16, #tpu.memory_space<vmem>>, vector<1x64x192xbf16>
    %10 = vector.shape_cast %9 : vector<1x64x192xbf16> to vector<64x192xbf16>
    %cst = arith.constant dense<0.000000e+00> : vector<7x192xf32>
    %11 = tpu.matmul %5, %10, %cst {dimension_numbers = #tpu.dot_dimension_numbers<[1], [0], [0], [1], [0, 0, 1, 1], [], []>} : vector<7x64xbf16>, vector<64x192xbf16>, vector<7x192xf32> -> vector<7x192xf32>
    %12 = arith.addf %3, %11 : vector<7x192xf32>
    %c0_9 = arith.constant 0 : index
    %c0_10 = arith.constant 0 : index
    %c1 = arith.constant 1 : index
    %c0_11 = arith.constant 0 : index
    %13 = vector.load %arg3[%c0_9, %c0_10, %c1, %c0_11] : memref<1x1x11x64xbf16, #tpu.memory_space<vmem>>, vector<1x1x7x64xbf16>
    %14 = vector.shape_cast %13 : vector<1x1x7x64xbf16> to vector<7x64xbf16>
    %c5_i32_12 = arith.constant 5 : i32
    %15 = arith.muli %arg2, %c5_i32_12 : i32
    %c1_i32 = arith.constant 1 : i32
    %16 = arith.addi %15, %c1_i32 : i32
    %17 = arith.index_cast %16 : i32 to index
    %c0_13 = arith.constant 0 : index
    %c0_14 = arith.constant 0 : index
    %18 = vector.load %arg4[%17, %c0_13, %c0_14] : memref<25x64x192xbf16, #tpu.memory_space<vmem>>, vector<1x64x192xbf16>
    %19 = vector.shape_cast %18 : vector<1x64x192xbf16> to vector<64x192xbf16>
    %cst_15 = arith.constant dense<0.000000e+00> : vector<7x192xf32>
    %20 = tpu.matmul %14, %19, %cst_15 {dimension_numbers = #tpu.dot_dimension_numbers<[1], [0], [0], [1], [0, 0, 1, 1], [], []>} : vector<7x64xbf16>, vector<64x192xbf16>, vector<7x192xf32> -> vector<7x192xf32>
    %21 = arith.addf %12, %20 : vector<7x192xf32>
    %c0_16 = arith.constant 0 : index
    %c0_17 = arith.constant 0 : index
    %c2 = arith.constant 2 : index
    %c0_18 = arith.constant 0 : index
    %22 = vector.load %arg3[%c0_16, %c0_17, %c2, %c0_18] : memref<1x1x11x64xbf16, #tpu.memory_space<vmem>>, vector<1x1x7x64xbf16>
    %23 = vector.shape_cast %22 : vector<1x1x7x64xbf16> to vector<7x64xbf16>
    %c5_i32_19 = arith.constant 5 : i32
    %24 = arith.muli %arg2, %c5_i32_19 : i32
    %c2_i32 = arith.constant 2 : i32
    %25 = arith.addi %24, %c2_i32 : i32
    %26 = arith.index_cast %25 : i32 to index
    %c0_20 = arith.constant 0 : index
    %c0_21 = arith.constant 0 : index
    %27 = vector.load %arg4[%26, %c0_20, %c0_21] : memref<25x64x192xbf16, #tpu.memory_space<vmem>>, vector<1x64x192xbf16>
    %28 = vector.shape_cast %27 : vector<1x64x192xbf16> to vector<64x192xbf16>
    %cst_22 = arith.constant dense<0.000000e+00> : vector<7x192xf32>
    %29 = tpu.matmul %23, %28, %cst_22 {dimension_numbers = #tpu.dot_dimension_numbers<[1], [0], [0], [1], [0, 0, 1, 1], [], []>} : vector<7x64xbf16>, vector<64x192xbf16>, vector<7x192xf32> -> vector<7x192xf32>
    %30 = arith.addf %21, %29 : vector<7x192xf32>
    %c0_23 = arith.constant 0 : index
    %c0_24 = arith.constant 0 : index
    %c3 = arith.constant 3 : index
    %c0_25 = arith.constant 0 : index
    %31 = vector.load %arg3[%c0_23, %c0_24, %c3, %c0_25] : memref<1x1x11x64xbf16, #tpu.memory_space<vmem>>, vector<1x1x7x64xbf16>
    %32 = vector.shape_cast %31 : vector<1x1x7x64xbf16> to vector<7x64xbf16>
    %c5_i32_26 = arith.constant 5 : i32
    %33 = arith.muli %arg2, %c5_i32_26 : i32
    %c3_i32 = arith.constant 3 : i32
    %34 = arith.addi %33, %c3_i32 : i32
    %35 = arith.index_cast %34 : i32 to index
    %c0_27 = arith.constant 0 : index
    %c0_28 = arith.constant 0 : index
    %36 = vector.load %arg4[%35, %c0_27, %c0_28] : memref<25x64x192xbf16, #tpu.memory_space<vmem>>, vector<1x64x192xbf16>
    %37 = vector.shape_cast %36 : vector<1x64x192xbf16> to vector<64x192xbf16>
    %cst_29 = arith.constant dense<0.000000e+00> : vector<7x192xf32>
    %38 = tpu.matmul %32, %37, %cst_29 {dimension_numbers = #tpu.dot_dimension_numbers<[1], [0], [0], [1], [0, 0, 1, 1], [], []>} : vector<7x64xbf16>, vector<64x192xbf16>, vector<7x192xf32> -> vector<7x192xf32>
    %39 = arith.addf %30, %38 : vector<7x192xf32>
    %c0_30 = arith.constant 0 : index
    %c0_31 = arith.constant 0 : index
    %c4 = arith.constant 4 : index
    %c0_32 = arith.constant 0 : index
    %40 = vector.load %arg3[%c0_30, %c0_31, %c4, %c0_32] : memref<1x1x11x64xbf16, #tpu.memory_space<vmem>>, vector<1x1x7x64xbf16>
    %41 = vector.shape_cast %40 : vector<1x1x7x64xbf16> to vector<7x64xbf16>
    %c5_i32_33 = arith.constant 5 : i32
    %42 = arith.muli %arg2, %c5_i32_33 : i32
    %c4_i32 = arith.constant 4 : i32
    %43 = arith.addi %42, %c4_i32 : i32
    %44 = arith.index_cast %43 : i32 to index
    %c0_34 = arith.constant 0 : index
    %c0_35 = arith.constant 0 : index
    %45 = vector.load %arg4[%44, %c0_34, %c0_35] : memref<25x64x192xbf16, #tpu.memory_space<vmem>>, vector<1x64x192xbf16>
    %46 = vector.shape_cast %45 : vector<1x64x192xbf16> to vector<64x192xbf16>
    %cst_36 = arith.constant dense<0.000000e+00> : vector<7x192xf32>
    %47 = tpu.matmul %41, %46, %cst_36 {dimension_numbers = #tpu.dot_dimension_numbers<[1], [0], [0], [1], [0, 0, 1, 1], [], []>} : vector<7x64xbf16>, vector<64x192xbf16>, vector<7x192xf32> -> vector<7x192xf32>
    %48 = arith.addf %39, %47 : vector<7x192xf32>
    %c0_37 = arith.constant 0 : index
    %c0_38 = arith.constant 0 : index
    %49 = vector.load %arg7[%c0_37, %c0_38] : memref<7x192xf32, #tpu.memory_space<vmem>>, vector<7x192xf32>
    tpu.vector_store %arg7[%c0_37, %c0_38], %48 {strides = array<i32>} : memref<7x192xf32, #tpu.memory_space<vmem>>, vector<7x192xf32>,
    %c4_i32_39 = arith.constant 4 : i32
    %50 = arith.cmpi eq, %arg2, %c4_i32_39 : i32
    %51 = arith.extui %50 : i1 to i32
    %c0_i32_40 = arith.constant 0 : i32
    %52 = arith.cmpi ne, %51, %c0_i32_40 : i32
    scf.if %52 {
      %c0_41 = arith.constant 0 : index
      %c0_42 = arith.constant 0 : index
      %53 = vector.load %arg7[%c0_41, %c0_42] : memref<7x192xf32, #tpu.memory_space<vmem>>, vector<7x192xf32>
      %c0_43 = arith.constant 0 : index
      %c0_44 = arith.constant 0 : index
      %54 = vector.load %arg5[%c0_43, %c0_44] : memref<1x192xf32, #tpu.memory_space<vmem>>, vector<1x192xf32>
      %55 = vector.broadcast %54 : vector<1x192xf32> to vector<7x192xf32>
      %56 = arith.addf %53, %55 : vector<7x192xf32>
      %cst_45 = arith.constant 0.000000e+00 : f32
      %57 = vector.broadcast %cst_45 : f32 to vector<7x192xf32>
      %58 = arith.maximumf %56, %57 : vector<7x192xf32>
      %59 = arith.truncf %58 : vector<7x192xf32> to vector<7x192xbf16>
      %c0_46 = arith.constant 0 : index
      %c0_47 = arith.constant 0 : index
      %c0_48 = arith.constant 0 : index
      %c0_49 = arith.constant 0 : index
      %60 = vector.load %arg6[%c0_46, %c0_47, %c0_48, %c0_49] : memref<1x1x7x192xbf16, #tpu.memory_space<vmem>>, vector<1x1x7x192xbf16>
      %61 = vector.shape_cast %60 : vector<1x1x7x192xbf16> to vector<7x192xbf16>
      %62 = vector.shape_cast %59 : vector<7x192xbf16> to vector<1x1x7x192xbf16>
      tpu.vector_store %arg6[%c0_46, %c0_47, %c0_48, %c0_49], %62 {strides = array<i32>} : memref<1x1x7x192xbf16, #tpu.memory_space<vmem>>, vector<1x1x7x192xbf16>,
    } else {
    }
    return
  }
  func.func @transform_0(%arg0: i32, %arg1: i32, %arg2: i32) -> (i32, i32, i32, i32) {
    %c11_i32 = arith.constant 11 : i32
    %0 = arith.muli %arg0, %c11_i32 : i32
    %c1_i32 = arith.constant 1 : i32
    %1 = arith.muli %arg1, %c1_i32 : i32
    %2 = arith.addi %0, %1 : i32
    %3 = arith.addi %2, %arg2 : i32
    %c0_i32 = arith.constant 0 : i32
    %c0_i32_0 = arith.constant 0 : i32
    %c0_i32_1 = arith.constant 0 : i32
    %c0_i32_2 = arith.constant 0 : i32
    return %3, %c0_i32, %c0_i32_0, %c0_i32_1 : i32, i32, i32, i32
  }
  func.func @transform_1(%arg0: i32, %arg1: i32, %arg2: i32) -> (i32, i32, i32) {
    %c0_i32 = arith.constant 0 : i32
    %c0_i32_0 = arith.constant 0 : i32
    %c0_i32_1 = arith.constant 0 : i32
    %c0_i32_2 = arith.constant 0 : i32
    return %c0_i32, %c0_i32_0, %c0_i32_1 : i32, i32, i32
  }
  func.func @transform_2(%arg0: i32, %arg1: i32, %arg2: i32) -> (i32, i32) {
    %c0_i32 = arith.constant 0 : i32
    %c0_i32_0 = arith.constant 0 : i32
    %c0_i32_1 = arith.constant 0 : i32
    return %c0_i32, %c0_i32_0 : i32, i32
  }
  func.func @transform_3(%arg0: i32, %arg1: i32, %arg2: i32) -> (i32, i32, i32, i32) {
    %c0_i32 = arith.constant 0 : i32
    %c0_i32_0 = arith.constant 0 : i32
    %c0_i32_1 = arith.constant 0 : i32
    return %arg0, %arg1, %c0_i32, %c0_i32_0 : i32, i32, i32, i32
  }
}

module attributes {stable_mosaic.version = 11 : i64} {
  func.func @_maxpool_row_kernel(%arg0: i32, %arg1: i32, %arg2: memref<1x2x4x192xbf16, #tpu.memory_space<vmem>>, %arg3: memref<1x2x4x192xbf16, #tpu.memory_space<vmem>>, %arg4: memref<1x2x4x192xbf16, #tpu.memory_space<vmem>>, %arg5: memref<1x1x3x192xbf16, #tpu.memory_space<vmem>>) attributes {dimension_semantics = [#tpu.dimension_semantics<parallel>, #tpu.dimension_semantics<parallel>], iteration_bounds = array<i64: 2, 3>, scalar_prefetch = 0 : i64, scratch_operands = 0 : i64, tpu.core_type = #tpu.core_type<tc>, window_params = [{transform_indices = @transform_0, window_bounds = array<i64: 1, 2, 4, 192>}, {transform_indices = @transform_1, window_bounds = array<i64: 1, 2, 4, 192>}, {transform_indices = @transform_2, window_bounds = array<i64: 1, 2, 4, 192>}, {transform_indices = @transform_3, window_bounds = array<i64: 1, 1, 3, 192>}]} {
    %c0 = arith.constant 0 : index
    %c0_0 = arith.constant 0 : index
    %c0_1 = arith.constant 0 : index
    %c0_2 = arith.constant 0 : index
    %0 = vector.load %arg2[%c0, %c0_0, %c0_1, %c0_2] : memref<1x2x4x192xbf16, #tpu.memory_space<vmem>>, vector<1x1x3x192xbf16>
    %1 = vector.shape_cast %0 : vector<1x1x3x192xbf16> to vector<3x192xbf16>
    %c0_3 = arith.constant 0 : index
    %c1 = arith.constant 1 : index
    %c0_4 = arith.constant 0 : index
    %c0_5 = arith.constant 0 : index
    %2 = vector.load %arg2[%c0_3, %c1, %c0_4, %c0_5] : memref<1x2x4x192xbf16, #tpu.memory_space<vmem>>, vector<1x1x3x192xbf16>
    %3 = vector.shape_cast %2 : vector<1x1x3x192xbf16> to vector<3x192xbf16>
    %4 = arith.maximumf %1, %3 : vector<3x192xbf16>
    %c0_6 = arith.constant 0 : index
    %c0_7 = arith.constant 0 : index
    %c1_8 = arith.constant 1 : index
    %c0_9 = arith.constant 0 : index
    %5 = vector.load %arg2[%c0_6, %c0_7, %c1_8, %c0_9] : memref<1x2x4x192xbf16, #tpu.memory_space<vmem>>, vector<1x1x3x192xbf16>
    %6 = vector.shape_cast %5 : vector<1x1x3x192xbf16> to vector<3x192xbf16>
    %7 = arith.maximumf %4, %6 : vector<3x192xbf16>
    %c0_10 = arith.constant 0 : index
    %c0_11 = arith.constant 0 : index
    %c0_12 = arith.constant 0 : index
    %c0_13 = arith.constant 0 : index
    %8 = vector.load %arg3[%c0_10, %c0_11, %c0_12, %c0_13] : memref<1x2x4x192xbf16, #tpu.memory_space<vmem>>, vector<1x1x3x192xbf16>
    %9 = vector.shape_cast %8 : vector<1x1x3x192xbf16> to vector<3x192xbf16>
    %10 = arith.maximumf %7, %9 : vector<3x192xbf16>
    %c0_14 = arith.constant 0 : index
    %c1_15 = arith.constant 1 : index
    %c0_16 = arith.constant 0 : index
    %c0_17 = arith.constant 0 : index
    %11 = vector.load %arg3[%c0_14, %c1_15, %c0_16, %c0_17] : memref<1x2x4x192xbf16, #tpu.memory_space<vmem>>, vector<1x1x3x192xbf16>
    %12 = vector.shape_cast %11 : vector<1x1x3x192xbf16> to vector<3x192xbf16>
    %13 = arith.maximumf %10, %12 : vector<3x192xbf16>
    %c0_18 = arith.constant 0 : index
    %c0_19 = arith.constant 0 : index
    %c1_20 = arith.constant 1 : index
    %c0_21 = arith.constant 0 : index
    %14 = vector.load %arg3[%c0_18, %c0_19, %c1_20, %c0_21] : memref<1x2x4x192xbf16, #tpu.memory_space<vmem>>, vector<1x1x3x192xbf16>
    %15 = vector.shape_cast %14 : vector<1x1x3x192xbf16> to vector<3x192xbf16>
    %16 = arith.maximumf %13, %15 : vector<3x192xbf16>
    %c0_22 = arith.constant 0 : index
    %c0_23 = arith.constant 0 : index
    %c0_24 = arith.constant 0 : index
    %c0_25 = arith.constant 0 : index
    %17 = vector.load %arg4[%c0_22, %c0_23, %c0_24, %c0_25] : memref<1x2x4x192xbf16, #tpu.memory_space<vmem>>, vector<1x1x3x192xbf16>
    %18 = vector.shape_cast %17 : vector<1x1x3x192xbf16> to vector<3x192xbf16>
    %19 = arith.maximumf %16, %18 : vector<3x192xbf16>
    %c0_26 = arith.constant 0 : index
    %c1_27 = arith.constant 1 : index
    %c0_28 = arith.constant 0 : index
    %c0_29 = arith.constant 0 : index
    %20 = vector.load %arg4[%c0_26, %c1_27, %c0_28, %c0_29] : memref<1x2x4x192xbf16, #tpu.memory_space<vmem>>, vector<1x1x3x192xbf16>
    %21 = vector.shape_cast %20 : vector<1x1x3x192xbf16> to vector<3x192xbf16>
    %22 = arith.maximumf %19, %21 : vector<3x192xbf16>
    %c0_30 = arith.constant 0 : index
    %c0_31 = arith.constant 0 : index
    %c1_32 = arith.constant 1 : index
    %c0_33 = arith.constant 0 : index
    %23 = vector.load %arg4[%c0_30, %c0_31, %c1_32, %c0_33] : memref<1x2x4x192xbf16, #tpu.memory_space<vmem>>, vector<1x1x3x192xbf16>
    %24 = vector.shape_cast %23 : vector<1x1x3x192xbf16> to vector<3x192xbf16>
    %25 = arith.maximumf %22, %24 : vector<3x192xbf16>
    %c0_34 = arith.constant 0 : index
    %c0_35 = arith.constant 0 : index
    %c0_36 = arith.constant 0 : index
    %c0_37 = arith.constant 0 : index
    %26 = vector.load %arg5[%c0_34, %c0_35, %c0_36, %c0_37] : memref<1x1x3x192xbf16, #tpu.memory_space<vmem>>, vector<1x1x3x192xbf16>
    %27 = vector.shape_cast %26 : vector<1x1x3x192xbf16> to vector<3x192xbf16>
    %28 = vector.shape_cast %25 : vector<3x192xbf16> to vector<1x1x3x192xbf16>
    tpu.vector_store %arg5[%c0_34, %c0_35, %c0_36, %c0_37], %28 {strides = array<i32>} : memref<1x1x3x192xbf16, #tpu.memory_space<vmem>>, vector<1x1x3x192xbf16>,
    return
  }
  func.func @transform_0(%arg0: i32, %arg1: i32) -> (i32, i32, i32, i32) {
    %c7_i32 = arith.constant 7 : i32
    %0 = arith.muli %arg0, %c7_i32 : i32
    %c2_i32 = arith.constant 2 : i32
    %1 = arith.muli %arg1, %c2_i32 : i32
    %2 = arith.addi %0, %1 : i32
    %c0_i32 = arith.constant 0 : i32
    %3 = arith.addi %2, %c0_i32 : i32
    %c0_i32_0 = arith.constant 0 : i32
    %c0_i32_1 = arith.constant 0 : i32
    %c0_i32_2 = arith.constant 0 : i32
    %c0_i32_3 = arith.constant 0 : i32
    return %3, %c0_i32_0, %c0_i32_1, %c0_i32_2 : i32, i32, i32, i32
  }
  func.func @transform_1(%arg0: i32, %arg1: i32) -> (i32, i32, i32, i32) {
    %c7_i32 = arith.constant 7 : i32
    %0 = arith.muli %arg0, %c7_i32 : i32
    %c2_i32 = arith.constant 2 : i32
    %1 = arith.muli %arg1, %c2_i32 : i32
    %2 = arith.addi %0, %1 : i32
    %c1_i32 = arith.constant 1 : i32
    %3 = arith.addi %2, %c1_i32 : i32
    %c0_i32 = arith.constant 0 : i32
    %c0_i32_0 = arith.constant 0 : i32
    %c0_i32_1 = arith.constant 0 : i32
    %c0_i32_2 = arith.constant 0 : i32
    return %3, %c0_i32, %c0_i32_0, %c0_i32_1 : i32, i32, i32, i32
  }
  func.func @transform_2(%arg0: i32, %arg1: i32) -> (i32, i32, i32, i32) {
    %c7_i32 = arith.constant 7 : i32
    %0 = arith.muli %arg0, %c7_i32 : i32
    %c2_i32 = arith.constant 2 : i32
    %1 = arith.muli %arg1, %c2_i32 : i32
    %2 = arith.addi %0, %1 : i32
    %c2_i32_0 = arith.constant 2 : i32
    %3 = arith.addi %2, %c2_i32_0 : i32
    %c0_i32 = arith.constant 0 : i32
    %c0_i32_1 = arith.constant 0 : i32
    %c0_i32_2 = arith.constant 0 : i32
    %c0_i32_3 = arith.constant 0 : i32
    return %3, %c0_i32, %c0_i32_1, %c0_i32_2 : i32, i32, i32, i32
  }
  func.func @transform_3(%arg0: i32, %arg1: i32) -> (i32, i32, i32, i32) {
    %c0_i32 = arith.constant 0 : i32
    %c0_i32_0 = arith.constant 0 : i32
    %c0_i32_1 = arith.constant 0 : i32
    return %arg0, %arg1, %c0_i32, %c0_i32_0 : i32, i32, i32, i32
  }
}

module attributes {stable_mosaic.version = 11 : i64} {
  func.func @_conv_row_kernel(%arg0: i32, %arg1: i32, %arg2: i32, %arg3: memref<1x1x5x192xbf16, #tpu.memory_space<vmem>>, %arg4: memref<9x192x384xbf16, #tpu.memory_space<vmem>>, %arg5: memref<1x384xf32, #tpu.memory_space<vmem>>, %arg6: memref<1x1x3x384xbf16, #tpu.memory_space<vmem>>, %arg7: memref<3x384xf32, #tpu.memory_space<vmem>>) attributes {dimension_semantics = [#tpu.dimension_semantics<parallel>, #tpu.dimension_semantics<parallel>, #tpu.dimension_semantics<arbitrary>], iteration_bounds = array<i64: 2, 3, 3>, scalar_prefetch = 0 : i64, scratch_operands = 1 : i64, tpu.core_type = #tpu.core_type<tc>, window_params = [{transform_indices = @transform_0, window_bounds = array<i64: 1, 1, 5, 192>}, {pipeline_mode = #tpu.pipeline_mode<synchronous>, transform_indices = @transform_1, window_bounds = array<i64: 9, 192, 384>}, {pipeline_mode = #tpu.pipeline_mode<synchronous>, transform_indices = @transform_2, window_bounds = array<i64: 1, 384>}, {transform_indices = @transform_3, window_bounds = array<i64: 1, 1, 3, 384>}]} {
    %c0_i32 = arith.constant 0 : i32
    %0 = arith.cmpi eq, %arg2, %c0_i32 : i32
    %1 = arith.extui %0 : i1 to i32
    %c0_i32_0 = arith.constant 0 : i32
    %2 = arith.cmpi ne, %1, %c0_i32_0 : i32
    scf.if %2 {
      %cst_27 = arith.constant 0.000000e+00 : f32
      %35 = vector.broadcast %cst_27 : f32 to vector<3x384xf32>
      %c0_28 = arith.constant 0 : index
      %c0_29 = arith.constant 0 : index
      %36 = vector.load %arg7[%c0_28, %c0_29] : memref<3x384xf32, #tpu.memory_space<vmem>>, vector<3x384xf32>
      tpu.vector_store %arg7[%c0_28, %c0_29], %35 {strides = array<i32>} : memref<3x384xf32, #tpu.memory_space<vmem>>, vector<3x384xf32>,
    } else {
    }
    %c0 = arith.constant 0 : index
    %c0_1 = arith.constant 0 : index
    %3 = vector.load %arg7[%c0, %c0_1] : memref<3x384xf32, #tpu.memory_space<vmem>>, vector<3x384xf32>
    %c0_2 = arith.constant 0 : index
    %c0_3 = arith.constant 0 : index
    %c0_4 = arith.constant 0 : index
    %c0_5 = arith.constant 0 : index
    %4 = vector.load %arg3[%c0_2, %c0_3, %c0_4, %c0_5] : memref<1x1x5x192xbf16, #tpu.memory_space<vmem>>, vector<1x1x3x192xbf16>
    %5 = vector.shape_cast %4 : vector<1x1x3x192xbf16> to vector<3x192xbf16>
    %c3_i32 = arith.constant 3 : i32
    %6 = arith.muli %arg2, %c3_i32 : i32
    %c0_i32_6 = arith.constant 0 : i32
    %7 = arith.addi %6, %c0_i32_6 : i32
    %8 = arith.index_cast %7 : i32 to index
    %c0_7 = arith.constant 0 : index
    %c0_8 = arith.constant 0 : index
    %9 = vector.load %arg4[%8, %c0_7, %c0_8] : memref<9x192x384xbf16, #tpu.memory_space<vmem>>, vector<1x192x384xbf16>
    %10 = vector.shape_cast %9 : vector<1x192x384xbf16> to vector<192x384xbf16>
    %cst = arith.constant dense<0.000000e+00> : vector<3x384xf32>
    %11 = tpu.matmul %5, %10, %cst {dimension_numbers = #tpu.dot_dimension_numbers<[1], [0], [0], [1], [0, 0, 1, 1], [], []>} : vector<3x192xbf16>, vector<192x384xbf16>, vector<3x384xf32> -> vector<3x384xf32>
    %12 = arith.addf %3, %11 : vector<3x384xf32>
    %c0_9 = arith.constant 0 : index
    %c0_10 = arith.constant 0 : index
    %c1 = arith.constant 1 : index
    %c0_11 = arith.constant 0 : index
    %13 = vector.load %arg3[%c0_9, %c0_10, %c1, %c0_11] : memref<1x1x5x192xbf16, #tpu.memory_space<vmem>>, vector<1x1x3x192xbf16>
    %14 = vector.shape_cast %13 : vector<1x1x3x192xbf16> to vector<3x192xbf16>
    %c3_i32_12 = arith.constant 3 : i32
    %15 = arith.muli %arg2, %c3_i32_12 : i32
    %c1_i32 = arith.constant 1 : i32
    %16 = arith.addi %15, %c1_i32 : i32
    %17 = arith.index_cast %16 : i32 to index
    %c0_13 = arith.constant 0 : index
    %c0_14 = arith.constant 0 : index
    %18 = vector.load %arg4[%17, %c0_13, %c0_14] : memref<9x192x384xbf16, #tpu.memory_space<vmem>>, vector<1x192x384xbf16>
    %19 = vector.shape_cast %18 : vector<1x192x384xbf16> to vector<192x384xbf16>
    %cst_15 = arith.constant dense<0.000000e+00> : vector<3x384xf32>
    %20 = tpu.matmul %14, %19, %cst_15 {dimension_numbers = #tpu.dot_dimension_numbers<[1], [0], [0], [1], [0, 0, 1, 1], [], []>} : vector<3x192xbf16>, vector<192x384xbf16>, vector<3x384xf32> -> vector<3x384xf32>
    %21 = arith.addf %12, %20 : vector<3x384xf32>
    %c0_16 = arith.constant 0 : index
    %c0_17 = arith.constant 0 : index
    %c2 = arith.constant 2 : index
    %c0_18 = arith.constant 0 : index
    %22 = vector.load %arg3[%c0_16, %c0_17, %c2, %c0_18] : memref<1x1x5x192xbf16, #tpu.memory_space<vmem>>, vector<1x1x3x192xbf16>
    %23 = vector.shape_cast %22 : vector<1x1x3x192xbf16> to vector<3x192xbf16>
    %c3_i32_19 = arith.constant 3 : i32
    %24 = arith.muli %arg2, %c3_i32_19 : i32
    %c2_i32 = arith.constant 2 : i32
    %25 = arith.addi %24, %c2_i32 : i32
    %26 = arith.index_cast %25 : i32 to index
    %c0_20 = arith.constant 0 : index
    %c0_21 = arith.constant 0 : index
    %27 = vector.load %arg4[%26, %c0_20, %c0_21] : memref<9x192x384xbf16, #tpu.memory_space<vmem>>, vector<1x192x384xbf16>
    %28 = vector.shape_cast %27 : vector<1x192x384xbf16> to vector<192x384xbf16>
    %cst_22 = arith.constant dense<0.000000e+00> : vector<3x384xf32>
    %29 = tpu.matmul %23, %28, %cst_22 {dimension_numbers = #tpu.dot_dimension_numbers<[1], [0], [0], [1], [0, 0, 1, 1], [], []>} : vector<3x192xbf16>, vector<192x384xbf16>, vector<3x384xf32> -> vector<3x384xf32>
    %30 = arith.addf %21, %29 : vector<3x384xf32>
    %c0_23 = arith.constant 0 : index
    %c0_24 = arith.constant 0 : index
    %31 = vector.load %arg7[%c0_23, %c0_24] : memref<3x384xf32, #tpu.memory_space<vmem>>, vector<3x384xf32>
    tpu.vector_store %arg7[%c0_23, %c0_24], %30 {strides = array<i32>} : memref<3x384xf32, #tpu.memory_space<vmem>>, vector<3x384xf32>,
    %c2_i32_25 = arith.constant 2 : i32
    %32 = arith.cmpi eq, %arg2, %c2_i32_25 : i32
    %33 = arith.extui %32 : i1 to i32
    %c0_i32_26 = arith.constant 0 : i32
    %34 = arith.cmpi ne, %33, %c0_i32_26 : i32
    scf.if %34 {
      %c0_27 = arith.constant 0 : index
      %c0_28 = arith.constant 0 : index
      %35 = vector.load %arg7[%c0_27, %c0_28] : memref<3x384xf32, #tpu.memory_space<vmem>>, vector<3x384xf32>
      %c0_29 = arith.constant 0 : index
      %c0_30 = arith.constant 0 : index
      %36 = vector.load %arg5[%c0_29, %c0_30] : memref<1x384xf32, #tpu.memory_space<vmem>>, vector<1x384xf32>
      %37 = vector.broadcast %36 : vector<1x384xf32> to vector<3x384xf32>
      %38 = arith.addf %35, %37 : vector<3x384xf32>
      %cst_31 = arith.constant 0.000000e+00 : f32
      %39 = vector.broadcast %cst_31 : f32 to vector<3x384xf32>
      %40 = arith.maximumf %38, %39 : vector<3x384xf32>
      %41 = arith.truncf %40 : vector<3x384xf32> to vector<3x384xbf16>
      %c0_32 = arith.constant 0 : index
      %c0_33 = arith.constant 0 : index
      %c0_34 = arith.constant 0 : index
      %c0_35 = arith.constant 0 : index
      %42 = vector.load %arg6[%c0_32, %c0_33, %c0_34, %c0_35] : memref<1x1x3x384xbf16, #tpu.memory_space<vmem>>, vector<1x1x3x384xbf16>
      %43 = vector.shape_cast %42 : vector<1x1x3x384xbf16> to vector<3x384xbf16>
      %44 = vector.shape_cast %41 : vector<3x384xbf16> to vector<1x1x3x384xbf16>
      tpu.vector_store %arg6[%c0_32, %c0_33, %c0_34, %c0_35], %44 {strides = array<i32>} : memref<1x1x3x384xbf16, #tpu.memory_space<vmem>>, vector<1x1x3x384xbf16>,
    } else {
    }
    return
  }
  func.func @transform_0(%arg0: i32, %arg1: i32, %arg2: i32) -> (i32, i32, i32, i32) {
    %c5_i32 = arith.constant 5 : i32
    %0 = arith.muli %arg0, %c5_i32 : i32
    %c1_i32 = arith.constant 1 : i32
    %1 = arith.muli %arg1, %c1_i32 : i32
    %2 = arith.addi %0, %1 : i32
    %3 = arith.addi %2, %arg2 : i32
    %c0_i32 = arith.constant 0 : i32
    %c0_i32_0 = arith.constant 0 : i32
    %c0_i32_1 = arith.constant 0 : i32
    %c0_i32_2 = arith.constant 0 : i32
    return %3, %c0_i32, %c0_i32_0, %c0_i32_1 : i32, i32, i32, i32
  }
  func.func @transform_1(%arg0: i32, %arg1: i32, %arg2: i32) -> (i32, i32, i32) {
    %c0_i32 = arith.constant 0 : i32
    %c0_i32_0 = arith.constant 0 : i32
    %c0_i32_1 = arith.constant 0 : i32
    %c0_i32_2 = arith.constant 0 : i32
    return %c0_i32, %c0_i32_0, %c0_i32_1 : i32, i32, i32
  }
  func.func @transform_2(%arg0: i32, %arg1: i32, %arg2: i32) -> (i32, i32) {
    %c0_i32 = arith.constant 0 : i32
    %c0_i32_0 = arith.constant 0 : i32
    %c0_i32_1 = arith.constant 0 : i32
    return %c0_i32, %c0_i32_0 : i32, i32
  }
  func.func @transform_3(%arg0: i32, %arg1: i32, %arg2: i32) -> (i32, i32, i32, i32) {
    %c0_i32 = arith.constant 0 : i32
    %c0_i32_0 = arith.constant 0 : i32
    %c0_i32_1 = arith.constant 0 : i32
    return %arg0, %arg1, %c0_i32, %c0_i32_0 : i32, i32, i32, i32
  }
}

module attributes {stable_mosaic.version = 11 : i64} {
  func.func @_conv_row_kernel(%arg0: i32, %arg1: i32, %arg2: i32, %arg3: memref<1x1x5x384xbf16, #tpu.memory_space<vmem>>, %arg4: memref<9x384x256xbf16, #tpu.memory_space<vmem>>, %arg5: memref<1x256xf32, #tpu.memory_space<vmem>>, %arg6: memref<1x1x3x256xbf16, #tpu.memory_space<vmem>>, %arg7: memref<3x256xf32, #tpu.memory_space<vmem>>) attributes {dimension_semantics = [#tpu.dimension_semantics<parallel>, #tpu.dimension_semantics<parallel>, #tpu.dimension_semantics<arbitrary>], iteration_bounds = array<i64: 2, 3, 3>, scalar_prefetch = 0 : i64, scratch_operands = 1 : i64, tpu.core_type = #tpu.core_type<tc>, window_params = [{transform_indices = @transform_0, window_bounds = array<i64: 1, 1, 5, 384>}, {pipeline_mode = #tpu.pipeline_mode<synchronous>, transform_indices = @transform_1, window_bounds = array<i64: 9, 384, 256>}, {pipeline_mode = #tpu.pipeline_mode<synchronous>, transform_indices = @transform_2, window_bounds = array<i64: 1, 256>}, {transform_indices = @transform_3, window_bounds = array<i64: 1, 1, 3, 256>}]} {
    %c0_i32 = arith.constant 0 : i32
    %0 = arith.cmpi eq, %arg2, %c0_i32 : i32
    %1 = arith.extui %0 : i1 to i32
    %c0_i32_0 = arith.constant 0 : i32
    %2 = arith.cmpi ne, %1, %c0_i32_0 : i32
    scf.if %2 {
      %cst_27 = arith.constant 0.000000e+00 : f32
      %35 = vector.broadcast %cst_27 : f32 to vector<3x256xf32>
      %c0_28 = arith.constant 0 : index
      %c0_29 = arith.constant 0 : index
      %36 = vector.load %arg7[%c0_28, %c0_29] : memref<3x256xf32, #tpu.memory_space<vmem>>, vector<3x256xf32>
      tpu.vector_store %arg7[%c0_28, %c0_29], %35 {strides = array<i32>} : memref<3x256xf32, #tpu.memory_space<vmem>>, vector<3x256xf32>,
    } else {
    }
    %c0 = arith.constant 0 : index
    %c0_1 = arith.constant 0 : index
    %3 = vector.load %arg7[%c0, %c0_1] : memref<3x256xf32, #tpu.memory_space<vmem>>, vector<3x256xf32>
    %c0_2 = arith.constant 0 : index
    %c0_3 = arith.constant 0 : index
    %c0_4 = arith.constant 0 : index
    %c0_5 = arith.constant 0 : index
    %4 = vector.load %arg3[%c0_2, %c0_3, %c0_4, %c0_5] : memref<1x1x5x384xbf16, #tpu.memory_space<vmem>>, vector<1x1x3x384xbf16>
    %5 = vector.shape_cast %4 : vector<1x1x3x384xbf16> to vector<3x384xbf16>
    %c3_i32 = arith.constant 3 : i32
    %6 = arith.muli %arg2, %c3_i32 : i32
    %c0_i32_6 = arith.constant 0 : i32
    %7 = arith.addi %6, %c0_i32_6 : i32
    %8 = arith.index_cast %7 : i32 to index
    %c0_7 = arith.constant 0 : index
    %c0_8 = arith.constant 0 : index
    %9 = vector.load %arg4[%8, %c0_7, %c0_8] : memref<9x384x256xbf16, #tpu.memory_space<vmem>>, vector<1x384x256xbf16>
    %10 = vector.shape_cast %9 : vector<1x384x256xbf16> to vector<384x256xbf16>
    %cst = arith.constant dense<0.000000e+00> : vector<3x256xf32>
    %11 = tpu.matmul %5, %10, %cst {dimension_numbers = #tpu.dot_dimension_numbers<[1], [0], [0], [1], [0, 0, 1, 1], [], []>} : vector<3x384xbf16>, vector<384x256xbf16>, vector<3x256xf32> -> vector<3x256xf32>
    %12 = arith.addf %3, %11 : vector<3x256xf32>
    %c0_9 = arith.constant 0 : index
    %c0_10 = arith.constant 0 : index
    %c1 = arith.constant 1 : index
    %c0_11 = arith.constant 0 : index
    %13 = vector.load %arg3[%c0_9, %c0_10, %c1, %c0_11] : memref<1x1x5x384xbf16, #tpu.memory_space<vmem>>, vector<1x1x3x384xbf16>
    %14 = vector.shape_cast %13 : vector<1x1x3x384xbf16> to vector<3x384xbf16>
    %c3_i32_12 = arith.constant 3 : i32
    %15 = arith.muli %arg2, %c3_i32_12 : i32
    %c1_i32 = arith.constant 1 : i32
    %16 = arith.addi %15, %c1_i32 : i32
    %17 = arith.index_cast %16 : i32 to index
    %c0_13 = arith.constant 0 : index
    %c0_14 = arith.constant 0 : index
    %18 = vector.load %arg4[%17, %c0_13, %c0_14] : memref<9x384x256xbf16, #tpu.memory_space<vmem>>, vector<1x384x256xbf16>
    %19 = vector.shape_cast %18 : vector<1x384x256xbf16> to vector<384x256xbf16>
    %cst_15 = arith.constant dense<0.000000e+00> : vector<3x256xf32>
    %20 = tpu.matmul %14, %19, %cst_15 {dimension_numbers = #tpu.dot_dimension_numbers<[1], [0], [0], [1], [0, 0, 1, 1], [], []>} : vector<3x384xbf16>, vector<384x256xbf16>, vector<3x256xf32> -> vector<3x256xf32>
    %21 = arith.addf %12, %20 : vector<3x256xf32>
    %c0_16 = arith.constant 0 : index
    %c0_17 = arith.constant 0 : index
    %c2 = arith.constant 2 : index
    %c0_18 = arith.constant 0 : index
    %22 = vector.load %arg3[%c0_16, %c0_17, %c2, %c0_18] : memref<1x1x5x384xbf16, #tpu.memory_space<vmem>>, vector<1x1x3x384xbf16>
    %23 = vector.shape_cast %22 : vector<1x1x3x384xbf16> to vector<3x384xbf16>
    %c3_i32_19 = arith.constant 3 : i32
    %24 = arith.muli %arg2, %c3_i32_19 : i32
    %c2_i32 = arith.constant 2 : i32
    %25 = arith.addi %24, %c2_i32 : i32
    %26 = arith.index_cast %25 : i32 to index
    %c0_20 = arith.constant 0 : index
    %c0_21 = arith.constant 0 : index
    %27 = vector.load %arg4[%26, %c0_20, %c0_21] : memref<9x384x256xbf16, #tpu.memory_space<vmem>>, vector<1x384x256xbf16>
    %28 = vector.shape_cast %27 : vector<1x384x256xbf16> to vector<384x256xbf16>
    %cst_22 = arith.constant dense<0.000000e+00> : vector<3x256xf32>
    %29 = tpu.matmul %23, %28, %cst_22 {dimension_numbers = #tpu.dot_dimension_numbers<[1], [0], [0], [1], [0, 0, 1, 1], [], []>} : vector<3x384xbf16>, vector<384x256xbf16>, vector<3x256xf32> -> vector<3x256xf32>
    %30 = arith.addf %21, %29 : vector<3x256xf32>
    %c0_23 = arith.constant 0 : index
    %c0_24 = arith.constant 0 : index
    %31 = vector.load %arg7[%c0_23, %c0_24] : memref<3x256xf32, #tpu.memory_space<vmem>>, vector<3x256xf32>
    tpu.vector_store %arg7[%c0_23, %c0_24], %30 {strides = array<i32>} : memref<3x256xf32, #tpu.memory_space<vmem>>, vector<3x256xf32>,
    %c2_i32_25 = arith.constant 2 : i32
    %32 = arith.cmpi eq, %arg2, %c2_i32_25 : i32
    %33 = arith.extui %32 : i1 to i32
    %c0_i32_26 = arith.constant 0 : i32
    %34 = arith.cmpi ne, %33, %c0_i32_26 : i32
    scf.if %34 {
      %c0_27 = arith.constant 0 : index
      %c0_28 = arith.constant 0 : index
      %35 = vector.load %arg7[%c0_27, %c0_28] : memref<3x256xf32, #tpu.memory_space<vmem>>, vector<3x256xf32>
      %c0_29 = arith.constant 0 : index
      %c0_30 = arith.constant 0 : index
      %36 = vector.load %arg5[%c0_29, %c0_30] : memref<1x256xf32, #tpu.memory_space<vmem>>, vector<1x256xf32>
      %37 = vector.broadcast %36 : vector<1x256xf32> to vector<3x256xf32>
      %38 = arith.addf %35, %37 : vector<3x256xf32>
      %cst_31 = arith.constant 0.000000e+00 : f32
      %39 = vector.broadcast %cst_31 : f32 to vector<3x256xf32>
      %40 = arith.maximumf %38, %39 : vector<3x256xf32>
      %41 = arith.truncf %40 : vector<3x256xf32> to vector<3x256xbf16>
      %c0_32 = arith.constant 0 : index
      %c0_33 = arith.constant 0 : index
      %c0_34 = arith.constant 0 : index
      %c0_35 = arith.constant 0 : index
      %42 = vector.load %arg6[%c0_32, %c0_33, %c0_34, %c0_35] : memref<1x1x3x256xbf16, #tpu.memory_space<vmem>>, vector<1x1x3x256xbf16>
      %43 = vector.shape_cast %42 : vector<1x1x3x256xbf16> to vector<3x256xbf16>
      %44 = vector.shape_cast %41 : vector<3x256xbf16> to vector<1x1x3x256xbf16>
      tpu.vector_store %arg6[%c0_32, %c0_33, %c0_34, %c0_35], %44 {strides = array<i32>} : memref<1x1x3x256xbf16, #tpu.memory_space<vmem>>, vector<1x1x3x256xbf16>,
    } else {
    }
    return
  }
  func.func @transform_0(%arg0: i32, %arg1: i32, %arg2: i32) -> (i32, i32, i32, i32) {
    %c5_i32 = arith.constant 5 : i32
    %0 = arith.muli %arg0, %c5_i32 : i32
    %c1_i32 = arith.constant 1 : i32
    %1 = arith.muli %arg1, %c1_i32 : i32
    %2 = arith.addi %0, %1 : i32
    %3 = arith.addi %2, %arg2 : i32
    %c0_i32 = arith.constant 0 : i32
    %c0_i32_0 = arith.constant 0 : i32
    %c0_i32_1 = arith.constant 0 : i32
    %c0_i32_2 = arith.constant 0 : i32
    return %3, %c0_i32, %c0_i32_0, %c0_i32_1 : i32, i32, i32, i32
  }
  func.func @transform_1(%arg0: i32, %arg1: i32, %arg2: i32) -> (i32, i32, i32) {
    %c0_i32 = arith.constant 0 : i32
    %c0_i32_0 = arith.constant 0 : i32
    %c0_i32_1 = arith.constant 0 : i32
    %c0_i32_2 = arith.constant 0 : i32
    return %c0_i32, %c0_i32_0, %c0_i32_1 : i32, i32, i32
  }
  func.func @transform_2(%arg0: i32, %arg1: i32, %arg2: i32) -> (i32, i32) {
    %c0_i32 = arith.constant 0 : i32
    %c0_i32_0 = arith.constant 0 : i32
    %c0_i32_1 = arith.constant 0 : i32
    return %c0_i32, %c0_i32_0 : i32, i32
  }
  func.func @transform_3(%arg0: i32, %arg1: i32, %arg2: i32) -> (i32, i32, i32, i32) {
    %c0_i32 = arith.constant 0 : i32
    %c0_i32_0 = arith.constant 0 : i32
    %c0_i32_1 = arith.constant 0 : i32
    return %arg0, %arg1, %c0_i32, %c0_i32_0 : i32, i32, i32, i32
  }
}

module attributes {stable_mosaic.version = 11 : i64} {
  func.func @_conv_row_kernel(%arg0: i32, %arg1: i32, %arg2: i32, %arg3: memref<1x1x5x256xbf16, #tpu.memory_space<vmem>>, %arg4: memref<9x256x256xbf16, #tpu.memory_space<vmem>>, %arg5: memref<1x256xf32, #tpu.memory_space<vmem>>, %arg6: memref<1x1x3x256xf32, #tpu.memory_space<vmem>>, %arg7: memref<3x256xf32, #tpu.memory_space<vmem>>) attributes {dimension_semantics = [#tpu.dimension_semantics<parallel>, #tpu.dimension_semantics<parallel>, #tpu.dimension_semantics<arbitrary>], iteration_bounds = array<i64: 2, 3, 3>, scalar_prefetch = 0 : i64, scratch_operands = 1 : i64, tpu.core_type = #tpu.core_type<tc>, window_params = [{transform_indices = @transform_0, window_bounds = array<i64: 1, 1, 5, 256>}, {pipeline_mode = #tpu.pipeline_mode<synchronous>, transform_indices = @transform_1, window_bounds = array<i64: 9, 256, 256>}, {pipeline_mode = #tpu.pipeline_mode<synchronous>, transform_indices = @transform_2, window_bounds = array<i64: 1, 256>}, {transform_indices = @transform_3, window_bounds = array<i64: 1, 1, 3, 256>}]} {
    %c0_i32 = arith.constant 0 : i32
    %0 = arith.cmpi eq, %arg2, %c0_i32 : i32
    %1 = arith.extui %0 : i1 to i32
    %c0_i32_0 = arith.constant 0 : i32
    %2 = arith.cmpi ne, %1, %c0_i32_0 : i32
    scf.if %2 {
      %cst_27 = arith.constant 0.000000e+00 : f32
      %35 = vector.broadcast %cst_27 : f32 to vector<3x256xf32>
      %c0_28 = arith.constant 0 : index
      %c0_29 = arith.constant 0 : index
      %36 = vector.load %arg7[%c0_28, %c0_29] : memref<3x256xf32, #tpu.memory_space<vmem>>, vector<3x256xf32>
      tpu.vector_store %arg7[%c0_28, %c0_29], %35 {strides = array<i32>} : memref<3x256xf32, #tpu.memory_space<vmem>>, vector<3x256xf32>,
    } else {
    }
    %c0 = arith.constant 0 : index
    %c0_1 = arith.constant 0 : index
    %3 = vector.load %arg7[%c0, %c0_1] : memref<3x256xf32, #tpu.memory_space<vmem>>, vector<3x256xf32>
    %c0_2 = arith.constant 0 : index
    %c0_3 = arith.constant 0 : index
    %c0_4 = arith.constant 0 : index
    %c0_5 = arith.constant 0 : index
    %4 = vector.load %arg3[%c0_2, %c0_3, %c0_4, %c0_5] : memref<1x1x5x256xbf16, #tpu.memory_space<vmem>>, vector<1x1x3x256xbf16>
    %5 = vector.shape_cast %4 : vector<1x1x3x256xbf16> to vector<3x256xbf16>
    %c3_i32 = arith.constant 3 : i32
    %6 = arith.muli %arg2, %c3_i32 : i32
    %c0_i32_6 = arith.constant 0 : i32
    %7 = arith.addi %6, %c0_i32_6 : i32
    %8 = arith.index_cast %7 : i32 to index
    %c0_7 = arith.constant 0 : index
    %c0_8 = arith.constant 0 : index
    %9 = vector.load %arg4[%8, %c0_7, %c0_8] : memref<9x256x256xbf16, #tpu.memory_space<vmem>>, vector<1x256x256xbf16>
    %10 = vector.shape_cast %9 : vector<1x256x256xbf16> to vector<256x256xbf16>
    %cst = arith.constant dense<0.000000e+00> : vector<3x256xf32>
    %11 = tpu.matmul %5, %10, %cst {dimension_numbers = #tpu.dot_dimension_numbers<[1], [0], [0], [1], [0, 0, 1, 1], [], []>} : vector<3x256xbf16>, vector<256x256xbf16>, vector<3x256xf32> -> vector<3x256xf32>
    %12 = arith.addf %3, %11 : vector<3x256xf32>
    %c0_9 = arith.constant 0 : index
    %c0_10 = arith.constant 0 : index
    %c1 = arith.constant 1 : index
    %c0_11 = arith.constant 0 : index
    %13 = vector.load %arg3[%c0_9, %c0_10, %c1, %c0_11] : memref<1x1x5x256xbf16, #tpu.memory_space<vmem>>, vector<1x1x3x256xbf16>
    %14 = vector.shape_cast %13 : vector<1x1x3x256xbf16> to vector<3x256xbf16>
    %c3_i32_12 = arith.constant 3 : i32
    %15 = arith.muli %arg2, %c3_i32_12 : i32
    %c1_i32 = arith.constant 1 : i32
    %16 = arith.addi %15, %c1_i32 : i32
    %17 = arith.index_cast %16 : i32 to index
    %c0_13 = arith.constant 0 : index
    %c0_14 = arith.constant 0 : index
    %18 = vector.load %arg4[%17, %c0_13, %c0_14] : memref<9x256x256xbf16, #tpu.memory_space<vmem>>, vector<1x256x256xbf16>
    %19 = vector.shape_cast %18 : vector<1x256x256xbf16> to vector<256x256xbf16>
    %cst_15 = arith.constant dense<0.000000e+00> : vector<3x256xf32>
    %20 = tpu.matmul %14, %19, %cst_15 {dimension_numbers = #tpu.dot_dimension_numbers<[1], [0], [0], [1], [0, 0, 1, 1], [], []>} : vector<3x256xbf16>, vector<256x256xbf16>, vector<3x256xf32> -> vector<3x256xf32>
    %21 = arith.addf %12, %20 : vector<3x256xf32>
    %c0_16 = arith.constant 0 : index
    %c0_17 = arith.constant 0 : index
    %c2 = arith.constant 2 : index
    %c0_18 = arith.constant 0 : index
    %22 = vector.load %arg3[%c0_16, %c0_17, %c2, %c0_18] : memref<1x1x5x256xbf16, #tpu.memory_space<vmem>>, vector<1x1x3x256xbf16>
    %23 = vector.shape_cast %22 : vector<1x1x3x256xbf16> to vector<3x256xbf16>
    %c3_i32_19 = arith.constant 3 : i32
    %24 = arith.muli %arg2, %c3_i32_19 : i32
    %c2_i32 = arith.constant 2 : i32
    %25 = arith.addi %24, %c2_i32 : i32
    %26 = arith.index_cast %25 : i32 to index
    %c0_20 = arith.constant 0 : index
    %c0_21 = arith.constant 0 : index
    %27 = vector.load %arg4[%26, %c0_20, %c0_21] : memref<9x256x256xbf16, #tpu.memory_space<vmem>>, vector<1x256x256xbf16>
    %28 = vector.shape_cast %27 : vector<1x256x256xbf16> to vector<256x256xbf16>
    %cst_22 = arith.constant dense<0.000000e+00> : vector<3x256xf32>
    %29 = tpu.matmul %23, %28, %cst_22 {dimension_numbers = #tpu.dot_dimension_numbers<[1], [0], [0], [1], [0, 0, 1, 1], [], []>} : vector<3x256xbf16>, vector<256x256xbf16>, vector<3x256xf32> -> vector<3x256xf32>
    %30 = arith.addf %21, %29 : vector<3x256xf32>
    %c0_23 = arith.constant 0 : index
    %c0_24 = arith.constant 0 : index
    %31 = vector.load %arg7[%c0_23, %c0_24] : memref<3x256xf32, #tpu.memory_space<vmem>>, vector<3x256xf32>
    tpu.vector_store %arg7[%c0_23, %c0_24], %30 {strides = array<i32>} : memref<3x256xf32, #tpu.memory_space<vmem>>, vector<3x256xf32>,
    %c2_i32_25 = arith.constant 2 : i32
    %32 = arith.cmpi eq, %arg2, %c2_i32_25 : i32
    %33 = arith.extui %32 : i1 to i32
    %c0_i32_26 = arith.constant 0 : i32
    %34 = arith.cmpi ne, %33, %c0_i32_26 : i32
    scf.if %34 {
      %c0_27 = arith.constant 0 : index
      %c0_28 = arith.constant 0 : index
      %35 = vector.load %arg7[%c0_27, %c0_28] : memref<3x256xf32, #tpu.memory_space<vmem>>, vector<3x256xf32>
      %c0_29 = arith.constant 0 : index
      %c0_30 = arith.constant 0 : index
      %36 = vector.load %arg5[%c0_29, %c0_30] : memref<1x256xf32, #tpu.memory_space<vmem>>, vector<1x256xf32>
      %37 = vector.broadcast %36 : vector<1x256xf32> to vector<3x256xf32>
      %38 = arith.addf %35, %37 : vector<3x256xf32>
      %c0_31 = arith.constant 0 : index
      %c0_32 = arith.constant 0 : index
      %c0_33 = arith.constant 0 : index
      %c0_34 = arith.constant 0 : index
      %39 = vector.load %arg6[%c0_31, %c0_32, %c0_33, %c0_34] : memref<1x1x3x256xf32, #tpu.memory_space<vmem>>, vector<1x1x3x256xf32>
      %40 = vector.shape_cast %39 : vector<1x1x3x256xf32> to vector<3x256xf32>
      %41 = vector.shape_cast %38 : vector<3x256xf32> to vector<1x1x3x256xf32>
      tpu.vector_store %arg6[%c0_31, %c0_32, %c0_33, %c0_34], %41 {strides = array<i32>} : memref<1x1x3x256xf32, #tpu.memory_space<vmem>>, vector<1x1x3x256xf32>,
    } else {
    }
    return
  }
  func.func @transform_0(%arg0: i32, %arg1: i32, %arg2: i32) -> (i32, i32, i32, i32) {
    %c5_i32 = arith.constant 5 : i32
    %0 = arith.muli %arg0, %c5_i32 : i32
    %c1_i32 = arith.constant 1 : i32
    %1 = arith.muli %arg1, %c1_i32 : i32
    %2 = arith.addi %0, %1 : i32
    %3 = arith.addi %2, %arg2 : i32
    %c0_i32 = arith.constant 0 : i32
    %c0_i32_0 = arith.constant 0 : i32
    %c0_i32_1 = arith.constant 0 : i32
    %c0_i32_2 = arith.constant 0 : i32
    return %3, %c0_i32, %c0_i32_0, %c0_i32_1 : i32, i32, i32, i32
  }
  func.func @transform_1(%arg0: i32, %arg1: i32, %arg2: i32) -> (i32, i32, i32) {
    %c0_i32 = arith.constant 0 : i32
    %c0_i32_0 = arith.constant 0 : i32
    %c0_i32_1 = arith.constant 0 : i32
    %c0_i32_2 = arith.constant 0 : i32
    return %c0_i32, %c0_i32_0, %c0_i32_1 : i32, i32, i32
  }
  func.func @transform_2(%arg0: i32, %arg1: i32, %arg2: i32) -> (i32, i32) {
    %c0_i32 = arith.constant 0 : i32
    %c0_i32_0 = arith.constant 0 : i32
    %c0_i32_1 = arith.constant 0 : i32
    return %c0_i32, %c0_i32_0 : i32, i32
  }
  func.func @transform_3(%arg0: i32, %arg1: i32, %arg2: i32) -> (i32, i32, i32, i32) {
    %c0_i32 = arith.constant 0 : i32
    %c0_i32_0 = arith.constant 0 : i32
    %c0_i32_1 = arith.constant 0 : i32
    return %arg0, %arg1, %c0_i32, %c0_i32_0 : i32, i32, i32, i32
  }
}

</mosaic_0001>

<bundles_post_ra>
// kernel: alexnet_fe_forward.8
= control target key start
LH: loop header
LB: loop body
LE: loop exit
PB: predicated region body
PF: predicated region fallthrough
CT: control target
= control target key end

     0   :  { %s595_s12 = smov 0   ;;  %s597_s13 = smov 0   ;;  %s664_s0 = inlined_call_operand.vmem [shape: bf16[30,2,8,64], index: 0, kind: input, shape index: {}, may-alias: {0,1,2}]   ;;  %s665_s1 = inlined_call_operand.vmem [shape: bf16[30,2,8,64], index: 1, kind: input, shape index: {}, may-alias: {0,1,2}]   ;;  %s666_s2 = inlined_call_operand.vmem [shape: bf16[30,2,8,64], index: 2, kind: input, shape index: {}, may-alias: {0,1,2}]   ;;  %s667_s3 = inlined_call_operand.vmem [shape: bf16[2,7,7,64], index: 3, kind: output, shape index: {}]  }
   0x1   :  { %s599_s14 = smov 0   ;;  %s601_s15 = smov 0  }
   0x2   :  { %s603_s16 = smov 0  }
   0x3 LB: > { %s22_s17 = sadd.s32 1, %s565_s14  ;;  %s25_s18 = sadd.s32 1, %s569_s15  ;;  %s573_s16 = sphi %s603_s16, %s13_s16   ;;  %s569_s15 = sphi %s601_s15, %s671_s15   ;;  %s565_s14 = sphi %s599_s14, %s670_s14   ;;  %s561_s13 = sphi %s597_s13, %s669_s13   ;;  %s557_s12 = sphi %s595_s12, %s668_s12  }
   0x4   : > { %p23_p0 = scmp.ge.s32.totalorder %s22_s17, 7  ;;  %p475_p1 = scmp.ge.s32.totalorder %s573_s16, 1 }
   0x5   : > { %p215_p2 = scmp.lt.s32.totalorder %s573_s16, 15 }
   0x6   : > { %s673_s17 = smov (%p23_p0, %s22_s17), 0  ;;  %s675_s18 = smov (!%p23_p0, %s25_s18), %s569_s15 }
   0x7   : > { %p216_p3 = pnand %p475_p1, %p215_p2  ;;  %p27_p4 = scmp.ge.s32.totalorder %s675_s18, 2 }
   0x8   : > { %s263_s19 = smul.u32 (!%p216_p3), 15, %s561_s13  ;;  %s476_s20 = sshll.u32 (!%p216_p3), %s557_s12, 1  ;;  %vm355_vm0 = vcmask (!%p216_p3), 519168   ;;  %vm356_vm1 = vsmask.f32 (!%p216_p3), 3328 }
   0x9   : > { %s677_s18 = smov (%p27_p4, %s675_s18), 0  ;;  %219 = sbr.rel (%p216_p3) target bundleno = 44 (0x2c), region = 32 }
   0xa   : > { %s265_s21 = sadd.s32 (!%p216_p3), %s476_s20, %s263_s19  ;;  %p300_p5 = scmp.lt.s32.totalorder (!%p216_p3), %s561_s13, 1  ;;  %vm357_vm2 = vmand (!%p216_p3), %vm355_vm0, %vm356_vm1 }
   0xb   : > { %p266_p6 = scmp.lt.s32.totalorder (!%p216_p3), %s265_s21, 29  ;;  %s277_s22 = sadd.s32 (!%p216_p3), 1, %s265_s21 }
   0xc   : > { %p278_p7 = scmp.lt.s32.totalorder (!%p216_p3), %s277_s22, 29  ;;  %s290_s23 = sadd.s32 (!%p216_p3), 2, %s265_s21 }
   0xd   : > { %p291_p8 = scmp.lt.s32.totalorder (!%p216_p3), %s290_s23, 29  ;;  %p302_p9 = scmp.lt.s32.totalorder (!%p216_p3), %s557_s12, 6 }
  0x10   : > { %s679_s21 = smov (!%p266_p6, %s265_s21), 29  ;;  %s681_s22 = smov (!%p278_p7, %s277_s22), 29 }
  0x11   : > { %s491_s24 = sshll.u32 %s679_s21, 3  ;;  %s492_s28 = sshll.u32 %s681_s22, 3 }
  0x12   : > { %s270_s27 = scalar_lea.vmem %s664_s0, %s491_s24  ;;  %s282_s4 = scalar_lea.vmem %s665_s1, %s492_s28 }
  0x13   : > { %v308_v0 = vld [vmem:[%s270_s27] sm:$0xf]  ;;  %s683_s23 = smov (!%p291_p8, %s290_s23), 29  ;;  %s685_s13 = smov (!%p300_p5, %s561_s13), 1  ;;  %v486_v4 = vld [vmem:[%s270_s27 + $0x4] sm:$0xf] }
  0x14   : > { %v313_v1 = vshrl.u32 %v308_v0, 16  ;;  %v316_v2 = vshll.u32 %v308_v0, 16  ;;  %v323_v3 = vld [vmem:[%s282_s4] sm:$0xf]  ;;  %s493_s5 = sshll.u32 %s683_s23, 3  ;;  %v311_v11 = vmax.bf16 %v486_v4, %v308_v0  ;;  %s494_s9 = smul.u32 7, %s685_s13 }
  0x15   : > { %v329_v5 = vshrl.u32 %v323_v3, 16  ;;  %v332_v6 = vshll.u32 %v323_v3, 16  ;;  %s295_s8 = scalar_lea.vmem %s666_s2, %s493_s5  ;;  %s687_s12 = smov (!%p302_p9, %s557_s12), 6  ;;  %v487_v21 = vld [vmem:[%s282_s4 + $0x4] sm:$0xf] }
  0x16   : > { %v315_v7 = vrot.slane %v313_v1, 4  ;;  %v318_v8 = vrot.slane %v316_v2, 5  ;;  %v339_v13 = vld [vmem:[%s295_s8] sm:$0xf]  ;;  %s305_s10 = sadd.s32 %s494_s9, %s687_s12  ;;  %v488_v27 = vld [vmem:[%s295_s8 + $0x4] sm:$0xf] }
  0x17   : > { %v331_v9 = vrot.slane %v329_v5, 4  ;;  %v334_v10 = vrot.slane %v332_v6, 5  ;;  %v345_v14 = vshrl.u32 %v339_v13, 16  ;;  %v348_v15 = vshll.u32 %v339_v13, 16  ;;  %s485_s11 = sshll.u32 %s305_s10, 2 }
  0x18   : > { %v319_v12 = vor.u32 %v318_v8, %v315_v7  ;;  %s307_s13 = scalar_lea.vmem %s667_s3, %s485_s11 }
  0x19   : > { %v335_v17 = vor.u32 %v334_v10, %v331_v9  ;;  %v347_v19 = vrot.slane %v345_v14, 4  ;;  %v350_v20 = vrot.slane %v348_v15, 5  ;;  %v358_v31 = vld [vmem:[%s307_s13] sm:$0xf] }
  0x1a   : > { %v320_v16 = vrot.slane %v319_v12, 4 }
  0x1b   : > { %v336_v23 = vrot.slane %v335_v17, 4  ;;  %v351_v25 = vor.u32 %v350_v20, %v347_v19 }
  0x1c   : > { %v322_v18 = vmax.bf16 %v320_v16, %v311_v11 }
  0x1d   : > { %v352_v29 = vrot.slane %v351_v25, 4 }
  0x1e   : > { %v324_v22 = vmax.bf16 %v323_v3, %v322_v18 }
  0x20   : > { %v327_v24 = vmax.bf16 %v487_v21, %v324_v22 }
  0x22   : > { %v338_v26 = vmax.bf16 %v336_v23, %v327_v24 }
  0x24   : > { %v340_v28 = vmax.bf16 %v339_v13, %v338_v26 }
  0x26   : > { %v343_v30 = vmax.bf16 %v488_v27, %v340_v28 }
  0x28   : > { %v354_v32 = vmax.bf16 %v352_v29, %v343_v30 }
  0x2a   : > { %v359_v33 = vsel %vm357_vm2, %v354_v32, %v358_v31 }
  0x2b   : > { %360 = vst [vmem:[%s307_s13] sm:$0xf] %v359_v33 }
  0x2c PF: > { %s13_s16 = sadd.s32 1, %s573_s16   ;;  %s668_s12 = smov %s565_s14 }
  0x2d   : > { %p10_p10 = scmp.ge.s32.totalorder %s13_s16, 16   ;;  %s669_s13 = smov %s569_s15 }
  0x2e   : > { %s670_s14 = smov %s673_s17  ;;  %s671_s15 = smov %s677_s18 }
  0x2f   :  { %12 = sbr.rel (!%p10_p10) target bundleno = 3 (0x3), region = 71 }

// kernel: alexnet_fe_forward.7
= control target key start
LH: loop header
LB: loop body
LE: loop exit
PB: predicated region body
PF: predicated region fallthrough
CT: control target
= control target key end

     0   :  { %s1451_s12 = smov 0   ;;  %s1453_s13 = smov 0   ;;  %s1632_s0 = inlined_call_operand.vmem [shape: bf16[136,4,17,3], index: 0, kind: input, shape index: {}]   ;;  %s1633_s1 = inlined_call_operand.vmem [shape: bf16[121,3,64], index: 1, kind: input, shape index: {}]   ;;  %s1634_s2 = inlined_call_operand.vmem [shape: f32[1,64], index: 2, kind: input, shape index: {}]   ;;  %s1635_s3 = inlined_call_operand.vmem [shape: bf16[2,15,15,64], index: 3, kind: output, shape index: {}]  }
   0x1   :  { %s1455_s14 = smov 0   ;;  %s1457_s15 = smov 0  }
   0x2   :  { %s1459_s16 = smov 0   ;;  %s1461_s17 = smov 0  }
   0x3   :  { %s1463_s18 = smov 0  }
   0x4 LB: > { %s25_s19 = sadd.s32 1, %s1413_s15  ;;  %s28_s20 = sadd.s32 1, %s1417_s16  ;;  %s1425_s18 = sphi %s1463_s18, %s13_s18   ;;  %s1421_s17 = sphi %s1461_s17, %s1641_s17   ;;  %s1417_s16 = sphi %s1459_s16, %s1640_s16   ;;  %s1413_s15 = sphi %s1457_s15, %s1639_s15   ;;  %s1409_s14 = sphi %s1455_s14, %s1638_s14   ;;  %s1405_s13 = sphi %s1453_s13, %s1637_s13   ;;  %s1401_s12 = sphi %s1451_s12, %s1636_s12  }
   0x5   : > { %p26_p0 = scmp.ge.s32.totalorder %s25_s19, 11  ;;  %p1102_p1 = scmp.ge.s32.totalorder %s1425_s18, 1 }
   0x6   : > { %p174_p2 = scmp.lt.s32.totalorder %s1425_s18, 331  ;;  %s32_s21 = sadd.s32 1, %s1421_s17 }
   0x7   : > { %s1643_s19 = smov (%p26_p0, %s25_s19), 0  ;;  %s1645_s20 = smov (!%p26_p0, %s28_s20), %s1417_s16 }
   0x8   : > { %p175_p3 = pnand %p1102_p1, %p174_p2  ;;  %p30_p4 = scmp.ge.s32.totalorder %s1645_s20, 15 }
   0x9   : > { %s206_s22 = smul.u32 (!%p175_p3), 68, %s1409_s14  ;;  %s1103_s23 = sshll.u32 (!%p175_p3), %s1405_s13, 2 }
   0xa   : > { %s1647_s20 = smov (%p30_p4, %s1645_s20), 0  ;;  %s1649_s21 = smov (!%p30_p4, %s32_s21), %s1421_s17 }
   0xb   : > { %p34_p5 = scmp.ge.s32.totalorder %s1649_s21, 2  ;;  %178 = sbr.rel (%p175_p3) target bundleno = 329 (0x149), region = 32 }
   0xc   : > { %p219_p6 = scmp.lt.s32.totalorder (!%p175_p3), %s1409_s14, 1  ;;  %s208_s24 = sadd.s32 (!%p175_p3), %s1103_s23, %s206_s22 }
   0xd   : > { %s1651_s21 = smov (%p34_p5, %s1649_s21), 0  ;;  %s209_s25 = sadd.s32 (!%p175_p3), %s1401_s12, %s208_s24 }
   0xe   : > { %p221_p7 = scmp.lt.s32.totalorder (!%p175_p3), %s1405_s13, 14  ;;  %p210_p8 = scmp.lt.s32.totalorder (!%p175_p3), %s209_s25, 135 }
   0xf   : > { %p1107_p9 = scmp.ne.s32.totalorder (!%p175_p3), %s1401_s12, 0 }
  0x12   : > { %s1653_s14 = smov (!%p219_p6, %s1409_s14), 1  ;;  %s1655_s25 = smov (!%p210_p8, %s209_s25), 135 }
  0x13   : > { %s1657_s13 = smov (!%p221_p7, %s1405_s13), 14  ;;  %s1299_s26 = smul.u32 48, %s1655_s25  ;;  %vm233_vm0 = vcmask (!%p1107_p9), 523264   ;;  %vm235_vm1 = vcmask (!%p1107_p9), 522240   ;;  %v1427_v0 = vmov (!%p1107_p9), 0.0  }
  0x14   : > { %s1105_s27 = sshll.u32 %s1657_s13, 1  ;;  %s1300_s28 = smul.u32 30, %s1653_s14  ;;  %234 = vst.msk [vmem:[#allocation2] sm:$0xff] (!%p1107_p9), %vm233_vm0, %v1427_v0 }
  0x15   : > { %s1504_s4 = scalar_lea.vmem %s1632_s0, %s1299_s26  ;;  %232 = sbr.rel (%p1107_p9) target bundleno = 28 (0x1c), region = 36  ;;  %236 = vst.msk [vmem:[#allocation2 + $0x8] sm:$0x7f] (!%p1107_p9), %vm235_vm1, %v1427_v0 }
  0x16   : > { %s225_s5 = sadd.s32 %s1300_s28, %s1105_s27 }
  0x17   : > { %s1106_s6 = sshll.u32 %s225_s5, 2 }
  0x18   : > { %s1509_s9 = scalar_lea.vmem %s1635_s3, %s1106_s6 }
  0x1c PF: > { %s1168_s10 = smul.u32 22, %s1401_s12  ;;  %vm254_vm2 = vcmask 1040384   ;;  %vm255_vm3 = vcmask 1041408   ;;  %v1428_v1 = vmov 0.0   ;;  %v1429_v2 = vmov 65535   ;;  %v1362_v9 = vld [vmem:[%s1504_s4 + $0xc] sm:$0xff]  }
  0x1d   : > { %1193 = vmatprep.subr.bf16.mxu1 %v1428_v1  ;;  %1223 = vmatprep.subr.bf16.mxu0 %v1428_v1  ;;  %v256_v3 = vsel %vm254_vm2, 4294967295, %v1429_v2  ;;  %vm1430_vm4 = vmmov 0   ;;  %v1533_v11 = vld [vmem:[%s1504_s4] sm:$0xff]   ;;  %vm250_vm5 = vcmask 23552   ;;  %v550_v12 = vshrl.u32 %v1362_v9, 16  ;;  %v1363_v17 = vld [vmem:[%s1504_s4 + $0x18] sm:$0xff]  }
  0x1e   : > { %s1518_s14 = scalar_lea.vmem %s1633_s1, %s1168_s10  ;;  %v1520_v4 = vsel %vm255_vm3, %v256_v3, 0  ;;  %1195 = vmatprep.mubr.msk.bf16.mxu1 %vm1430_vm4, %v1428_v1  ;;  %1225 = vmatprep.mubr.msk.bf16.mxu0 %vm1430_vm4, %v1428_v1  ;;  %v552_v13 = vshll.u32 %v1362_v9, 16  ;;  %v611_v20 = vshll.u32 %v1363_v17, 16  ;;  %v609_v22 = vshrl.u32 %v1363_v17, 16  ;;  %v1364_v27 = vld [vmem:[%s1504_s4 + $0x24] sm:$0xff]   ;;  %p1162_p10 = scmp.ne.s32.totalorder %s1401_s12, 10 }
  0x1f   : > { %v244_v5 = vld [vmem:[%s1518_s14] sm:$0x3]  ;;  %v1133_v6 = vld [vmem:[%s1518_s14 + $0xa] sm:$0x3]  ;;  %v1114_v10 = vld [vmem:[%s1518_s14 + $0x2] sm:$0x3] }
  0x20   : > { %v259_v7 = vand.u32 %v1520_v4, %v244_v5  ;;  %v560_v8 = vand.u32 %v1133_v6, %v1520_v4  ;;  %v1136_v14 = vld [vmem:[%s1518_s14 + $0xc] sm:$0x3]  ;;  %v320_v15 = vand.u32 %v1114_v10, %v1520_v4  ;;  %v554_v16 = vrot.slane %v552_v13, 1  ;;  %v1120_v21 = vld [vmem:[%s1518_s14 + $0x4] sm:$0x3] }
  0x21   : > { %v619_v18 = vand.u32 %v1136_v14, %v1520_v4  ;;  %v613_v23 = vrot.slane %v611_v20, 1  ;;  %v1139_v24 = vld [vmem:[%s1518_s14 + $0xe] sm:$0x3]  ;;  %v381_v25 = vand.u32 %v1120_v21, %v1520_v4  ;;  %v670_v29 = vshll.u32 %v1364_v27, 16  ;;  %v1126_v30 = vld [vmem:[%s1518_s14 + $0x6] sm:$0x3] }
  0x22   : > { %1194 = vmatpush3.bf16.msra.mxu1 %v259_v7  ;;  %1224 = vmatpush3.bf16.msra.mxu0 %v560_v8  ;;  %v555_v19 = vor.u32 %v554_v16, %v550_v12  ;;  %v678_v28 = vand.u32 %v1139_v24, %v1520_v4  ;;  %v668_v31 = vshrl.u32 %v1364_v27, 16  ;;  %v1142_v33 = vld [vmem:[%s1518_s14 + $0x10] sm:$0x3]  ;;  %v442_v34 = vand.u32 %v1126_v30, %v1520_v4  ;;  %v1365_v37 = vld [vmem:[%s1504_s4] sm:$0xfe]  }
  0x23   : > { %1229 = vmatprep.subr.bf16.mxu0 %v1428_v1  ;;  %1199 = vmatprep.subr.bf16.mxu1 %v1428_v1  ;;  %v614_v26 = vor.u32 %v613_v23, %v609_v22  ;;  %v672_v32 = vrot.slane %v670_v29, 1  ;;  %v746_v36 = vand.u32 %v1142_v33, %v1520_v4  ;;  %v1366_v38 = vld [vmem:[%s1504_s4 + $0x8] ss:$0 sps:$4 sm:$0x11]   ;;  %v739_v40 = vrot.slane %v1365_v37, 1  ;;  %v237_v3 = vld [vmem:[#allocation2] sm:$0xff] }
  0x24   : > { %v1130_v39 = vld [vmem:[%s1518_s14 + $0x8] sm:$0x3]  ;;  %v740_v41 = vrot.slane %v1366_v38, 1  ;;  %vm738_vm6 = vcmask 1046528   ;;  %v1150_v42 = vld [vmem:[%s1518_s14 + $0x12] sm:$0x3] }
  0x25   : > { %1196 = vmatmul.mubr.msk.bf16.vlgmr.msra.gmra.mrb[0].mxu1 %vm250_vm5, %v1533_v11  ;;  %1226 = vmatmul.mubr.msk.bf16.vlgmr.msra.gmra.mrb[0].mxu0 %vm250_vm5, %v555_v19  ;;  %v673_v35 = vor.u32 %v672_v32, %v668_v31  ;;  %v501_v43 = vand.u32 %v1130_v39, %v1520_v4  ;;  %v493_v44 = vshll.u32 %v1533_v11, 16  ;;  %v813_v46 = vand.u32 %v1150_v42, %v1520_v4  ;;  %v1367_v49 = vld [vmem:[%s1504_s4 + $0xc] sm:$0xfe]   ;;  %v1368_v50 = vld [vmem:[%s1504_s4 + $0x14] ss:$0 sps:$4 sm:$0x11]  }
  0x26   : > { %1200 = vmatpush3.bf16.msra.mxu1 %v320_v15  ;;  %1201 = vmatprep.mubr.msk.bf16.mxu1 %vm1430_vm4, %v1428_v1  ;;  %v741_v45 = vsel %vm738_vm6, %v739_v40, %v740_v41  ;;  %v491_v47 = vshrl.u32 %v1533_v11, 16  ;;  %v806_v52 = vrot.slane %v1367_v49, 1  ;;  %v807_v53 = vrot.slane %v1368_v50, 1  ;;  %v1158_v54 = vld [vmem:[%s1518_s14 + $0x14] sm:$0x3] }
  0x27   : > { %1205 = vmatprep.subr.bf16.mxu1 %v1428_v1  ;;  %1230 = vmatpush3.bf16.msra.mxu0 %v619_v18  ;;  %v495_v48 = vrot.slane %v493_v44, 1  ;;  %v880_v56 = vand.u32 %v1158_v54, %v1520_v4  ;;  %v1369_v57 = vld [vmem:[%s1504_s4 + $0x18] sm:$0xfe]   ;;  %v1370_v58 = vld [vmem:[%s1504_s4 + $0x20] ss:$0 sps:$4 sm:$0x11]  }
  0x28   : > { %1231 = vmatprep.mubr.msk.bf16.mxu0 %vm1430_vm4, %v1428_v1  ;;  %1235 = vmatprep.subr.bf16.mxu0 %v1428_v1  ;;  %v808_v55 = vsel %vm738_vm6, %v806_v52, %v807_v53  ;;  %v873_v59 = vrot.slane %v1369_v57, 1  ;;  %v874_v60 = vrot.slane %v1370_v58, 1  ;;  %v238_v4 = vld [vmem:[#allocation2 + $0x8] sm:$0x7f]  ;;  %vm925_vm7 = vcmask 523264  }
  0x29   : > { %v496_v51 = vor.u32 %v495_v48, %v491_v47  ;;  %vm927_vm8 = vcmask 522240   ;;  %v1163_v14 = vld [vmem:[%s1634_s2] ss:$0 sm:$0xff] (!%p1162_p10)  ;;  %vm954_vm9 = vcmask (!%p1162_p10), 519168   ;;  %vm957_vm10 = vsmask.f32 (!%p1162_p10), 3328 }
  0x2a   : > { %v875_v61 = vsel %vm738_vm6, %v873_v59, %v874_v60  ;;  %vm958_vm11 = vmand (!%p1162_p10), %vm954_vm9, %vm957_vm10  ;;  %v959_v19 = vld [vmem:[%s1509_s9 + $0x4] sm:$0xf] (!%p1162_p10) }
  0x31   : > { %1202 = vmatmul.mubr.msk.bf16.vlgmr.msra.gmra.mrb[0].mxu1 %vm250_vm5, %v1362_v9  ;;  %1232 = vmatmul.mubr.msk.bf16.vlgmr.msra.gmra.mrb[0].mxu0 %vm250_vm5, %v614_v26 }
  0x32   : > { %1206 = vmatpush3.bf16.msra.mxu1 %v381_v25  ;;  %1207 = vmatprep.mubr.msk.bf16.mxu1 %vm1430_vm4, %v1428_v1 }
  0x33   : > { %1211 = vmatprep.subr.bf16.mxu1 %v1428_v1  ;;  %1236 = vmatpush3.bf16.msra.mxu0 %v678_v28 }
  0x34   : > { %1237 = vmatprep.mubr.msk.bf16.mxu0 %vm1430_vm4, %v1428_v1  ;;  %1241 = vmatprep.subr.bf16.mxu0 %v1428_v1 }
  0x3d   : > { %1208 = vmatmul.mubr.msk.bf16.vlgmr.msra.gmra.mrb[0].mxu1 %vm250_vm5, %v1363_v17  ;;  %1238 = vmatmul.mubr.msk.bf16.vlgmr.msra.gmra.mrb[0].mxu0 %vm250_vm5, %v673_v35 }
  0x3e   : > { %1212 = vmatpush3.bf16.msra.mxu1 %v442_v34  ;;  %1213 = vmatprep.mubr.msk.bf16.mxu1 %vm1430_vm4, %v1428_v1 }
  0x3f   : > { %1217 = vmatprep.subr.bf16.mxu1 %v1428_v1  ;;  %1242 = vmatpush3.bf16.msra.mxu0 %v746_v36 }
  0x40   : > { %1243 = vmatprep.mubr.msk.bf16.mxu0 %vm1430_vm4, %v1428_v1  ;;  %1247 = vmatprep.subr.bf16.mxu0 %v1428_v1 }
  0x49   : > { %1214 = vmatmul.mubr.msk.bf16.vlgmr.msra.gmra.mrb[0].mxu1 %vm250_vm5, %v1364_v27  ;;  %1244 = vmatmul.mubr.msk.bf16.vlgmr.msra.gmra.mrb[0].mxu0 %vm250_vm5, %v741_v45 }
  0x4a   : > { %1218 = vmatpush3.bf16.msra.mxu1 %v501_v43  ;;  %1219 = vmatprep.mubr.msk.bf16.mxu1 %vm1430_vm4, %v1428_v1 }
  0x4b   : > { %1248 = vmatpush3.bf16.msra.mxu0 %v813_v46  ;;  %1249 = vmatprep.mubr.msk.bf16.mxu0 %vm1430_vm4, %v1428_v1 }
  0x4c   : > { %1253 = vmatprep.subr.bf16.mxu0 %v1428_v1 }
  0x55   : > { %1220 = vmatmul.mubr.msk.bf16.vlgmr.msra.gmra.mrb[0].mxu1 %vm250_vm5, %v496_v51  ;;  %1250 = vmatmul.mubr.msk.bf16.vlgmr.msra.gmra.mrb[0].mxu0 %vm250_vm5, %v808_v55 }
  0x56   : > { %1254 = vmatpush3.bf16.msra.mxu0 %v880_v56  ;;  %1255 = vmatprep.mubr.msk.bf16.mxu0 %vm1430_vm4, %v1428_v1 }
  0x61   : > { %1256 = vmatmul.mubr.msk.bf16.vlgmr.msra.gmra.mrb[0].mxu0 %vm250_vm5, %v875_v61 }
 0x128   : > { %v537_v62 = vpop.f32.mrb[0].mxu1 }
 0x129   : > { %v1221_v63 = vpop.f32.mrb[1].mxu1  ;;  %v1259_v5 = vadd.f32 %v537_v62, %v237_v3 }
 0x12a   : > { %v540_v0 = vpop.f32.mrb[2].mxu1 }
 0x12b   : > { %v1222_v2 = vpop.f32.mrb[3].mxu1  ;;  %v1261_v7 = vadd.f32 %v540_v0, %v238_v4 }
 0x133   : > { %932 = sbr.rel (%p1162_p10) target bundleno = 329 (0x149), region = 40 }
 0x134   : > { %v916_v6 = vpop.f32.mrb[0].mxu0 }
 0x135   : > { %v1260_v8 = vadd.f32 %v1259_v5, %v916_v6  ;;  %v1257_v1 = vpop.f32.mrb[1].mxu0 }
 0x136   : > { %v919_v9 = vpop.f32.mrb[2].mxu0 }
 0x137   : > { %926 = vst.msk [vmem:[#allocation2] sm:$0xff] %vm925_vm7, %v1260_v8  ;;  %v1262_v10 = vadd.f32 %v1261_v7, %v919_v9  ;;  %v1258_v11 = vpop.f32.mrb[3].mxu0 }
 0x139   : > { %928 = vst.msk [vmem:[#allocation2 + $0x8] sm:$0x7f] %vm927_vm8, %v1262_v10 }
 0x13e   : > { %v933_v12 = vld [vmem:[#allocation2] sm:$0xff] }
 0x13f   : > { %v942_v15 = vadd.f32 %v1163_v14, %v933_v12 }
 0x140   : > { %v934_v13 = vld [vmem:[#allocation2 + $0x8] sm:$0x7f] }
 0x141   : > { %v943_v16 = vadd.f32 %v1163_v14, %v934_v13  ;;  %v944_v17 = vmax.f32 %v942_v15, 0.0 }
 0x143   : > { %v945_v18 = vmax.f32 %v943_v16, 0.0  ;;  %v1169_v20 = vpack.c.bf16 %v944_v17, %v944_v17 }
 0x145   : > { %v1170_v21 = vpack.c.bf16 %v945_v18, %v945_v18  ;;  %955 = vst.msk [vmem:[%s1509_s9] sm:$0xf] %vm954_vm9, %v1169_v20 }
 0x147   : > { %v960_v22 = vsel %vm958_vm11, %v1170_v21, %v959_v19 }
 0x148   : > { %961 = vst [vmem:[%s1509_s9 + $0x4] sm:$0xf] %v960_v22 }
 0x149 PF: > { %s13_s18 = sadd.s32 1, %s1425_s18   ;;  %s1636_s12 = smov %s1413_s15 }
 0x14a   : > { %p10_p11 = scmp.ge.s32.totalorder %s13_s18, 332   ;;  %s1637_s13 = smov %s1417_s16 }
 0x14b   : > { %s1638_s14 = smov %s1421_s17  ;;  %s1639_s15 = smov %s1643_s19 }
 0x14c   : > { %s1640_s16 = smov %s1647_s20  ;;  %s1641_s17 = smov %s1651_s21 }
 0x14d   :  { %12 = sbr.rel (!%p10_p11) target bundleno = 4 (0x4), region = 84 }

// kernel: alexnet_fe_forward.9
= control target key start
LH: loop header
LB: loop body
LE: loop exit
PB: predicated region body
PF: predicated region fallthrough
CT: control target
= control target key end

     0   :  { %s1229_s12 = smov 0   ;;  %s1231_s13 = smov 0   ;;  %s1371_s0 = inlined_call_operand.vmem [shape: bf16[22,1,11,64], index: 0, kind: input, shape index: {}]   ;;  %s1372_s1 = inlined_call_operand.vmem [shape: bf16[25,64,192], index: 1, kind: input, shape index: {}]   ;;  %s1373_s2 = inlined_call_operand.vmem [shape: f32[1,192], index: 2, kind: input, shape index: {}]   ;;  %s1374_s3 = inlined_call_operand.vmem [shape: bf16[2,7,7,192], index: 3, kind: output, shape index: {}]  }
   0x1   :  { %s1233_s14 = smov 0   ;;  %s1235_s15 = smov 0  }
   0x2   :  { %s1237_s16 = smov 0   ;;  %s1239_s17 = smov 0  }
   0x3   :  { %s1241_s18 = smov 0  }
   0x4 LB: > { %s25_s19 = sadd.s32 1, %s1193_s15  ;;  %s28_s20 = sadd.s32 1, %s1197_s16  ;;  %s1205_s18 = sphi %s1241_s18, %s13_s18   ;;  %s1201_s17 = sphi %s1239_s17, %s1380_s17   ;;  %s1197_s16 = sphi %s1237_s16, %s1379_s16   ;;  %s1193_s15 = sphi %s1235_s15, %s1378_s15   ;;  %s1189_s14 = sphi %s1233_s14, %s1377_s14   ;;  %s1185_s13 = sphi %s1231_s13, %s1376_s13   ;;  %s1181_s12 = sphi %s1229_s12, %s1375_s12  }
   0x5   : > { %p26_p0 = scmp.ge.s32.totalorder %s25_s19, 5  ;;  %p914_p1 = scmp.ge.s32.totalorder %s1205_s18, 1 }
   0x6   : > { %p170_p2 = scmp.lt.s32.totalorder %s1205_s18, 71  ;;  %s32_s21 = sadd.s32 1, %s1201_s17 }
   0x7   : > { %s1382_s19 = smov (%p26_p0, %s25_s19), 0  ;;  %s1384_s20 = smov (!%p26_p0, %s28_s20), %s1197_s16 }
   0x8   : > { %p171_p3 = pnand %p914_p1, %p170_p2  ;;  %p30_p4 = scmp.ge.s32.totalorder %s1384_s20, 7 }
   0x9   : > { %s201_s22 = smul.u32 (!%p171_p3), 11, %s1189_s14  ;;  %p212_p6 = scmp.lt.s32.totalorder (!%p171_p3), %s1189_s14, 1 }
   0xa   : > { %s1386_s20 = smov (%p30_p4, %s1384_s20), 0  ;;  %s1388_s21 = smov (!%p30_p4, %s32_s21), %s1201_s17 }
   0xb   : > { %p34_p5 = scmp.ge.s32.totalorder %s1388_s21, 2  ;;  %174 = sbr.rel (%p171_p3) target bundleno = 312 (0x138), region = 32 }
   0xc   : > { %s202_s23 = sadd.s32 (!%p171_p3), %s1185_s13, %s201_s22  ;;  %p214_p7 = scmp.lt.s32.totalorder (!%p171_p3), %s1185_s13, 6 }
   0xd   : > { %s1390_s21 = smov (%p34_p5, %s1388_s21), 0  ;;  %s203_s24 = sadd.s32 (!%p171_p3), %s1181_s12, %s202_s23 }
   0xe   : > { %p204_p8 = scmp.lt.s32.totalorder (!%p171_p3), %s203_s24, 21  ;;  %p919_p9 = scmp.ne.s32.totalorder (!%p171_p3), %s1181_s12, 0 }
  0x12   : > { %s1392_s14 = smov (!%p212_p6, %s1189_s14), 1  ;;  %s1394_s24 = smov (!%p204_p8, %s203_s24), 21 }
  0x13   : > { %s1396_s13 = smov (!%p214_p7, %s1185_s13), 6  ;;  %s1010_s25 = sshll.u32 %s1394_s24, 3  ;;  %vm227_vm0 = vcmask (!%p919_p9), 522240   ;;  %v1207_v0 = vmov (!%p919_p9), 0.0  }
  0x14   : > { %s1029_s26 = smul.u32 14, %s1392_s14  ;;  %s1277_s29 = scalar_lea.vmem %s1371_s0, %s1010_s25  ;;  %226 = vst [vmem:[#allocation2] sm:$0x7f] (!%p919_p9), %v1207_v0  ;;  %228 = vst.msk [vmem:[#allocation2 + $0x8] sm:$0x7f] (!%p919_p9), %vm227_vm0, %v1207_v0 }
  0x15   : > { %s917_s30 = sshll.u32 %s1396_s13, 1  ;;  %225 = sbr.rel (%p919_p9) target bundleno = 28 (0x1c), region = 36 }
  0x16   : > { %s218_s4 = sadd.s32 %s1029_s26, %s917_s30 }
  0x17   : > { %s918_s5 = sshll.u32 %s218_s4, 2 }
  0x18   : > { %s1282_s8 = scalar_lea.vmem %s1374_s3, %s918_s5 }
  0x1c PF: > { %s1011_s9 = smul.u32 320, %s1181_s12  ;;  %v1208_v1 = vmov 0   ;;  %v1119_v16 = vld [vmem:[%s1277_s29] sm:$0x1e]   ;;  %vm284_vm1 = vcmask 523264   ;;  %vm758_vm2 = vcmask 522240  }
  0x1d   : > { %320 = vmatprep.mubr.bf16.mxu1 %v1208_v1  ;;  %534 = vmatprep.mubr.bf16.mxu0 %v1208_v1  ;;  %v231_v21 = vld [vmem:[%s1277_s29] sm:$0xf]  ;;  %v458_v24 = vrot.slane %v1119_v16, 1  ;;  %v558_v33 = vshrl.u32 %v1119_v16, 16  ;;  %v561_v36 = vshll.u32 %v1119_v16, 16  ;;  %p1006_p10 = scmp.ne.s32.totalorder %s1181_s12, 4 }
  0x1e   : > { %s1291_s13 = scalar_lea.vmem %s1372_s1, %s1011_s9  ;;  %v940_v27 = vcombine.low %v231_v21, %v231_v21  ;;  %v1150_v54 = vld [vmem:[%s1277_s29] sm:$0x3c]   ;;  %v230_v62 = vld [vmem:[#allocation2 + $0x8] sm:$0x7f]  ;;  %vm790_vm3 = vcmask (!%p1006_p10), 1043456   ;;  %vm793_vm5 = vcmask (!%p1006_p10), 523268  }
  0x1f   : > { %v1088_v2 = vld [vmem:[%s1291_s13 + $0x4] ss:$8 sps:$4 sm:$0xff]   ;;  %v1092_v4 = vld [vmem:[%s1291_s13] ss:$8 sps:$4 sm:$0xff]   ;;  %v1094_v6 = vld [vmem:[%s1291_s13 + $0x14] ss:$8 sps:$4 sm:$0xff]  }
  0x20   : > { %v1090_v3 = vld [vmem:[%s1291_s13 + $0x84] ss:$8 sps:$4 sm:$0xff]   ;;  %288 = vmatprep.subr.bf16.mxu1 %v1088_v2  ;;  %v1093_v5 = vld [vmem:[%s1291_s13 + $0x80] ss:$8 sps:$4 sm:$0xff]   ;;  %v1096_v7 = vld [vmem:[%s1291_s13 + $0x94] ss:$8 sps:$4 sm:$0xff]  }
  0x21   : > { %502 = vmatprep.subr.bf16.mxu0 %v1090_v3  ;;  %289 = vmatpush1.bf16.msra.mxu1 %v1092_v4  ;;  %v1098_v8 = vld [vmem:[%s1291_s13 + $0x10] ss:$8 sps:$4 sm:$0xff]   ;;  %v1100_v10 = vld [vmem:[%s1291_s13 + $0x24] ss:$8 sps:$4 sm:$0xff]   ;;  %v1104_v12 = vld [vmem:[%s1291_s13 + $0x20] ss:$8 sps:$4 sm:$0xff]  }
  0x22   : > { %503 = vmatpush1.bf16.msra.mxu0 %v1093_v5  ;;  %290 = vmatprep.subr.bf16.mxu1 %v1094_v6  ;;  %v1099_v9 = vld [vmem:[%s1291_s13 + $0x90] ss:$8 sps:$4 sm:$0xff]   ;;  %v1102_v11 = vld [vmem:[%s1291_s13 + $0xa4] ss:$8 sps:$4 sm:$0xff]   ;;  %v1105_v13 = vld [vmem:[%s1291_s13 + $0xa0] ss:$8 sps:$4 sm:$0xff]  }
  0x23   : > { %504 = vmatprep.subr.bf16.mxu0 %v1096_v7  ;;  %v1106_v14 = vld [vmem:[%s1291_s13 + $0x34] ss:$8 sps:$4 sm:$0xff]   ;;  %v1110_v17 = vld [vmem:[%s1291_s13 + $0x30] ss:$8 sps:$4 sm:$0xff]   ;;  %v1114_v19 = vld [vmem:[%s1291_s13 + $0x44] ss:$8 sps:$4 sm:$0xff]   ;;  %v768_v7 = vlaneseq (!%p1006_p10) }
  0x24   : > { %v1108_v15 = vld [vmem:[%s1291_s13 + $0xb4] ss:$8 sps:$4 sm:$0xff]   ;;  %v1111_v18 = vld [vmem:[%s1291_s13 + $0xb0] ss:$8 sps:$4 sm:$0xff]   ;;  %v1117_v20 = vld [vmem:[%s1291_s13 + $0xc4] ss:$8 sps:$4 sm:$0xff]  }
  0x25   : > { %291 = vmatpush1.bf16.msra.mxu1 %v1098_v8  ;;  %v1112_v22 = vld [vmem:[%s1291_s13 + $0x40] ss:$8 sps:$4 sm:$0xff]   ;;  %v1122_v25 = vld [vmem:[%s1291_s13 + $0x54] ss:$8 sps:$4 sm:$0xff]   ;;  %v1120_v28 = vld [vmem:[%s1291_s13 + $0x50] ss:$8 sps:$4 sm:$0xff]  }
  0x26   : > { %505 = vmatpush1.bf16.msra.mxu0 %v1099_v9  ;;  %292 = vmatprep.subr.bf16.mxu1 %v1100_v10  ;;  %v1115_v23 = vld [vmem:[%s1291_s13 + $0xc0] ss:$8 sps:$4 sm:$0xff]   ;;  %v1125_v26 = vld [vmem:[%s1291_s13 + $0xd4] ss:$8 sps:$4 sm:$0xff]   ;;  %v1123_v29 = vld [vmem:[%s1291_s13 + $0xd0] ss:$8 sps:$4 sm:$0xff]  }
  0x27   : > { %506 = vmatprep.subr.bf16.mxu0 %v1102_v11  ;;  %v1128_v30 = vld [vmem:[%s1291_s13 + $0x64] ss:$8 sps:$4 sm:$0xff]   ;;  %v349_v32 = vshll.u32 %v940_v27, 16  ;;  %v1126_v34 = vld [vmem:[%s1291_s13 + $0x60] ss:$8 sps:$4 sm:$0xff]   ;;  %v347_v39 = vshrl.u32 %v940_v27, 16 }
  0x28   : > { %v1131_v31 = vld [vmem:[%s1291_s13 + $0xe4] ss:$8 sps:$4 sm:$0xff]   ;;  %v1129_v35 = vld [vmem:[%s1291_s13 + $0xe0] ss:$8 sps:$4 sm:$0xff]   ;;  %v1134_v37 = vld [vmem:[%s1291_s13 + $0x74] ss:$8 sps:$4 sm:$0xff]  }
  0x29   : > { %293 = vmatpush1.bf16.msra.mxu1 %v1104_v12  ;;  %v1137_v38 = vld [vmem:[%s1291_s13 + $0xf4] ss:$8 sps:$4 sm:$0xff]   ;;  %v351_v40 = vrot.slane %v349_v32, 1  ;;  %v560_v41 = vrot.slane %v558_v33, 1  ;;  %v563_v42 = vrot.slane %v561_v36, 2  ;;  %v670_v56 = vrot.slane %v1150_v54, 2 }
  0x2a   : > { %507 = vmatpush1.bf16.msra.mxu0 %v1105_v13  ;;  %294 = vmatprep.subr.bf16.mxu1 %v1106_v14  ;;  %v1132_v43 = vld [vmem:[%s1291_s13 + $0x70] ss:$8 sps:$4 sm:$0xff]   ;;  %v1140_v45 = vld [vmem:[%s1291_s13 + $0x104] ss:$8 sps:$4 sm:$0xff]   ;;  %v1138_v48 = vld [vmem:[%s1291_s13 + $0x100] ss:$8 sps:$4 sm:$0xff]  }
  0x2b   : > { %508 = vmatprep.subr.bf16.mxu0 %v1108_v15  ;;  %v1135_v44 = vld [vmem:[%s1291_s13 + $0xf0] ss:$8 sps:$4 sm:$0xff]   ;;  %v352_v46 = vor.u32 %v351_v40, %v347_v39  ;;  %v564_v47 = vor.u32 %v563_v42, %v560_v41  ;;  %v1143_v49 = vld [vmem:[%s1291_s13 + $0x114] ss:$8 sps:$4 sm:$0xff]   ;;  %v1146_v51 = vld [vmem:[%s1291_s13 + $0x124] ss:$8 sps:$4 sm:$0xff]  }
  0x2c   : > { %v1141_v50 = vld [vmem:[%s1291_s13 + $0x110] ss:$8 sps:$4 sm:$0xff]   ;;  %v1144_v52 = vld [vmem:[%s1291_s13 + $0x120] ss:$8 sps:$4 sm:$0xff]   ;;  %v1149_v53 = vld [vmem:[%s1291_s13 + $0x134] ss:$8 sps:$4 sm:$0xff]  }
  0x2d   : > { %295 = vmatpush1.bf16.msra.mxu1 %v1110_v17  ;;  %v1147_v55 = vld [vmem:[%s1291_s13 + $0x130] ss:$8 sps:$4 sm:$0xff]   ;;  %v229_v61 = vld [vmem:[#allocation2] sm:$0x7f]  ;;  %v769_v8 = vshrl.u32 (!%p1006_p10), %v768_v7, 7 }
  0x2e   : > { %509 = vmatpush1.bf16.msra.mxu0 %v1111_v18  ;;  %396 = vmatprep.subr.bf16.mxu1 %v1114_v19  ;;  %v766_v10 = vld [vmem:[%s1373_s2] sm:$0x3] (!%p1006_p10)  ;;  %vm791_vm4 = vsmask.f32 (!%p1006_p10), 3328  ;;  %vm794_vm6 = vsmask.f32 (!%p1006_p10), 7424 }
  0x2f   : > { %608 = vmatprep.subr.bf16.mxu0 %v1117_v20  ;;  %v770_v11 = vsub.s32 (!%p1006_p10), 0, %v769_v8  ;;  %v774_v12 = vsub.s32 (!%p1006_p10), 1, %v769_v8  ;;  %vm792_vm7 = vmand (!%p1006_p10), %vm790_vm3, %vm791_vm4  ;;  %v797_v20 = vld [vmem:[%s1282_s8] sm:$0xff] (!%p1006_p10) }
  0x30   : > { %930 = vmatmul.mubr.msk.bf16.vlgmr.msra.gmra.mrb[0].mxu1 %vm284_vm1, %v231_v21  ;;  %vm795_vm8 = vmand (!%p1006_p10), %vm793_vm5, %vm794_vm6 }
  0x31   : > { %968 = vmatmul.mubr.msk.bf16.vlgmr.msra.gmra.mrb[0].mxu0 %vm284_vm1, %v458_v24  ;;  %397 = vmatpush1.bf16.msra.mxu1 %v1112_v22  ;;  %v771_v14 = vrot.slane (!%p1006_p10), %v766_v10, %v770_v11  ;;  %v775_v15 = vrot.slane (!%p1006_p10), %v766_v10, %v774_v12  ;;  %vm796_vm9 = vmor (!%p1006_p10), %vm795_vm8, %vm792_vm7 }
  0x32   : > { %609 = vmatpush1.bf16.msra.mxu0 %v1115_v23  ;;  %398 = vmatprep.subr.bf16.mxu1 %v1122_v25 }
  0x33   : > { %610 = vmatprep.subr.bf16.mxu0 %v1125_v26  ;;  %428 = vmatprep.mubr.bf16.mxu1 %v1208_v1 }
  0x34   : > { %640 = vmatprep.mubr.bf16.mxu0 %v1208_v1 }
  0x35   : > { %399 = vmatpush1.bf16.msra.mxu1 %v1120_v28 }
  0x36   : > { %611 = vmatpush1.bf16.msra.mxu0 %v1123_v29  ;;  %400 = vmatprep.subr.bf16.mxu1 %v1128_v30 }
  0x37   : > { %612 = vmatprep.subr.bf16.mxu0 %v1131_v31 }
  0x39   : > { %401 = vmatpush1.bf16.msra.mxu1 %v1126_v34 }
  0x3a   : > { %613 = vmatpush1.bf16.msra.mxu0 %v1129_v35  ;;  %402 = vmatprep.subr.bf16.mxu1 %v1134_v37 }
  0x3b   : > { %614 = vmatprep.subr.bf16.mxu0 %v1137_v38 }
  0x3d   : > { %403 = vmatpush1.bf16.msra.mxu1 %v1132_v43 }
  0x3e   : > { %615 = vmatpush1.bf16.msra.mxu0 %v1135_v44 }
  0x3f   : > { %714 = vmatprep.subr.bf16.mxu0 %v1140_v45 }
  0x40   : > { %949 = vmatmul.mubr.msk.bf16.vlgmr.msra.gmra.mrb[0].mxu1 %vm284_vm1, %v352_v46 }
  0x41   : > { %986 = vmatmul.mubr.msk.bf16.vlgmr.msra.gmra.mrb[0].mxu0 %vm284_vm1, %v564_v47 }
  0x42   : > { %715 = vmatpush1.bf16.msra.mxu0 %v1138_v48  ;;  %746 = vmatprep.mubr.bf16.mxu0 %v1208_v1 }
  0x43   : > { %716 = vmatprep.subr.bf16.mxu0 %v1143_v49 }
  0x46   : > { %717 = vmatpush1.bf16.msra.mxu0 %v1141_v50 }
  0x47   : > { %718 = vmatprep.subr.bf16.mxu0 %v1146_v51 }
  0x4a   : > { %719 = vmatpush1.bf16.msra.mxu0 %v1144_v52 }
  0x4b   : > { %720 = vmatprep.subr.bf16.mxu0 %v1149_v53 }
  0x4e   : > { %721 = vmatpush1.bf16.msra.mxu0 %v1147_v55 }
  0x51   : > { %1005 = vmatmul.mubr.msk.bf16.vlgmr.msra.gmra.mrb[0].mxu0 %vm284_vm1, %v670_v56 }
 0x113   : > { %v430_v57 = vpop.f32.mrb[0].mxu1 }
 0x114   : > { %v432_v58 = vpop.f32.mrb[1].mxu1  ;;  %v1013_v63 = vadd.f32 %v430_v57, %v229_v61 }
 0x115   : > { %v434_v59 = vpop.f32.mrb[2].mxu1  ;;  %v1015_v0 = vadd.f32 %v432_v58, %v230_v62 }
 0x116   : > { %v435_v60 = vpop.f32.mrb[3].mxu1 }
 0x122   : > { %763 = sbr.rel (%p1006_p10) target bundleno = 312 (0x138), region = 40 }
 0x124   : > { %v748_v1 = vpop.f32.mrb[0].mxu0 }
 0x125   : > { %v1014_v2 = vadd.f32 %v1013_v63, %v748_v1  ;;  %v750_v3 = vpop.f32.mrb[1].mxu0 }
 0x126   : > { %v1016_v4 = vadd.f32 %v1015_v0, %v750_v3  ;;  %v752_v5 = vpop.f32.mrb[2].mxu0 }
 0x127   : > { %757 = vst [vmem:[#allocation2] sm:$0x7f] %v1014_v2  ;;  %v753_v6 = vpop.f32.mrb[3].mxu0 }
 0x128   : > { %759 = vst.msk [vmem:[#allocation2 + $0x8] sm:$0x7f] %vm758_vm2, %v1016_v4 }
 0x12e   : > { %v764_v9 = vld [vmem:[#allocation2] sm:$0x7f] }
 0x12f   : > { %v765_v13 = vld [vmem:[#allocation2 + $0x8] sm:$0x7f]  ;;  %v778_v16 = vadd.f32 %v771_v14, %v764_v9 }
 0x130   : > { %v779_v17 = vadd.f32 %v775_v15, %v765_v13 }
 0x131   : > { %v780_v18 = vmax.f32 %v778_v16, 0.0 }
 0x132   : > { %v781_v19 = vmax.f32 %v779_v17, 0.0 }
 0x134   : > { %v1012_v21 = vpack.c.bf16 %v781_v19, %v780_v18 }
 0x136   : > { %v798_v22 = vsel %vm796_vm9, %v1012_v21, %v797_v20 }
 0x137   : > { %799 = vst [vmem:[%s1282_s8] sm:$0xff] %v798_v22 }
 0x138 PF: > { %s13_s18 = sadd.s32 1, %s1205_s18   ;;  %s1375_s12 = smov %s1193_s15 }
 0x139   : > { %p10_p11 = scmp.ge.s32.totalorder %s13_s18, 72   ;;  %s1376_s13 = smov %s1197_s16 }
 0x13a   : > { %s1377_s14 = smov %s1201_s17  ;;  %s1378_s15 = smov %s1382_s19 }
 0x13b   : > { %s1379_s16 = smov %s1386_s20  ;;  %s1380_s17 = smov %s1390_s21 }
 0x13c   :  { %12 = sbr.rel (!%p10_p11) target bundleno = 4 (0x4), region = 75 }

// kernel: alexnet_fe_forward.10
= control target key start
LH: loop header
LB: loop body
LE: loop exit
PB: predicated region body
PF: predicated region fallthrough
CT: control target
= control target key end

     0   :  { %s608_s12 = smov 0   ;;  %s610_s13 = smov 0   ;;  %s679_s0 = inlined_call_operand.vmem [shape: bf16[14,2,4,192], index: 0, kind: input, shape index: {}, may-alias: {0,1,2}]   ;;  %s680_s1 = inlined_call_operand.vmem [shape: bf16[14,2,4,192], index: 1, kind: input, shape index: {}, may-alias: {0,1,2}]   ;;  %s681_s2 = inlined_call_operand.vmem [shape: bf16[14,2,4,192], index: 2, kind: input, shape index: {}, may-alias: {0,1,2}]   ;;  %s682_s3 = inlined_call_operand.vmem [shape: bf16[2,3,3,192], index: 3, kind: output, shape index: {}]  }
   0x1   :  { %s612_s14 = smov 0   ;;  %s614_s15 = smov 0  }
   0x2   :  { %s616_s16 = smov 0  }
   0x3 LB: > { %s22_s17 = sadd.s32 1, %s578_s14  ;;  %s25_s18 = sadd.s32 1, %s582_s15  ;;  %s586_s16 = sphi %s616_s16, %s13_s16   ;;  %s582_s15 = sphi %s614_s15, %s686_s15   ;;  %s578_s14 = sphi %s612_s14, %s685_s14   ;;  %s574_s13 = sphi %s610_s13, %s684_s13   ;;  %s570_s12 = sphi %s608_s12, %s683_s12  }
   0x4   : > { %p23_p0 = scmp.ge.s32.totalorder %s22_s17, 3  ;;  %p487_p1 = scmp.ge.s32.totalorder %s586_s16, 1 }
   0x5   : > { %p215_p2 = scmp.lt.s32.totalorder %s586_s16, 7 }
   0x6   : > { %s688_s17 = smov (%p23_p0, %s22_s17), 0  ;;  %s690_s18 = smov (!%p23_p0, %s25_s18), %s582_s15 }
   0x7   : > { %p216_p3 = pnand %p487_p1, %p215_p2  ;;  %p27_p4 = scmp.ge.s32.totalorder %s690_s18, 2 }
   0x8   : > { %s264_s19 = smul.u32 (!%p216_p3), 7, %s574_s13  ;;  %s488_s20 = sshll.u32 (!%p216_p3), %s570_s12, 1  ;;  %vm357_vm0 = vcmask (!%p216_p3), 1041408   ;;  %vm358_vm1 = vsmask.f32 (!%p216_p3), 1280  ;;  %vm360_vm2 = vcmask (!%p216_p3), 519170  }
   0x9   : > { %s692_s18 = smov (%p27_p4, %s690_s18), 0  ;;  %219 = sbr.rel (%p216_p3) target bundleno = 44 (0x2c), region = 32 }
   0xa   : > { %s266_s21 = sadd.s32 (!%p216_p3), %s488_s20, %s264_s19  ;;  %p301_p5 = scmp.lt.s32.totalorder (!%p216_p3), %s574_s13, 1  ;;  %vm361_vm3 = vsmask.f32 (!%p216_p3), 3328  ;;  %vm359_vm4 = vmand (!%p216_p3), %vm357_vm0, %vm358_vm1 }
   0xb   : > { %p267_p6 = scmp.lt.s32.totalorder (!%p216_p3), %s266_s21, 13  ;;  %s278_s22 = sadd.s32 (!%p216_p3), 1, %s266_s21  ;;  %vm362_vm5 = vmand (!%p216_p3), %vm360_vm2, %vm361_vm3 }
   0xc   : > { %p279_p7 = scmp.lt.s32.totalorder (!%p216_p3), %s278_s22, 13  ;;  %s291_s23 = sadd.s32 (!%p216_p3), 2, %s266_s21  ;;  %vm363_vm6 = vmor (!%p216_p3), %vm362_vm5, %vm359_vm4 }
   0xd   : > { %p292_p8 = scmp.lt.s32.totalorder (!%p216_p3), %s291_s23, 13  ;;  %p303_p9 = scmp.lt.s32.totalorder (!%p216_p3), %s570_s12, 2 }
  0x10   : > { %s694_s21 = smov (!%p267_p6, %s266_s21), 13  ;;  %s696_s22 = smov (!%p279_p7, %s278_s22), 13 }
  0x11   : > { %s504_s24 = sshll.u32 %s694_s21, 3  ;;  %s505_s28 = sshll.u32 %s696_s22, 3 }
  0x12   : > { %s271_s27 = scalar_lea.vmem %s679_s0, %s504_s24  ;;  %s283_s4 = scalar_lea.vmem %s680_s1, %s505_s28 }
  0x13   : > { %v310_v0 = vld [vmem:[%s271_s27] sm:$0xf]  ;;  %s698_s23 = smov (!%p292_p8, %s291_s23), 13  ;;  %s700_s13 = smov (!%p301_p5, %s574_s13), 1  ;;  %v499_v4 = vld [vmem:[%s271_s27 + $0x4] sm:$0xf] }
  0x14   : > { %v315_v1 = vshrl.u32 %v310_v0, 16  ;;  %v318_v2 = vshll.u32 %v310_v0, 16  ;;  %v325_v3 = vld [vmem:[%s283_s4] sm:$0xf]  ;;  %s506_s5 = sshll.u32 %s698_s23, 3  ;;  %s702_s12 = smov (!%p303_p9, %s570_s12), 2  ;;  %v313_v11 = vmax.bf16 %v499_v4, %v310_v0 }
  0x15   : > { %v331_v5 = vshrl.u32 %v325_v3, 16  ;;  %v334_v6 = vshll.u32 %v325_v3, 16  ;;  %s296_s8 = scalar_lea.vmem %s681_s2, %s506_s5  ;;  %s507_s9 = smul.u32 6, %s700_s13  ;;  %v500_v21 = vld [vmem:[%s283_s4 + $0x4] sm:$0xf] }
  0x16   : > { %v317_v7 = vrot.slane %v315_v1, 6  ;;  %v320_v8 = vrot.slane %v318_v2, 7  ;;  %v341_v13 = vld [vmem:[%s296_s8] sm:$0xf]  ;;  %s497_s10 = sshll.u32 %s702_s12, 1 }
  0x17   : > { %v333_v9 = vrot.slane %v331_v5, 6  ;;  %v336_v10 = vrot.slane %v334_v6, 7  ;;  %v347_v14 = vshrl.u32 %v341_v13, 16  ;;  %v350_v15 = vshll.u32 %v341_v13, 16  ;;  %s307_s11 = sadd.s32 %s507_s9, %s497_s10  ;;  %v501_v27 = vld [vmem:[%s296_s8 + $0x4] sm:$0xf] }
  0x18   : > { %v321_v12 = vor.u32 %v320_v8, %v317_v7  ;;  %s498_s19 = sshll.u32 %s307_s11, 1 }
  0x19   : > { %v337_v17 = vor.u32 %v336_v10, %v333_v9  ;;  %v349_v19 = vrot.slane %v347_v14, 6  ;;  %v352_v20 = vrot.slane %v350_v15, 7  ;;  %s309_s12 = scalar_lea.vmem %s682_s3, %s498_s19 }
  0x1a   : > { %v322_v16 = vrot.slane %v321_v12, 2  ;;  %v364_v31 = vld [vmem:[%s309_s12] sm:$0xf] }
  0x1b   : > { %v338_v23 = vrot.slane %v337_v17, 2  ;;  %v353_v25 = vor.u32 %v352_v20, %v349_v19 }
  0x1c   : > { %v324_v18 = vmax.bf16 %v322_v16, %v313_v11 }
  0x1d   : > { %v354_v29 = vrot.slane %v353_v25, 2 }
  0x1e   : > { %v326_v22 = vmax.bf16 %v325_v3, %v324_v18 }
  0x20   : > { %v329_v24 = vmax.bf16 %v500_v21, %v326_v22 }
  0x22   : > { %v340_v26 = vmax.bf16 %v338_v23, %v329_v24 }
  0x24   : > { %v342_v28 = vmax.bf16 %v341_v13, %v340_v26 }
  0x26   : > { %v345_v30 = vmax.bf16 %v501_v27, %v342_v28 }
  0x28   : > { %v356_v32 = vmax.bf16 %v354_v29, %v345_v30 }
  0x2a   : > { %v365_v33 = vsel %vm363_vm6, %v356_v32, %v364_v31 }
  0x2b   : > { %366 = vst [vmem:[%s309_s12] sm:$0xf] %v365_v33 }
  0x2c PF: > { %s13_s16 = sadd.s32 1, %s586_s16   ;;  %s683_s12 = smov %s578_s14 }
  0x2d   : > { %p10_p10 = scmp.ge.s32.totalorder %s13_s16, 8   ;;  %s684_s13 = smov %s582_s15 }
  0x2e   : > { %s685_s14 = smov %s688_s17  ;;  %s686_s15 = smov %s692_s18 }
  0x2f   :  { %12 = sbr.rel (!%p10_p10) target bundleno = 3 (0x3), region = 71 }

// kernel: alexnet_fe_forward.11
= control target key start
LH: loop header
LB: loop body
LE: loop exit
PB: predicated region body
PF: predicated region fallthrough
CT: control target
= control target key end

     0   :  { %s1975_s12 = smov 0   ;;  %s1977_s13 = smov 0   ;;  %s2235_s0 = inlined_call_operand.vmem [shape: bf16[10,1,5,192], index: 0, kind: input, shape index: {}]   ;;  %s2236_s1 = inlined_call_operand.vmem [shape: bf16[9,192,384], index: 1, kind: input, shape index: {}]   ;;  %s2237_s2 = inlined_call_operand.vmem [shape: f32[1,384], index: 2, kind: input, shape index: {}]   ;;  %s2238_s3 = inlined_call_operand.vmem [shape: bf16[2,3,3,384], index: 3, kind: output, shape index: {}]  }
   0x1   :  { %s1979_s14 = smov 0   ;;  %s1981_s15 = smov 0  }
   0x2   :  { %s1983_s16 = smov 0   ;;  %s1985_s17 = smov 0  }
   0x3   :  { %s1987_s18 = smov 0  }
   0x4 LB: > { %s25_s19 = sadd.s32 1, %s1938_s15  ;;  %s28_s20 = sadd.s32 1, %s1942_s16  ;;  %s1950_s18 = sphi %s1987_s18, %s13_s18   ;;  %s1946_s17 = sphi %s1985_s17, %s2244_s17   ;;  %s1942_s16 = sphi %s1983_s16, %s2243_s16   ;;  %s1938_s15 = sphi %s1981_s15, %s2242_s15   ;;  %s1934_s14 = sphi %s1979_s14, %s2241_s14   ;;  %s1930_s13 = sphi %s1977_s13, %s2240_s13   ;;  %s1926_s12 = sphi %s1975_s12, %s2239_s12  }
   0x5   : > { %p26_p0 = scmp.ge.s32.totalorder %s25_s19, 3  ;;  %p1445_p1 = scmp.ge.s32.totalorder %s1950_s18, 1 }
   0x6   : > { %p170_p2 = scmp.lt.s32.totalorder %s1950_s18, 19  ;;  %s32_s21 = sadd.s32 1, %s1946_s17 }
   0x7   : > { %s2246_s19 = smov (%p26_p0, %s25_s19), 0  ;;  %s2248_s20 = smov (!%p26_p0, %s28_s20), %s1942_s16 }
   0x8   : > { %p171_p3 = pnand %p1445_p1, %p170_p2  ;;  %p30_p4 = scmp.ge.s32.totalorder %s2248_s20, 3 }
   0x9   : > { %s201_s22 = smul.u32 (!%p171_p3), 5, %s1934_s14  ;;  %p212_p6 = scmp.lt.s32.totalorder (!%p171_p3), %s1934_s14, 1 }
   0xa   : > { %s2250_s20 = smov (%p30_p4, %s2248_s20), 0  ;;  %s2252_s21 = smov (!%p30_p4, %s32_s21), %s1946_s17 }
   0xb   : > { %p34_p5 = scmp.ge.s32.totalorder %s2252_s21, 2  ;;  %174 = sbr.rel (%p171_p3) target bundleno = 416 (0x1a0), region = 32 }
   0xc   : > { %s202_s23 = sadd.s32 (!%p171_p3), %s1930_s13, %s201_s22  ;;  %p214_p7 = scmp.lt.s32.totalorder (!%p171_p3), %s1930_s13, 2 }
   0xd   : > { %s2254_s21 = smov (%p34_p5, %s2252_s21), 0  ;;  %s203_s24 = sadd.s32 (!%p171_p3), %s1926_s12, %s202_s23 }
   0xe   : > { %p204_p8 = scmp.lt.s32.totalorder (!%p171_p3), %s203_s24, 9  ;;  %p1449_p9 = scmp.ne.s32.totalorder (!%p171_p3), %s1926_s12, 0 }
  0x12   : > { %s2256_s14 = smov (!%p212_p6, %s1934_s14), 1  ;;  %s2258_s24 = smov (!%p204_p8, %s203_s24), 9 }
  0x13   : > { %s2260_s13 = smov (!%p214_p7, %s1930_s13), 2  ;;  %s1674_s25 = sshll.u32 %s2258_s24, 3  ;;  %v1952_v0 = vmov (!%p1449_p9), 0.0  }
  0x14   : > { %s1686_s26 = smul.u32 9, %s2256_s14  ;;  %s2023_s29 = scalar_lea.vmem %s2235_s0, %s1674_s25  ;;  %226 = vst [vmem:[#allocation2] sm:$0x77] (!%p1449_p9), %v1952_v0  ;;  %227 = vst [vmem:[#allocation2 + $0x8] sm:$0x7] (!%p1449_p9), %v1952_v0 }
  0x15   : > { %s1685_s30 = smul.u32 3, %s2260_s13 }
  0x16   : > { %225 = sbr.rel (%p1449_p9) target bundleno = 29 (0x1d), region = 36 }
  0x17   : > { %s218_s4 = sadd.s32 %s1686_s26, %s1685_s30 }
  0x18   : > { %s1448_s5 = sshll.u32 %s218_s4, 1 }
  0x19   : > { %s2028_s8 = scalar_lea.vmem %s2238_s3, %s1448_s5 }
  0x1d PF: > { %s1675_s9 = smul.u32 864, %s1926_s12  ;;  %v2033_v1 = vld [vmem:[%s2023_s29] sm:$0x33]  ;;  %vm481_vm0 = vcmask 523264   ;;  %v1953_v2 = vmov 0   ;;  %p1670_p10 = scmp.ne.s32.totalorder %s1926_s12, 2 }
  0x1e   : > { %526 = vmatprep.subr.bf16.mxu1 %v1953_v2  ;;  %v1453_v3 = vcombine.high %v2033_v1, %v2033_v1  ;;  %v2082_v32 = vld [vmem:[%s2023_s29] sm:$0x33]  ;;  %v1452_v46 = vcombine.low %v2033_v1, %v2033_v1  ;;  %vm1325_vm1 = vcmask (!%p1670_p10), 1041408   ;;  %vm1326_vm2 = vsmask.f32 (!%p1670_p10), 1280 }
  0x1f   : > { %s2041_s13 = scalar_lea.vmem %s2236_s1, %s1675_s9  ;;  %v1542_v35 = vcombine.high %v2082_v32, %v2082_v32  ;;  %vm1328_vm3 = vcmask (!%p1670_p10), 1043458   ;;  %vm1329_vm4 = vsmask.f32 (!%p1670_p10), 3328  ;;  %vm1327_vm5 = vmand (!%p1670_p10), %vm1325_vm1, %vm1326_vm2  ;;  %vm1332_vm7 = vcmask (!%p1670_p10), 1045508  }
  0x20   : > { %v1746_v4 = vld [vmem:[%s2041_s13 + $0x4] ss:$12 sps:$4 sm:$0xff]   ;;  %1490 = vmatprep.mubr.msk.bf16.mxu0 %vm481_vm0, %v1453_v3  ;;  %1491 = vmatprep.mubr.msk.bf16.mxu1 %vm481_vm0, %v1453_v3  ;;  %v1748_v5 = vld [vmem:[%s2041_s13 + $0x8] ss:$12 sps:$4 sm:$0xff]   ;;  %v1749_v6 = vld [vmem:[%s2041_s13] ss:$12 sps:$4 sm:$0xff]  }
  0x21   : > { %485 = vmatprep.subr.bf16.mxu0 %v1746_v4  ;;  %527 = vmatpush1.bf16.msra.mxu1 %v1748_v5  ;;  %v1750_v7 = vld [vmem:[%s2041_s13 + $0x1c] ss:$12 sps:$4 sm:$0xff]   ;;  %v1752_v8 = vld [vmem:[%s2041_s13 + $0x20] ss:$12 sps:$4 sm:$0xff]   ;;  %v1753_v9 = vld [vmem:[%s2041_s13 + $0x18] ss:$12 sps:$4 sm:$0xff]  }
  0x22   : > { %486 = vmatpush1.bf16.msra.mxu0 %v1749_v6  ;;  %528 = vmatprep.subr.bf16.mxu1 %v1953_v2  ;;  %v1754_v10 = vld [vmem:[%s2041_s13 + $0x34] ss:$12 sps:$4 sm:$0xff]   ;;  %v1756_v11 = vld [vmem:[%s2041_s13 + $0x38] ss:$12 sps:$4 sm:$0xff]   ;;  %v1757_v12 = vld [vmem:[%s2041_s13 + $0x30] ss:$12 sps:$4 sm:$0xff]  }
  0x23   : > { %487 = vmatprep.subr.bf16.mxu0 %v1750_v7  ;;  %v1758_v13 = vld [vmem:[%s2041_s13 + $0x4c] ss:$12 sps:$4 sm:$0xff]   ;;  %v1760_v14 = vld [vmem:[%s2041_s13 + $0x50] ss:$12 sps:$4 sm:$0xff]   ;;  %v1761_v15 = vld [vmem:[%s2041_s13 + $0x48] ss:$12 sps:$4 sm:$0xff]  }
  0x24   : > { %v1762_v16 = vld [vmem:[%s2041_s13 + $0x64] ss:$12 sps:$4 sm:$0xff]   ;;  %v1764_v17 = vld [vmem:[%s2041_s13 + $0x68] ss:$12 sps:$4 sm:$0xff]   ;;  %v1765_v18 = vld [vmem:[%s2041_s13 + $0x60] ss:$12 sps:$4 sm:$0xff]  }
  0x25   : > { %529 = vmatpush1.bf16.msra.mxu1 %v1752_v8  ;;  %v1766_v19 = vld [vmem:[%s2041_s13 + $0x7c] ss:$12 sps:$4 sm:$0xff]   ;;  %v1768_v20 = vld [vmem:[%s2041_s13 + $0x80] ss:$12 sps:$4 sm:$0xff]   ;;  %v1769_v21 = vld [vmem:[%s2041_s13 + $0x78] ss:$12 sps:$4 sm:$0xff]  }
  0x26   : > { %488 = vmatpush1.bf16.msra.mxu0 %v1753_v9  ;;  %530 = vmatprep.subr.bf16.mxu1 %v1953_v2  ;;  %v1770_v22 = vld [vmem:[%s2041_s13 + $0x94] ss:$12 sps:$4 sm:$0xff]   ;;  %v1772_v23 = vld [vmem:[%s2041_s13 + $0x98] ss:$12 sps:$4 sm:$0xff]   ;;  %v1773_v24 = vld [vmem:[%s2041_s13 + $0x90] ss:$12 sps:$4 sm:$0xff]  }
  0x27   : > { %489 = vmatprep.subr.bf16.mxu0 %v1754_v10  ;;  %v1774_v25 = vld [vmem:[%s2041_s13 + $0xac] ss:$12 sps:$4 sm:$0xff]   ;;  %v1776_v26 = vld [vmem:[%s2041_s13 + $0xb0] ss:$12 sps:$4 sm:$0xff]   ;;  %v1777_v27 = vld [vmem:[%s2041_s13 + $0xa8] ss:$12 sps:$4 sm:$0xff]  }
  0x28   : > { %v1778_v28 = vld [vmem:[%s2041_s13 + $0xc4] ss:$12 sps:$4 sm:$0xff]   ;;  %v1780_v29 = vld [vmem:[%s2041_s13 + $0xc8] ss:$12 sps:$4 sm:$0xff]   ;;  %v1781_v30 = vld [vmem:[%s2041_s13 + $0xc0] ss:$12 sps:$4 sm:$0xff]  }
  0x29   : > { %531 = vmatpush1.bf16.msra.mxu1 %v1756_v11  ;;  %v1782_v31 = vld [vmem:[%s2041_s13 + $0xdc] ss:$12 sps:$4 sm:$0xff]   ;;  %v1784_v33 = vld [vmem:[%s2041_s13 + $0xe0] ss:$12 sps:$4 sm:$0xff]   ;;  %v1785_v34 = vld [vmem:[%s2041_s13 + $0xd8] ss:$12 sps:$4 sm:$0xff]  }
  0x2a   : > { %490 = vmatpush1.bf16.msra.mxu0 %v1757_v12  ;;  %532 = vmatprep.subr.bf16.mxu1 %v1953_v2  ;;  %v1786_v36 = vld [vmem:[%s2041_s13 + $0xf4] ss:$12 sps:$4 sm:$0xff]   ;;  %v1788_v37 = vld [vmem:[%s2041_s13 + $0xf8] ss:$12 sps:$4 sm:$0xff]   ;;  %v1789_v38 = vld [vmem:[%s2041_s13 + $0xf0] ss:$12 sps:$4 sm:$0xff]   ;;  %v1541_v12 = vcombine.low %v2082_v32, %v2082_v32 }
  0x2b   : > { %491 = vmatprep.subr.bf16.mxu0 %v1758_v13  ;;  %v640_v39 = vshll.u32 %v1542_v35, 16  ;;  %v1790_v40 = vld [vmem:[%s2041_s13 + $0x10c] ss:$12 sps:$4 sm:$0xff]   ;;  %v1792_v41 = vld [vmem:[%s2041_s13 + $0x110] ss:$12 sps:$4 sm:$0xff]   ;;  %v638_v44 = vshrl.u32 %v1542_v35, 16  ;;  %vm1330_vm6 = vmand (!%p1670_p10), %vm1328_vm3, %vm1329_vm4 }
  0x2c   : > { %v1793_v42 = vld [vmem:[%s2041_s13 + $0x108] ss:$12 sps:$4 sm:$0xff]   ;;  %v1798_v43 = vld [vmem:[%s2041_s13 + $0x124] ss:$12 sps:$4 sm:$0xff]   ;;  %v1796_v48 = vld [vmem:[%s2041_s13 + $0x120] ss:$12 sps:$4 sm:$0xff]  }
  0x2d   : > { %533 = vmatpush1.bf16.msra.mxu1 %v1760_v14  ;;  %v642_v45 = vrot.slane %v640_v39, 1  ;;  %v1799_v47 = vld [vmem:[%s2041_s13 + $0x128] ss:$12 sps:$4 sm:$0xff]   ;;  %v1803_v51 = vld [vmem:[%s2041_s13 + $0x140] ss:$12 sps:$4 sm:$0xff]   ;;  %vm1331_vm9 = vmor (!%p1670_p10), %vm1330_vm6, %vm1327_vm5 }
  0x2e   : > { %492 = vmatpush1.bf16.msra.mxu0 %v1761_v15  ;;  %534 = vmatprep.subr.bf16.mxu1 %v1953_v2  ;;  %v1802_v49 = vld [vmem:[%s2041_s13 + $0x13c] ss:$12 sps:$4 sm:$0xff]   ;;  %v1800_v52 = vld [vmem:[%s2041_s13 + $0x138] ss:$12 sps:$4 sm:$0xff]   ;;  %v1806_v53 = vld [vmem:[%s2041_s13 + $0x154] ss:$12 sps:$4 sm:$0xff]  }
  0x2f   : > { %493 = vmatprep.subr.bf16.mxu0 %v1762_v16  ;;  %v643_v50 = vor.u32 %v642_v45, %v638_v44  ;;  %v1807_v54 = vld [vmem:[%s2041_s13 + $0x158] ss:$12 sps:$4 sm:$0xff]   ;;  %v1804_v55 = vld [vmem:[%s2041_s13 + $0x150] ss:$12 sps:$4 sm:$0xff]   ;;  %v1808_v58 = vld [vmem:[%s2041_s13 + $0x168] ss:$12 sps:$4 sm:$0xff]  }
  0x30   : > { %v1810_v56 = vld [vmem:[%s2041_s13 + $0x16c] ss:$12 sps:$4 sm:$0xff]   ;;  %v1811_v57 = vld [vmem:[%s2041_s13 + $0x170] ss:$12 sps:$4 sm:$0xff]   ;;  %v1815_v60 = vld [vmem:[%s2041_s13 + $0x188] ss:$12 sps:$4 sm:$0xff]  }
  0x31   : > { %535 = vmatpush1.bf16.msra.mxu1 %v1764_v17  ;;  %v1814_v59 = vld [vmem:[%s2041_s13 + $0x184] ss:$12 sps:$4 sm:$0xff]   ;;  %v1812_v61 = vld [vmem:[%s2041_s13 + $0x180] ss:$12 sps:$4 sm:$0xff]   ;;  %v1818_v62 = vld [vmem:[%s2041_s13 + $0x19c] ss:$12 sps:$4 sm:$0xff]  }
  0x32   : > { %494 = vmatpush1.bf16.msra.mxu0 %v1765_v18  ;;  %536 = vmatprep.subr.bf16.mxu1 %v1953_v2  ;;  %v1819_v63 = vld [vmem:[%s2041_s13 + $0x1a0] ss:$12 sps:$4 sm:$0xff]   ;;  %v1816_v0 = vld [vmem:[%s2041_s13 + $0x198] ss:$12 sps:$4 sm:$0xff]   ;;  %v1820_v4 = vld [vmem:[%s2041_s13 + $0x1b0] ss:$12 sps:$4 sm:$0xff]  }
  0x33   : > { %495 = vmatprep.subr.bf16.mxu0 %v1766_v19  ;;  %v1822_v1 = vld [vmem:[%s2041_s13 + $0x1b4] ss:$12 sps:$4 sm:$0xff]   ;;  %v1823_v3 = vld [vmem:[%s2041_s13 + $0x1b8] ss:$12 sps:$4 sm:$0xff]   ;;  %v1827_v6 = vld [vmem:[%s2041_s13 + $0x1d0] ss:$12 sps:$4 sm:$0xff]  }
  0x34   : > { %v1826_v5 = vld [vmem:[%s2041_s13 + $0x1cc] ss:$12 sps:$4 sm:$0xff]   ;;  %v1824_v7 = vld [vmem:[%s2041_s13 + $0x1c8] ss:$12 sps:$4 sm:$0xff]   ;;  %v1830_v8 = vld [vmem:[%s2041_s13 + $0x1e4] ss:$12 sps:$4 sm:$0xff]  }
  0x35   : > { %537 = vmatpush1.bf16.msra.mxu1 %v1768_v20  ;;  %v1831_v9 = vld [vmem:[%s2041_s13 + $0x1e8] ss:$12 sps:$4 sm:$0xff]   ;;  %v1828_v10 = vld [vmem:[%s2041_s13 + $0x1e0] ss:$12 sps:$4 sm:$0xff]   ;;  %v1832_v14 = vld [vmem:[%s2041_s13 + $0x1f8] ss:$12 sps:$4 sm:$0xff]  }
  0x36   : > { %496 = vmatpush1.bf16.msra.mxu0 %v1769_v21  ;;  %538 = vmatprep.subr.bf16.mxu1 %v1953_v2  ;;  %v1834_v11 = vld [vmem:[%s2041_s13 + $0x1fc] ss:$12 sps:$4 sm:$0xff]   ;;  %v1835_v13 = vld [vmem:[%s2041_s13 + $0x200] ss:$12 sps:$4 sm:$0xff]   ;;  %v633_v16 = vshll.u32 %v1541_v12, 16  ;;  %v631_v20 = vshrl.u32 %v1541_v12, 16 }
  0x37   : > { %497 = vmatprep.subr.bf16.mxu0 %v1770_v22  ;;  %v1838_v15 = vld [vmem:[%s2041_s13 + $0x214] ss:$12 sps:$4 sm:$0xff]   ;;  %v1839_v17 = vld [vmem:[%s2041_s13 + $0x218] ss:$12 sps:$4 sm:$0xff]   ;;  %v1836_v18 = vld [vmem:[%s2041_s13 + $0x210] ss:$12 sps:$4 sm:$0xff]  }
  0x38   : > { %v1842_v19 = vld [vmem:[%s2041_s13 + $0x22c] ss:$12 sps:$4 sm:$0xff]   ;;  %v635_v21 = vrot.slane %v633_v16, 1  ;;  %v2149_v22 = vld [vmem:[%s2023_s29] sm:$0x66] }
  0x39   : > { %539 = vmatpush1.bf16.msra.mxu1 %v1772_v23  ;;  %v1843_v23 = vld [vmem:[%s2041_s13 + $0x230] ss:$12 sps:$4 sm:$0xff]   ;;  %v1853_v32 = vld [vmem:[%s2041_s13 + $0x260] ss:$12 sps:$4 sm:$0xff]   ;;  %v1857_v35 = vld [vmem:[%s2041_s13 + $0x278] ss:$12 sps:$4 sm:$0xff]  }
  0x3a   : > { %498 = vmatpush1.bf16.msra.mxu0 %v1773_v24  ;;  %540 = vmatprep.subr.bf16.mxu1 %v1953_v2  ;;  %v1840_v24 = vld [vmem:[%s2041_s13 + $0x228] ss:$12 sps:$4 sm:$0xff]   ;;  %v1869_v44 = vld [vmem:[%s2041_s13 + $0x2c0] ss:$12 sps:$4 sm:$0xff]   ;;  %v1866_v45 = vld [vmem:[%s2041_s13 + $0x2b8] ss:$12 sps:$4 sm:$0xff]  }
  0x3b   : > { %499 = vmatprep.subr.bf16.mxu0 %v1774_v25  ;;  %v1848_v25 = vld [vmem:[%s2041_s13 + $0x244] ss:$12 sps:$4 sm:$0xff]   ;;  %v1858_v39 = vld [vmem:[%s2041_s13 + $0x288] ss:$12 sps:$4 sm:$0xff]   ;;  %vm1333_vm8 = vsmask.f32 (!%p1670_p10), 5376 }
  0x3c   : > { %vm1334_vm10 = vmand (!%p1670_p10), %vm1332_vm7, %vm1333_vm8 }
  0x3d   : > { %541 = vmatpush1.bf16.msra.mxu1 %v1776_v26  ;;  %v1631_v26 = vcombine.high %v2149_v22, %v2149_v22  ;;  %vm1335_vm11 = vmor (!%p1670_p10), %vm1334_vm10, %vm1331_vm9 }
  0x3e   : > { %500 = vmatpush1.bf16.msra.mxu0 %v1777_v27  ;;  %542 = vmatprep.subr.bf16.mxu1 %v1953_v2  ;;  %v636_v27 = vor.u32 %v635_v21, %v631_v20 }
  0x3f   : > { %501 = vmatprep.subr.bf16.mxu0 %v1778_v28  ;;  %v1849_v28 = vld [vmem:[%s2041_s13 + $0x248] ss:$12 sps:$4 sm:$0xff]  }
  0x41   : > { %543 = vmatpush1.bf16.msra.mxu1 %v1780_v29  ;;  %v1846_v29 = vld [vmem:[%s2041_s13 + $0x240] ss:$12 sps:$4 sm:$0xff]  }
  0x42   : > { %502 = vmatpush1.bf16.msra.mxu0 %v1781_v30  ;;  %544 = vmatprep.subr.bf16.mxu1 %v1953_v2  ;;  %v1852_v30 = vld [vmem:[%s2041_s13 + $0x25c] ss:$12 sps:$4 sm:$0xff]  }
  0x43   : > { %503 = vmatprep.subr.bf16.mxu0 %v1782_v31  ;;  %v986_v31 = vrot.slane %v1631_v26, 1 }
  0x45   : > { %545 = vmatpush1.bf16.msra.mxu1 %v1784_v33  ;;  %v1850_v33 = vld [vmem:[%s2041_s13 + $0x258] ss:$12 sps:$4 sm:$0xff]  }
  0x46   : > { %504 = vmatpush1.bf16.msra.mxu0 %v1785_v34  ;;  %546 = vmatprep.subr.bf16.mxu1 %v1953_v2  ;;  %v1856_v34 = vld [vmem:[%s2041_s13 + $0x274] ss:$12 sps:$4 sm:$0xff]  }
  0x47   : > { %505 = vmatprep.subr.bf16.mxu0 %v1786_v36  ;;  %v1854_v36 = vld [vmem:[%s2041_s13 + $0x270] ss:$12 sps:$4 sm:$0xff]  }
  0x49   : > { %547 = vmatpush1.bf16.msra.mxu1 %v1788_v37  ;;  %v1860_v37 = vld [vmem:[%s2041_s13 + $0x28c] ss:$12 sps:$4 sm:$0xff]  }
  0x4a   : > { %506 = vmatpush1.bf16.msra.mxu0 %v1789_v38  ;;  %548 = vmatprep.subr.bf16.mxu1 %v1953_v2  ;;  %v1861_v38 = vld [vmem:[%s2041_s13 + $0x290] ss:$12 sps:$4 sm:$0xff]  }
  0x4b   : > { %507 = vmatprep.subr.bf16.mxu0 %v1790_v40  ;;  %v1864_v40 = vld [vmem:[%s2041_s13 + $0x2a4] ss:$12 sps:$4 sm:$0xff]  }
  0x4d   : > { %549 = vmatpush1.bf16.msra.mxu1 %v1792_v41  ;;  %v1865_v41 = vld [vmem:[%s2041_s13 + $0x2a8] ss:$12 sps:$4 sm:$0xff]  }
  0x4e   : > { %508 = vmatpush1.bf16.msra.mxu0 %v1793_v42  ;;  %881 = vmatprep.subr.bf16.mxu1 %v1953_v2  ;;  %v1862_v42 = vld [vmem:[%s2041_s13 + $0x2a0] ss:$12 sps:$4 sm:$0xff]  }
  0x4f   : > { %840 = vmatprep.subr.bf16.mxu0 %v1798_v43  ;;  %v1868_v43 = vld [vmem:[%s2041_s13 + $0x2bc] ss:$12 sps:$4 sm:$0xff]  }
  0x50   : > { %559 = vmatmul.mubr.bf16.vlgmr.msra.gmra.mrb[0].mxu1 %v1452_v46 }
  0x51   : > { %518 = vmatmul.mubr.bf16.vlgmr.msra.gmra.mrb[0].mxu0 %v1452_v46  ;;  %882 = vmatpush1.bf16.msra.mxu1 %v1799_v47  ;;  %v1872_v46 = vld [vmem:[%s2041_s13 + $0x2d4] ss:$12 sps:$4 sm:$0xff]   ;;  %v1873_v47 = vld [vmem:[%s2041_s13 + $0x2d8] ss:$12 sps:$4 sm:$0xff]  }
  0x52   : > { %841 = vmatpush1.bf16.msra.mxu0 %v1796_v48  ;;  %883 = vmatprep.subr.bf16.mxu1 %v1953_v2  ;;  %v1870_v48 = vld [vmem:[%s2041_s13 + $0x2d0] ss:$12 sps:$4 sm:$0xff]  }
  0x53   : > { %842 = vmatprep.subr.bf16.mxu0 %v1802_v49  ;;  %1579 = vmatprep.mubr.msk.bf16.mxu0 %vm481_vm0, %v643_v50  ;;  %v1876_v49 = vld [vmem:[%s2041_s13 + $0x2ec] ss:$12 sps:$4 sm:$0xff]  }
  0x54   : > { %1580 = vmatprep.mubr.msk.bf16.mxu1 %vm481_vm0, %v643_v50  ;;  %v1877_v50 = vld [vmem:[%s2041_s13 + $0x2f0] ss:$12 sps:$4 sm:$0xff]  }
  0x55   : > { %884 = vmatpush1.bf16.msra.mxu1 %v1803_v51  ;;  %v1874_v51 = vld [vmem:[%s2041_s13 + $0x2e8] ss:$12 sps:$4 sm:$0xff]  }
  0x56   : > { %843 = vmatpush1.bf16.msra.mxu0 %v1800_v52  ;;  %885 = vmatprep.subr.bf16.mxu1 %v1953_v2  ;;  %v1880_v52 = vld [vmem:[%s2041_s13 + $0x304] ss:$12 sps:$4 sm:$0xff]  }
  0x57   : > { %844 = vmatprep.subr.bf16.mxu0 %v1806_v53  ;;  %v1881_v53 = vld [vmem:[%s2041_s13 + $0x308] ss:$12 sps:$4 sm:$0xff]  }
  0x59   : > { %886 = vmatpush1.bf16.msra.mxu1 %v1807_v54  ;;  %v1878_v54 = vld [vmem:[%s2041_s13 + $0x300] ss:$12 sps:$4 sm:$0xff]  }
  0x5a   : > { %845 = vmatpush1.bf16.msra.mxu0 %v1804_v55  ;;  %887 = vmatprep.subr.bf16.mxu1 %v1953_v2  ;;  %v1884_v55 = vld [vmem:[%s2041_s13 + $0x31c] ss:$12 sps:$4 sm:$0xff]  }
  0x5b   : > { %846 = vmatprep.subr.bf16.mxu0 %v1810_v56  ;;  %v1885_v56 = vld [vmem:[%s2041_s13 + $0x320] ss:$12 sps:$4 sm:$0xff]  }
  0x5d   : > { %888 = vmatpush1.bf16.msra.mxu1 %v1811_v57  ;;  %v1882_v57 = vld [vmem:[%s2041_s13 + $0x318] ss:$12 sps:$4 sm:$0xff]  }
  0x5e   : > { %847 = vmatpush1.bf16.msra.mxu0 %v1808_v58  ;;  %889 = vmatprep.subr.bf16.mxu1 %v1953_v2  ;;  %v1888_v58 = vld [vmem:[%s2041_s13 + $0x334] ss:$12 sps:$4 sm:$0xff]  }
  0x5f   : > { %848 = vmatprep.subr.bf16.mxu0 %v1814_v59  ;;  %v1889_v59 = vld [vmem:[%s2041_s13 + $0x338] ss:$12 sps:$4 sm:$0xff]  }
  0x61   : > { %890 = vmatpush1.bf16.msra.mxu1 %v1815_v60  ;;  %v1886_v60 = vld [vmem:[%s2041_s13 + $0x330] ss:$12 sps:$4 sm:$0xff]  }
  0x62   : > { %849 = vmatpush1.bf16.msra.mxu0 %v1812_v61  ;;  %891 = vmatprep.subr.bf16.mxu1 %v1953_v2  ;;  %v1892_v61 = vld [vmem:[%s2041_s13 + $0x34c] ss:$12 sps:$4 sm:$0xff]  }
  0x63   : > { %850 = vmatprep.subr.bf16.mxu0 %v1818_v62  ;;  %v1630_v62 = vcombine.low %v2149_v22, %v2149_v22 }
  0x65   : > { %892 = vmatpush1.bf16.msra.mxu1 %v1819_v63  ;;  %v1893_v63 = vld [vmem:[%s2041_s13 + $0x350] ss:$12 sps:$4 sm:$0xff]  }
  0x66   : > { %851 = vmatpush1.bf16.msra.mxu0 %v1816_v0  ;;  %893 = vmatprep.subr.bf16.mxu1 %v1953_v2  ;;  %v1890_v0 = vld [vmem:[%s2041_s13 + $0x348] ss:$12 sps:$4 sm:$0xff]  }
  0x67   : > { %852 = vmatprep.subr.bf16.mxu0 %v1822_v1  ;;  %v985_v1 = vrot.slane %v1630_v62, 1 }
  0x69   : > { %894 = vmatpush1.bf16.msra.mxu1 %v1823_v3 }
  0x6a   : > { %853 = vmatpush1.bf16.msra.mxu0 %v1820_v4  ;;  %895 = vmatprep.subr.bf16.mxu1 %v1953_v2 }
  0x6b   : > { %854 = vmatprep.subr.bf16.mxu0 %v1826_v5 }
  0x6d   : > { %896 = vmatpush1.bf16.msra.mxu1 %v1827_v6 }
  0x6e   : > { %855 = vmatpush1.bf16.msra.mxu0 %v1824_v7  ;;  %897 = vmatprep.subr.bf16.mxu1 %v1953_v2 }
  0x6f   : > { %856 = vmatprep.subr.bf16.mxu0 %v1830_v8  ;;  %v228_v8 = vld [vmem:[#allocation2] sm:$0x77] }
  0x71   : > { %898 = vmatpush1.bf16.msra.mxu1 %v1831_v9 }
  0x72   : > { %857 = vmatpush1.bf16.msra.mxu0 %v1828_v10  ;;  %899 = vmatprep.subr.bf16.mxu1 %v1953_v2 }
  0x73   : > { %858 = vmatprep.subr.bf16.mxu0 %v1834_v11 }
  0x75   : > { %900 = vmatpush1.bf16.msra.mxu1 %v1835_v13 }
  0x76   : > { %859 = vmatpush1.bf16.msra.mxu0 %v1832_v14  ;;  %901 = vmatprep.subr.bf16.mxu1 %v1953_v2 }
  0x77   : > { %860 = vmatprep.subr.bf16.mxu0 %v1838_v15  ;;  %v229_v15 = vld [vmem:[#allocation2 + $0x8] sm:$0x7] }
  0x79   : > { %902 = vmatpush1.bf16.msra.mxu1 %v1839_v17 }
  0x7a   : > { %861 = vmatpush1.bf16.msra.mxu0 %v1836_v18  ;;  %903 = vmatprep.subr.bf16.mxu1 %v1953_v2 }
  0x7b   : > { %862 = vmatprep.subr.bf16.mxu0 %v1842_v19 }
  0x7d   : > { %904 = vmatpush1.bf16.msra.mxu1 %v1843_v23 }
  0x7e   : > { %863 = vmatpush1.bf16.msra.mxu0 %v1840_v24  ;;  %1224 = vmatprep.subr.bf16.mxu1 %v1953_v2 }
  0x7f   : > { %1183 = vmatprep.subr.bf16.mxu0 %v1848_v25 }
  0x80   : > { %914 = vmatmul.mubr.bf16.vlgmr.msra.gmra.mrb[0].mxu1 %v636_v27 }
  0x81   : > { %873 = vmatmul.mubr.bf16.vlgmr.msra.gmra.mrb[4].mxu0 %v636_v27  ;;  %1225 = vmatpush1.bf16.msra.mxu1 %v1849_v28  ;;  %v1280_v27 = vlaneseq (!%p1670_p10) }
  0x82   : > { %1184 = vmatpush1.bf16.msra.mxu0 %v1846_v29  ;;  %1226 = vmatprep.subr.bf16.mxu1 %v1953_v2  ;;  %v1278_v29 = vld [vmem:[%s2237_s2] sm:$0x7] (!%p1670_p10) }
  0x83   : > { %1185 = vmatprep.subr.bf16.mxu0 %v1852_v30  ;;  %1669 = vmatprep.mubr.msk.bf16.mxu1 %vm481_vm0, %v986_v31  ;;  %v1281_v28 = vshrl.u32 (!%p1670_p10), %v1280_v27, 7 }
  0x84   : > { %1668 = vmatprep.mubr.msk.bf16.mxu0 %vm481_vm0, %v986_v31 }
  0x85   : > { %1227 = vmatpush1.bf16.msra.mxu1 %v1853_v32  ;;  %v1282_v30 = vsub.s32 (!%p1670_p10), 0, %v1281_v28  ;;  %v1286_v31 = vsub.s32 (!%p1670_p10), 1, %v1281_v28  ;;  %v1290_v32 = vsub.s32 (!%p1670_p10), 2, %v1281_v28 }
  0x86   : > { %1186 = vmatpush1.bf16.msra.mxu0 %v1850_v33  ;;  %1228 = vmatprep.subr.bf16.mxu1 %v1953_v2  ;;  %v1954_v33 = vmov (!%p1670_p10), 1983009808  }
  0x87   : > { %1187 = vmatprep.subr.bf16.mxu0 %v1856_v34  ;;  %v1310_v34 = vunpack.c.l.s4 (!%p1670_p10), %v1954_v33 }
  0x89   : > { %1229 = vmatpush1.bf16.msra.mxu1 %v1857_v35 }
  0x8a   : > { %1188 = vmatpush1.bf16.msra.mxu0 %v1854_v36  ;;  %1230 = vmatprep.subr.bf16.mxu1 %v1953_v2  ;;  %v1283_v36 = vrot.slane (!%p1670_p10), %v1278_v29, %v1282_v30 }
  0x8b   : > { %1189 = vmatprep.subr.bf16.mxu0 %v1860_v37  ;;  %v1287_v37 = vrot.slane (!%p1670_p10), %v1278_v29, %v1286_v31 }
  0x8d   : > { %1231 = vmatpush1.bf16.msra.mxu1 %v1861_v38  ;;  %v1291_v38 = vrot.slane (!%p1670_p10), %v1278_v29, %v1290_v32 }
  0x8e   : > { %1190 = vmatpush1.bf16.msra.mxu0 %v1858_v39  ;;  %1232 = vmatprep.subr.bf16.mxu1 %v1953_v2 }
  0x8f   : > { %1191 = vmatprep.subr.bf16.mxu0 %v1864_v40  ;;  %v1293_v40 = vcombine.low (!%p1670_p10), %v1283_v36, %v1287_v37 }
  0x91   : > { %1233 = vmatpush1.bf16.msra.mxu1 %v1865_v41 }
  0x92   : > { %1192 = vmatpush1.bf16.msra.mxu0 %v1862_v42  ;;  %1234 = vmatprep.subr.bf16.mxu1 %v1953_v2  ;;  %v1311_v42 = vunpack.c.0.s8 (!%p1670_p10), %v1310_v34 }
  0x93   : > { %1193 = vmatprep.subr.bf16.mxu0 %v1868_v43 }
  0x95   : > { %1235 = vmatpush1.bf16.msra.mxu1 %v1869_v44 }
  0x96   : > { %1194 = vmatpush1.bf16.msra.mxu0 %v1866_v45  ;;  %1236 = vmatprep.subr.bf16.mxu1 %v1953_v2 }
  0x97   : > { %1195 = vmatprep.subr.bf16.mxu0 %v1872_v46 }
  0x99   : > { %1237 = vmatpush1.bf16.msra.mxu1 %v1873_v47  ;;  %v1314_v47 = vsub.s32 (!%p1670_p10), %v1311_v42, %v1281_v28 }
  0x9a   : > { %1196 = vmatpush1.bf16.msra.mxu0 %v1870_v48  ;;  %1238 = vmatprep.subr.bf16.mxu1 %v1953_v2 }
  0x9b   : > { %1197 = vmatprep.subr.bf16.mxu0 %v1876_v49 }
  0x9d   : > { %1239 = vmatpush1.bf16.msra.mxu1 %v1877_v50 }
  0x9e   : > { %1198 = vmatpush1.bf16.msra.mxu0 %v1874_v51  ;;  %1240 = vmatprep.subr.bf16.mxu1 %v1953_v2 }
  0x9f   : > { %1199 = vmatprep.subr.bf16.mxu0 %v1880_v52  ;;  %v1336_v52 = vld [vmem:[%s2028_s8] sm:$0x3f] (!%p1670_p10) }
  0xa1   : > { %1241 = vmatpush1.bf16.msra.mxu1 %v1881_v53 }
  0xa2   : > { %1200 = vmatpush1.bf16.msra.mxu0 %v1878_v54  ;;  %1242 = vmatprep.subr.bf16.mxu1 %v1953_v2 }
  0xa3   : > { %1201 = vmatprep.subr.bf16.mxu0 %v1884_v55 }
  0xa5   : > { %1243 = vmatpush1.bf16.msra.mxu1 %v1885_v56 }
  0xa6   : > { %1202 = vmatpush1.bf16.msra.mxu0 %v1882_v57  ;;  %1244 = vmatprep.subr.bf16.mxu1 %v1953_v2 }
  0xa7   : > { %1203 = vmatprep.subr.bf16.mxu0 %v1888_v58 }
  0xa9   : > { %1245 = vmatpush1.bf16.msra.mxu1 %v1889_v59 }
  0xaa   : > { %1204 = vmatpush1.bf16.msra.mxu0 %v1886_v60  ;;  %1246 = vmatprep.subr.bf16.mxu1 %v1953_v2 }
  0xab   : > { %1205 = vmatprep.subr.bf16.mxu0 %v1892_v61 }
  0xad   : > { %1247 = vmatpush1.bf16.msra.mxu1 %v1893_v63 }
  0xae   : > { %1206 = vmatpush1.bf16.msra.mxu0 %v1890_v0 }
  0xb0   : > { %1257 = vmatmul.mubr.bf16.vlgmr.msra.gmra.mrb[0].mxu1 %v985_v1 }
  0xb1   : > { %1216 = vmatmul.mubr.bf16.vlgmr.msra.gmra.mrb[8].mxu0 %v985_v1 }
 0x124   : > { %v519_v3 = vpop.f32.mrb[0].mxu0 }
 0x125   : > { %v521_v4 = vpop.f32.mrb[1].mxu0 }
 0x126   : > { %v568_v5 = vcombine.low %v519_v3, %v521_v4  ;;  %v523_v6 = vpop.f32.mrb[2].mxu0 }
 0x127   : > { %v524_v7 = vpop.f32.mrb[3].mxu0 }
 0x128   : > { %v570_v11 = vadd.f32 %v568_v5, %v228_v8 }
 0x154   : > { %v874_v9 = vpop.f32.mrb[4].mxu0 }
 0x155   : > { %v876_v10 = vpop.f32.mrb[5].mxu0 }
 0x156   : > { %v923_v12 = vcombine.low %v874_v9, %v876_v10  ;;  %v878_v13 = vpop.f32.mrb[6].mxu0 }
 0x157   : > { %v879_v14 = vpop.f32.mrb[7].mxu0 }
 0x158   : > { %v925_v2 = vadd.f32 %v923_v12, %v570_v11 }
 0x183   : > { %v1258_v16 = vpop.f32.mrb[0].mxu1 }
 0x184   : > { %v1676_v17 = vadd.f32 %v1258_v16, %v229_v15  ;;  %v1217_v18 = vpop.f32.mrb[8].mxu0  ;;  %v1260_v19 = vpop.f32.mrb[1].mxu1  ;;  %1275 = sbr.rel (%p1670_p10) target bundleno = 416 (0x1a0), region = 40 }
 0x185   : > { %v1219_v20 = vpop.f32.mrb[9].mxu0  ;;  %v1261_v21 = vpop.f32.mrb[2].mxu1 }
 0x186   : > { %1271 = vst [vmem:[#allocation2 + $0x8] sm:$0x7] %v1676_v17  ;;  %v1266_v22 = vcombine.low %v1217_v18, %v1219_v20  ;;  %v1221_v23 = vpop.f32.mrb[10].mxu0  ;;  %v1262_v24 = vpop.f32.mrb[3].mxu1 }
 0x187   : > { %v1222_v25 = vpop.f32.mrb[11].mxu0 }
 0x188   : > { %v1268_v26 = vadd.f32 %v1266_v22, %v925_v2 }
 0x18a   : > { %1270 = vst [vmem:[#allocation2] sm:$0x77] %v1268_v26 }
 0x18d   : > { %v1277_v35 = vld [vmem:[#allocation2 + $0x8] sm:$0x7] }
 0x18e   : > { %v1296_v41 = vadd.f32 %v1291_v38, %v1277_v35 }
 0x190   : > { %v1298_v44 = vmax.f32 %v1296_v41, 0.0 }
 0x191   : > { %v1276_v39 = vld [vmem:[#allocation2] sm:$0x77] }
 0x192   : > { %v1295_v43 = vadd.f32 %v1293_v40, %v1276_v39  ;;  %v1304_v46 = vpack.c.bf16 %v1298_v44, %v1298_v44 }
 0x194   : > { %v1297_v45 = vmax.f32 %v1295_v43, 0.0  ;;  %v1322_v50 = vrot.slane %v1304_v46, %v1314_v47 }
 0x196   : > { %v1300_v48 = vcombine.high %v1297_v45, %v1297_v45 }
 0x198   : > { %v1671_v49 = vpack.c.bf16 %v1300_v48, %v1297_v45 }
 0x19a   : > { %v1315_v51 = vrot.slane %v1671_v49, %v1314_v47 }
 0x19c   : > { %v1323_v53 = vcombine.low %v1315_v51, %v1322_v50 }
 0x19e   : > { %v1337_v54 = vsel %vm1335_vm11, %v1323_v53, %v1336_v52 }
 0x19f   : > { %1338 = vst [vmem:[%s2028_s8] sm:$0x3f] %v1337_v54 }
 0x1a0 PF: > { %s13_s18 = sadd.s32 1, %s1950_s18   ;;  %s2239_s12 = smov %s1938_s15 }
 0x1a1   : > { %p10_p11 = scmp.ge.s32.totalorder %s13_s18, 20   ;;  %s2240_s13 = smov %s1942_s16 }
 0x1a2   : > { %s2241_s14 = smov %s1946_s17  ;;  %s2242_s15 = smov %s2246_s19 }
 0x1a3   : > { %s2243_s16 = smov %s2250_s20  ;;  %s2244_s17 = smov %s2254_s21 }
 0x1a4   :  { %12 = sbr.rel (!%p10_p11) target bundleno = 4 (0x4), region = 73 }

// kernel: alexnet_fe_forward.12
= control target key start
LH: loop header
LB: loop body
LE: loop exit
PB: predicated region body
PF: predicated region fallthrough
CT: control target
= control target key end

     0   :  { %s2218_s12 = smov 0   ;;  %s2220_s13 = smov 0   ;;  %s2478_s0 = inlined_call_operand.vmem [shape: bf16[10,1,5,384], index: 0, kind: input, shape index: {}]   ;;  %s2479_s1 = inlined_call_operand.vmem [shape: bf16[9,384,256], index: 1, kind: input, shape index: {}]   ;;  %s2480_s2 = inlined_call_operand.vmem [shape: f32[1,256], index: 2, kind: input, shape index: {}]   ;;  %s2481_s3 = inlined_call_operand.vmem [shape: bf16[2,3,3,256], index: 3, kind: output, shape index: {}]  }
   0x1   :  { %s2222_s14 = smov 0   ;;  %s2224_s15 = smov 0  }
   0x2   :  { %s2226_s16 = smov 0   ;;  %s2228_s17 = smov 0  }
   0x3   :  { %s2230_s18 = smov 0  }
   0x4 LB: > { %s25_s19 = sadd.s32 1, %s2181_s15  ;;  %s28_s20 = sadd.s32 1, %s2185_s16  ;;  %s2193_s18 = sphi %s2230_s18, %s13_s18   ;;  %s2189_s17 = sphi %s2228_s17, %s2487_s17   ;;  %s2185_s16 = sphi %s2226_s16, %s2486_s16   ;;  %s2181_s15 = sphi %s2224_s15, %s2485_s15   ;;  %s2177_s14 = sphi %s2222_s14, %s2484_s14   ;;  %s2173_s13 = sphi %s2220_s13, %s2483_s13   ;;  %s2169_s12 = sphi %s2218_s12, %s2482_s12  }
   0x5   : > { %p26_p0 = scmp.ge.s32.totalorder %s25_s19, 3  ;;  %p1580_p1 = scmp.ge.s32.totalorder %s2193_s18, 1 }
   0x6   : > { %p170_p2 = scmp.lt.s32.totalorder %s2193_s18, 19  ;;  %s32_s21 = sadd.s32 1, %s2189_s17 }
   0x7   : > { %s2489_s19 = smov (%p26_p0, %s25_s19), 0  ;;  %s2491_s20 = smov (!%p26_p0, %s28_s20), %s2185_s16 }
   0x8   : > { %p171_p3 = pnand %p1580_p1, %p170_p2  ;;  %p30_p4 = scmp.ge.s32.totalorder %s2491_s20, 3 }
   0x9   : > { %s201_s22 = smul.u32 (!%p171_p3), 5, %s2177_s14  ;;  %p212_p6 = scmp.lt.s32.totalorder (!%p171_p3), %s2177_s14, 1 }
   0xa   : > { %s2493_s20 = smov (%p30_p4, %s2491_s20), 0  ;;  %s2495_s21 = smov (!%p30_p4, %s32_s21), %s2189_s17 }
   0xb   : > { %p34_p5 = scmp.ge.s32.totalorder %s2495_s21, 2  ;;  %174 = sbr.rel (%p171_p3) target bundleno = 431 (0x1af), region = 32 }
   0xc   : > { %s202_s23 = sadd.s32 (!%p171_p3), %s2173_s13, %s201_s22  ;;  %p214_p7 = scmp.lt.s32.totalorder (!%p171_p3), %s2173_s13, 2 }
   0xd   : > { %s2497_s21 = smov (%p34_p5, %s2495_s21), 0  ;;  %s203_s24 = sadd.s32 (!%p171_p3), %s2169_s12, %s202_s23 }
   0xe   : > { %p204_p8 = scmp.lt.s32.totalorder (!%p171_p3), %s203_s24, 9  ;;  %p1584_p9 = scmp.ne.s32.totalorder (!%p171_p3), %s2169_s12, 0 }
  0x12   : > { %s2499_s14 = smov (!%p212_p6, %s2177_s14), 1  ;;  %s2501_s24 = smov (!%p204_p8, %s203_s24), 9 }
  0x13   : > { %s2503_s13 = smov (!%p214_p7, %s2173_s13), 2  ;;  %s1853_s25 = smul.u32 12, %s2501_s24  ;;  %v2195_v0 = vmov (!%p1584_p9), 0.0  }
  0x14   : > { %s1582_s26 = sshll.u32 %s2503_s13, 1  ;;  %s1854_s27 = smul.u32 6, %s2499_s14  ;;  %226 = vst [vmem:[#allocation2] sm:$0x77] (!%p1584_p9), %v2195_v0 }
  0x15   : > { %s2266_s30 = scalar_lea.vmem %s2478_s0, %s1853_s25  ;;  %225 = sbr.rel (%p1584_p9) target bundleno = 28 (0x1c), region = 36 }
  0x16   : > { %s218_s4 = sadd.s32 %s1854_s27, %s1582_s26 }
  0x17   : > { %s1583_s5 = sshll.u32 %s218_s4, 1 }
  0x18   : > { %s2271_s8 = scalar_lea.vmem %s2481_s3, %s1583_s5 }
  0x1c PF: > { %s1842_s9 = smul.u32 1152, %s2169_s12  ;;  %v2276_v1 = vld [vmem:[%s2266_s30] sm:$0x33]  ;;  %v2196_v2 = vmov 0   ;;  %p1838_p10 = scmp.ne.s32.totalorder %s2169_s12, 2 }
  0x1d   : > { %606 = vmatprep.mubr.bf16.mxu0 %v2196_v2  ;;  %v1588_v3 = vcombine.high %v2276_v1, %v2276_v1  ;;  %v2317_v34 = vld [vmem:[%s2266_s30] sm:$0x66]  ;;  %v1968_v39 = vld [vmem:[%s2266_s30 + $0x8] ss:$0 sps:$4 sm:$0x33]   ;;  %vm1464_vm0 = vcmask (!%p1838_p10), 1041408  }
  0x1e   : > { %s2284_s13 = scalar_lea.vmem %s2479_s1, %s1842_s9  ;;  %v1788_v40 = vcombine.high %v2317_v34, %v2317_v34  ;;  %v2347_v62 = vld [vmem:[%s2266_s30] sm:$0x33]  ;;  %vm1465_vm1 = vsmask.f32 (!%p1838_p10), 1280  ;;  %vm1467_vm2 = vcmask (!%p1838_p10), 1043458  }
  0x1f   : > { %v1914_v4 = vld [vmem:[%s2284_s13 + $0x4] ss:$8 sps:$4 sm:$0xff]   ;;  %565 = vmatprep.mubr.bf16.mxu1 %v1588_v3  ;;  %v1918_v6 = vld [vmem:[%s2284_s13] ss:$8 sps:$4 sm:$0xff]   ;;  %v1920_v8 = vld [vmem:[%s2284_s13 + $0x14] ss:$8 sps:$4 sm:$0xff]  }
  0x20   : > { %v1916_v5 = vld [vmem:[%s2284_s13 + $0x104] ss:$8 sps:$4 sm:$0xff]   ;;  %533 = vmatprep.subr.bf16.mxu1 %v1914_v4  ;;  %v1919_v7 = vld [vmem:[%s2284_s13 + $0x100] ss:$8 sps:$4 sm:$0xff]   ;;  %v1922_v9 = vld [vmem:[%s2284_s13 + $0x114] ss:$8 sps:$4 sm:$0xff]  }
  0x21   : > { %574 = vmatprep.subr.bf16.mxu0 %v1916_v5  ;;  %534 = vmatpush1.bf16.msra.mxu1 %v1918_v6  ;;  %v1924_v10 = vld [vmem:[%s2284_s13 + $0x10] ss:$8 sps:$4 sm:$0xff]   ;;  %v1926_v12 = vld [vmem:[%s2284_s13 + $0x24] ss:$8 sps:$4 sm:$0xff]   ;;  %v1930_v14 = vld [vmem:[%s2284_s13 + $0x20] ss:$8 sps:$4 sm:$0xff]   ;;  %v1688_v5 = vcombine.high %v2347_v62, %v2347_v62 }
  0x22   : > { %575 = vmatpush1.bf16.msra.mxu0 %v1919_v7  ;;  %535 = vmatprep.subr.bf16.mxu1 %v1920_v8  ;;  %v1925_v11 = vld [vmem:[%s2284_s13 + $0x110] ss:$8 sps:$4 sm:$0xff]   ;;  %v1928_v13 = vld [vmem:[%s2284_s13 + $0x124] ss:$8 sps:$4 sm:$0xff]   ;;  %v1931_v15 = vld [vmem:[%s2284_s13 + $0x120] ss:$8 sps:$4 sm:$0xff]  }
  0x23   : > { %576 = vmatprep.subr.bf16.mxu0 %v1922_v9  ;;  %v1932_v16 = vld [vmem:[%s2284_s13 + $0x34] ss:$8 sps:$4 sm:$0xff]   ;;  %v1936_v18 = vld [vmem:[%s2284_s13 + $0x30] ss:$8 sps:$4 sm:$0xff]   ;;  %v1938_v20 = vld [vmem:[%s2284_s13 + $0x44] ss:$8 sps:$4 sm:$0xff]  }
  0x24   : > { %v1934_v17 = vld [vmem:[%s2284_s13 + $0x134] ss:$8 sps:$4 sm:$0xff]   ;;  %v1937_v19 = vld [vmem:[%s2284_s13 + $0x130] ss:$8 sps:$4 sm:$0xff]   ;;  %v1940_v21 = vld [vmem:[%s2284_s13 + $0x144] ss:$8 sps:$4 sm:$0xff]  }
  0x25   : > { %536 = vmatpush1.bf16.msra.mxu1 %v1924_v10  ;;  %v1942_v22 = vld [vmem:[%s2284_s13 + $0x40] ss:$8 sps:$4 sm:$0xff]   ;;  %v1944_v24 = vld [vmem:[%s2284_s13 + $0x54] ss:$8 sps:$4 sm:$0xff]   ;;  %v1948_v26 = vld [vmem:[%s2284_s13 + $0x50] ss:$8 sps:$4 sm:$0xff]  }
  0x26   : > { %577 = vmatpush1.bf16.msra.mxu0 %v1925_v11  ;;  %537 = vmatprep.subr.bf16.mxu1 %v1926_v12  ;;  %v1943_v23 = vld [vmem:[%s2284_s13 + $0x140] ss:$8 sps:$4 sm:$0xff]   ;;  %v1946_v25 = vld [vmem:[%s2284_s13 + $0x154] ss:$8 sps:$4 sm:$0xff]   ;;  %v1949_v27 = vld [vmem:[%s2284_s13 + $0x150] ss:$8 sps:$4 sm:$0xff]  }
  0x27   : > { %578 = vmatprep.subr.bf16.mxu0 %v1928_v13  ;;  %v1950_v28 = vld [vmem:[%s2284_s13 + $0x64] ss:$8 sps:$4 sm:$0xff]   ;;  %v1954_v30 = vld [vmem:[%s2284_s13 + $0x60] ss:$8 sps:$4 sm:$0xff]   ;;  %v1956_v32 = vld [vmem:[%s2284_s13 + $0x74] ss:$8 sps:$4 sm:$0xff]  }
  0x28   : > { %v1952_v29 = vld [vmem:[%s2284_s13 + $0x164] ss:$8 sps:$4 sm:$0xff]   ;;  %v1955_v31 = vld [vmem:[%s2284_s13 + $0x160] ss:$8 sps:$4 sm:$0xff]   ;;  %v1958_v33 = vld [vmem:[%s2284_s13 + $0x174] ss:$8 sps:$4 sm:$0xff]  }
  0x29   : > { %538 = vmatpush1.bf16.msra.mxu1 %v1930_v14  ;;  %v1960_v35 = vld [vmem:[%s2284_s13 + $0x70] ss:$8 sps:$4 sm:$0xff]   ;;  %v1962_v37 = vld [vmem:[%s2284_s13 + $0x84] ss:$8 sps:$4 sm:$0xff]   ;;  %v1964_v41 = vld [vmem:[%s2284_s13 + $0x300] ss:$8 sps:$4 sm:$0xff]  }
  0x2a   : > { %579 = vmatpush1.bf16.msra.mxu0 %v1931_v15  ;;  %539 = vmatprep.subr.bf16.mxu1 %v1932_v16  ;;  %v1961_v36 = vld [vmem:[%s2284_s13 + $0x170] ss:$8 sps:$4 sm:$0xff]   ;;  %v1966_v38 = vld [vmem:[%s2284_s13 + $0x304] ss:$8 sps:$4 sm:$0xff]   ;;  %v1967_v42 = vld [vmem:[%s2284_s13 + $0x80] ss:$8 sps:$4 sm:$0xff]  }
  0x2b   : > { %580 = vmatprep.subr.bf16.mxu0 %v1934_v17  ;;  %v1969_v43 = vld [vmem:[%s2284_s13 + $0x94] ss:$8 sps:$4 sm:$0xff]   ;;  %v1096_v45 = vrot.slane %v1788_v40, 1  ;;  %v1971_v46 = vld [vmem:[%s2284_s13 + $0x310] ss:$8 sps:$4 sm:$0xff]   ;;  %v692_v10 = vshll.u32 %v1688_v5, 16  ;;  %v1587_v17 = vcombine.low %v2276_v1, %v2276_v1  ;;  %vm1466_vm4 = vmand (!%p1838_p10), %vm1464_vm0, %vm1465_vm1 }
  0x2c   : > { %v1973_v44 = vld [vmem:[%s2284_s13 + $0x314] ss:$8 sps:$4 sm:$0xff]   ;;  %v1974_v47 = vld [vmem:[%s2284_s13 + $0x90] ss:$8 sps:$4 sm:$0xff]   ;;  %v1975_v48 = vld [vmem:[%s2284_s13 + $0xa4] ss:$8 sps:$4 sm:$0xff]  }
  0x2d   : > { %540 = vmatpush1.bf16.msra.mxu1 %v1936_v18  ;;  %v1979_v49 = vld [vmem:[%s2284_s13 + $0x324] ss:$8 sps:$4 sm:$0xff]   ;;  %v1977_v50 = vld [vmem:[%s2284_s13 + $0x320] ss:$8 sps:$4 sm:$0xff]   ;;  %v1981_v52 = vld [vmem:[%s2284_s13 + $0xb4] ss:$8 sps:$4 sm:$0xff]  }
  0x2e   : > { %581 = vmatpush1.bf16.msra.mxu0 %v1937_v19  ;;  %541 = vmatprep.subr.bf16.mxu1 %v1938_v20  ;;  %v1980_v51 = vld [vmem:[%s2284_s13 + $0xa0] ss:$8 sps:$4 sm:$0xff]   ;;  %v1985_v53 = vld [vmem:[%s2284_s13 + $0x334] ss:$8 sps:$4 sm:$0xff]   ;;  %v1983_v54 = vld [vmem:[%s2284_s13 + $0x330] ss:$8 sps:$4 sm:$0xff]  }
  0x2f   : > { %582 = vmatprep.subr.bf16.mxu0 %v1940_v21  ;;  %v1986_v55 = vld [vmem:[%s2284_s13 + $0xb0] ss:$8 sps:$4 sm:$0xff]   ;;  %v1987_v56 = vld [vmem:[%s2284_s13 + $0xc4] ss:$8 sps:$4 sm:$0xff]   ;;  %v1989_v58 = vld [vmem:[%s2284_s13 + $0x340] ss:$8 sps:$4 sm:$0xff]  }
  0x30   : > { %v1991_v57 = vld [vmem:[%s2284_s13 + $0x344] ss:$8 sps:$4 sm:$0xff]   ;;  %v1992_v59 = vld [vmem:[%s2284_s13 + $0xc0] ss:$8 sps:$4 sm:$0xff]   ;;  %v1993_v60 = vld [vmem:[%s2284_s13 + $0xd4] ss:$8 sps:$4 sm:$0xff]  }
  0x31   : > { %542 = vmatpush1.bf16.msra.mxu1 %v1942_v22  ;;  %v1997_v61 = vld [vmem:[%s2284_s13 + $0x354] ss:$8 sps:$4 sm:$0xff]   ;;  %v1995_v63 = vld [vmem:[%s2284_s13 + $0x350] ss:$8 sps:$4 sm:$0xff]   ;;  %v1999_v3 = vld [vmem:[%s2284_s13 + $0xe4] ss:$8 sps:$4 sm:$0xff]  }
  0x32   : > { %583 = vmatpush1.bf16.msra.mxu0 %v1943_v23  ;;  %543 = vmatprep.subr.bf16.mxu1 %v1944_v24  ;;  %v1998_v0 = vld [vmem:[%s2284_s13 + $0xd0] ss:$8 sps:$4 sm:$0xff]   ;;  %v2003_v4 = vld [vmem:[%s2284_s13 + $0x364] ss:$8 sps:$4 sm:$0xff]   ;;  %v2001_v6 = vld [vmem:[%s2284_s13 + $0x360] ss:$8 sps:$4 sm:$0xff]  }
  0x33   : > { %584 = vmatprep.subr.bf16.mxu0 %v1946_v25  ;;  %v2004_v7 = vld [vmem:[%s2284_s13 + $0xe0] ss:$8 sps:$4 sm:$0xff]   ;;  %v2005_v8 = vld [vmem:[%s2284_s13 + $0xf4] ss:$8 sps:$4 sm:$0xff]   ;;  %v2007_v11 = vld [vmem:[%s2284_s13 + $0x370] ss:$8 sps:$4 sm:$0xff]  }
  0x34   : > { %v2009_v9 = vld [vmem:[%s2284_s13 + $0x374] ss:$8 sps:$4 sm:$0xff]   ;;  %v2010_v12 = vld [vmem:[%s2284_s13 + $0xf0] ss:$8 sps:$4 sm:$0xff]   ;;  %v2015_v13 = vld [vmem:[%s2284_s13 + $0x184] ss:$8 sps:$4 sm:$0xff]  }
  0x35   : > { %544 = vmatpush1.bf16.msra.mxu1 %v1948_v26  ;;  %v2018_v14 = vld [vmem:[%s2284_s13 + $0x384] ss:$8 sps:$4 sm:$0xff]   ;;  %v690_v15 = vshrl.u32 %v1688_v5, 16  ;;  %v694_v16 = vrot.slane %v692_v10, 1  ;;  %v2013_v18 = vld [vmem:[%s2284_s13 + $0x180] ss:$8 sps:$4 sm:$0xff]  }
  0x36   : > { %585 = vmatpush1.bf16.msra.mxu0 %v1949_v27  ;;  %545 = vmatprep.subr.bf16.mxu1 %v1950_v28  ;;  %v2016_v19 = vld [vmem:[%s2284_s13 + $0x380] ss:$8 sps:$4 sm:$0xff]   ;;  %v2021_v20 = vld [vmem:[%s2284_s13 + $0x194] ss:$8 sps:$4 sm:$0xff]   ;;  %v2019_v23 = vld [vmem:[%s2284_s13 + $0x190] ss:$8 sps:$4 sm:$0xff]  }
  0x37   : > { %586 = vmatprep.subr.bf16.mxu0 %v1952_v29  ;;  %v2024_v21 = vld [vmem:[%s2284_s13 + $0x394] ss:$8 sps:$4 sm:$0xff]   ;;  %v695_v22 = vor.u32 %v694_v16, %v690_v15  ;;  %v2022_v24 = vld [vmem:[%s2284_s13 + $0x390] ss:$8 sps:$4 sm:$0xff]   ;;  %v2027_v1 = vld [vmem:[%s2284_s13 + $0x1a4] ss:$8 sps:$4 sm:$0xff]  }
  0x38   : > { %v2030_v25 = vld [vmem:[%s2284_s13 + $0x3a4] ss:$8 sps:$4 sm:$0xff]   ;;  %v2025_v26 = vld [vmem:[%s2284_s13 + $0x1a0] ss:$8 sps:$4 sm:$0xff]   ;;  %v2033_v28 = vld [vmem:[%s2284_s13 + $0x1b4] ss:$8 sps:$4 sm:$0xff]  }
  0x39   : > { %546 = vmatpush1.bf16.msra.mxu1 %v1954_v30  ;;  %v2028_v27 = vld [vmem:[%s2284_s13 + $0x3a0] ss:$8 sps:$4 sm:$0xff]   ;;  %v2036_v29 = vld [vmem:[%s2284_s13 + $0x3b4] ss:$8 sps:$4 sm:$0xff]   ;;  %v2031_v30 = vld [vmem:[%s2284_s13 + $0x1b0] ss:$8 sps:$4 sm:$0xff]  }
  0x3a   : > { %587 = vmatpush1.bf16.msra.mxu0 %v1955_v31  ;;  %547 = vmatprep.subr.bf16.mxu1 %v1956_v32  ;;  %v2034_v31 = vld [vmem:[%s2284_s13 + $0x3b0] ss:$8 sps:$4 sm:$0xff]   ;;  %v2039_v32 = vld [vmem:[%s2284_s13 + $0x1c4] ss:$8 sps:$4 sm:$0xff]   ;;  %v2098_v10 = vld [vmem:[%s2284_s13 + $0x454] ss:$8 sps:$4 sm:$0xff]  }
  0x3b   : > { %588 = vmatprep.subr.bf16.mxu0 %v1958_v33  ;;  %v2042_v33 = vld [vmem:[%s2284_s13 + $0x3c4] ss:$8 sps:$4 sm:$0xff]   ;;  %v2046_v40 = vld [vmem:[%s2284_s13 + $0x3d0] ss:$8 sps:$4 sm:$0xff]   ;;  %vm1468_vm3 = vsmask.f32 (!%p1838_p10), 3328 }
  0x3c   : > { %v2089_v5 = vld [vmem:[%s2284_s13 + $0x244] ss:$8 sps:$4 sm:$0xff]   ;;  %vm1469_vm5 = vmand (!%p1838_p10), %vm1467_vm2, %vm1468_vm3 }
  0x3d   : > { %548 = vmatpush1.bf16.msra.mxu1 %v1960_v35  ;;  %v2037_v35 = vld [vmem:[%s2284_s13 + $0x1c0] ss:$8 sps:$4 sm:$0xff]   ;;  %v2104_v15 = vld [vmem:[%s2284_s13 + $0x464] ss:$8 sps:$4 sm:$0xff]   ;;  %vm1470_vm6 = vmor (!%p1838_p10), %vm1469_vm5, %vm1466_vm4 }
  0x3e   : > { %589 = vmatpush1.bf16.msra.mxu0 %v1961_v36  ;;  %549 = vmatprep.subr.bf16.mxu1 %v1962_v37  ;;  %v2040_v36 = vld [vmem:[%s2284_s13 + $0x3c0] ss:$8 sps:$4 sm:$0xff]   ;;  %v2045_v37 = vld [vmem:[%s2284_s13 + $0x1d4] ss:$8 sps:$4 sm:$0xff]  }
  0x3f   : > { %1341 = vmatprep.subr.bf16.mxu0 %v1966_v38  ;;  %v2048_v38 = vld [vmem:[%s2284_s13 + $0x3d4] ss:$8 sps:$4 sm:$0xff]  }
  0x41   : > { %607 = vmatmul.mubr.bf16.vlgmr.msra.gmra.mrb[0].mxu0 %v1968_v39  ;;  %550 = vmatpush1.bf16.msra.mxu1 %v1967_v42  ;;  %v2043_v39 = vld [vmem:[%s2284_s13 + $0x1d0] ss:$8 sps:$4 sm:$0xff]   ;;  %v2054_v42 = vld [vmem:[%s2284_s13 + $0x3e4] ss:$8 sps:$4 sm:$0xff]  }
  0x42   : > { %1342 = vmatpush1.bf16.msra.mxu0 %v1964_v41  ;;  %551 = vmatprep.subr.bf16.mxu1 %v1969_v43  ;;  %v2051_v41 = vld [vmem:[%s2284_s13 + $0x1e4] ss:$8 sps:$4 sm:$0xff]   ;;  %v2049_v43 = vld [vmem:[%s2284_s13 + $0x1e0] ss:$8 sps:$4 sm:$0xff]  }
  0x43   : > { %1343 = vmatprep.subr.bf16.mxu0 %v1973_v44  ;;  %1373 = vmatprep.mubr.bf16.mxu0 %v1096_v45  ;;  %v2052_v44 = vld [vmem:[%s2284_s13 + $0x3e0] ss:$8 sps:$4 sm:$0xff]   ;;  %v2057_v45 = vld [vmem:[%s2284_s13 + $0x1f4] ss:$8 sps:$4 sm:$0xff]  }
  0x45   : > { %552 = vmatpush1.bf16.msra.mxu1 %v1974_v47  ;;  %v2055_v47 = vld [vmem:[%s2284_s13 + $0x1f0] ss:$8 sps:$4 sm:$0xff]  }
  0x46   : > { %1344 = vmatpush1.bf16.msra.mxu0 %v1971_v46  ;;  %553 = vmatprep.subr.bf16.mxu1 %v1975_v48  ;;  %v2060_v46 = vld [vmem:[%s2284_s13 + $0x3f4] ss:$8 sps:$4 sm:$0xff]   ;;  %v1787_v48 = vcombine.low %v2317_v34, %v2317_v34 }
  0x47   : > { %1345 = vmatprep.subr.bf16.mxu0 %v1979_v49  ;;  %v2058_v49 = vld [vmem:[%s2284_s13 + $0x3f0] ss:$8 sps:$4 sm:$0xff]   ;;  %v2071_v34 = vld [vmem:[%s2284_s13 + $0x214] ss:$8 sps:$4 sm:$0xff]  }
  0x49   : > { %554 = vmatpush1.bf16.msra.mxu1 %v1980_v51  ;;  %v2068_v51 = vld [vmem:[%s2284_s13 + $0x404] ss:$8 sps:$4 sm:$0xff]  }
  0x4a   : > { %1346 = vmatpush1.bf16.msra.mxu0 %v1977_v50  ;;  %555 = vmatprep.subr.bf16.mxu1 %v1981_v52  ;;  %v2063_v50 = vld [vmem:[%s2284_s13 + $0x204] ss:$8 sps:$4 sm:$0xff]   ;;  %v1095_v52 = vrot.slane %v1787_v48, 1 }
  0x4b   : > { %1347 = vmatprep.subr.bf16.mxu0 %v1985_v53  ;;  %v2061_v53 = vld [vmem:[%s2284_s13 + $0x200] ss:$8 sps:$4 sm:$0xff]  }
  0x4d   : > { %556 = vmatpush1.bf16.msra.mxu1 %v1986_v55  ;;  %v2074_v55 = vld [vmem:[%s2284_s13 + $0x414] ss:$8 sps:$4 sm:$0xff]  }
  0x4e   : > { %1348 = vmatpush1.bf16.msra.mxu0 %v1983_v54  ;;  %557 = vmatprep.subr.bf16.mxu1 %v1987_v56  ;;  %v2066_v54 = vld [vmem:[%s2284_s13 + $0x400] ss:$8 sps:$4 sm:$0xff]   ;;  %v2069_v56 = vld [vmem:[%s2284_s13 + $0x210] ss:$8 sps:$4 sm:$0xff]  }
  0x4f   : > { %1349 = vmatprep.subr.bf16.mxu0 %v1991_v57  ;;  %v2072_v57 = vld [vmem:[%s2284_s13 + $0x410] ss:$8 sps:$4 sm:$0xff]  }
  0x51   : > { %558 = vmatpush1.bf16.msra.mxu1 %v1992_v59  ;;  %v2080_v59 = vld [vmem:[%s2284_s13 + $0x424] ss:$8 sps:$4 sm:$0xff]  }
  0x52   : > { %1350 = vmatpush1.bf16.msra.mxu0 %v1989_v58  ;;  %559 = vmatprep.subr.bf16.mxu1 %v1993_v60  ;;  %v2077_v58 = vld [vmem:[%s2284_s13 + $0x224] ss:$8 sps:$4 sm:$0xff]   ;;  %v2075_v60 = vld [vmem:[%s2284_s13 + $0x220] ss:$8 sps:$4 sm:$0xff]  }
  0x53   : > { %1351 = vmatprep.subr.bf16.mxu0 %v1997_v61  ;;  %v2078_v61 = vld [vmem:[%s2284_s13 + $0x420] ss:$8 sps:$4 sm:$0xff]  }
  0x55   : > { %560 = vmatpush1.bf16.msra.mxu1 %v1998_v0  ;;  %v2086_v0 = vld [vmem:[%s2284_s13 + $0x434] ss:$8 sps:$4 sm:$0xff]  }
  0x56   : > { %1352 = vmatpush1.bf16.msra.mxu0 %v1995_v63  ;;  %561 = vmatprep.subr.bf16.mxu1 %v1999_v3  ;;  %v2083_v63 = vld [vmem:[%s2284_s13 + $0x234] ss:$8 sps:$4 sm:$0xff]   ;;  %v2081_v3 = vld [vmem:[%s2284_s13 + $0x230] ss:$8 sps:$4 sm:$0xff]  }
  0x57   : > { %1353 = vmatprep.subr.bf16.mxu0 %v2003_v4  ;;  %v2084_v4 = vld [vmem:[%s2284_s13 + $0x430] ss:$8 sps:$4 sm:$0xff]  }
  0x59   : > { %562 = vmatpush1.bf16.msra.mxu1 %v2004_v7  ;;  %v2087_v7 = vld [vmem:[%s2284_s13 + $0x240] ss:$8 sps:$4 sm:$0xff]  }
  0x5a   : > { %1354 = vmatpush1.bf16.msra.mxu0 %v2001_v6  ;;  %563 = vmatprep.subr.bf16.mxu1 %v2005_v8  ;;  %v2092_v6 = vld [vmem:[%s2284_s13 + $0x444] ss:$8 sps:$4 sm:$0xff]   ;;  %v2090_v8 = vld [vmem:[%s2284_s13 + $0x440] ss:$8 sps:$4 sm:$0xff]  }
  0x5b   : > { %1355 = vmatprep.subr.bf16.mxu0 %v2009_v9  ;;  %v2095_v9 = vld [vmem:[%s2284_s13 + $0x254] ss:$8 sps:$4 sm:$0xff]  }
  0x5d   : > { %564 = vmatpush1.bf16.msra.mxu1 %v2010_v12  ;;  %v2093_v12 = vld [vmem:[%s2284_s13 + $0x250] ss:$8 sps:$4 sm:$0xff]  }
  0x5e   : > { %1356 = vmatpush1.bf16.msra.mxu0 %v2007_v11  ;;  %946 = vmatprep.subr.bf16.mxu1 %v2015_v13  ;;  %v1687_v11 = vcombine.low %v2347_v62, %v2347_v62  ;;  %v2096_v13 = vld [vmem:[%s2284_s13 + $0x450] ss:$8 sps:$4 sm:$0xff]   ;;  %v2107_v62 = vld [vmem:[%s2284_s13 + $0x274] ss:$8 sps:$4 sm:$0xff]  }
  0x5f   : > { %1357 = vmatprep.subr.bf16.mxu0 %v2018_v14  ;;  %v2101_v14 = vld [vmem:[%s2284_s13 + $0x264] ss:$8 sps:$4 sm:$0xff]  }
  0x60   : > { %566 = vmatmul.mubr.bf16.vlgmr.msra.gmra.mrb[0].mxu1 %v1587_v17  ;;  %v685_v16 = vshll.u32 %v1687_v11, 16  ;;  %v2099_v17 = vld [vmem:[%s2284_s13 + $0x260] ss:$8 sps:$4 sm:$0xff]  }
  0x61   : > { %947 = vmatpush1.bf16.msra.mxu1 %v2013_v18  ;;  %978 = vmatprep.mubr.bf16.mxu1 %v695_v22  ;;  %v2102_v18 = vld [vmem:[%s2284_s13 + $0x460] ss:$8 sps:$4 sm:$0xff]  }
  0x62   : > { %1358 = vmatpush1.bf16.msra.mxu0 %v2016_v19  ;;  %948 = vmatprep.subr.bf16.mxu1 %v2021_v20  ;;  %v2110_v19 = vld [vmem:[%s2284_s13 + $0x474] ss:$8 sps:$4 sm:$0xff]   ;;  %v2116_v20 = vld [vmem:[%s2266_s30 + $0x8] ss:$0 sps:$4 sm:$0x66]   ;;  %v687_v22 = vrot.slane %v685_v16, 1 }
  0x63   : > { %1359 = vmatprep.subr.bf16.mxu0 %v2024_v21  ;;  %v683_v21 = vshrl.u32 %v1687_v11, 16 }
  0x65   : > { %949 = vmatpush1.bf16.msra.mxu1 %v2019_v23  ;;  %v2105_v23 = vld [vmem:[%s2284_s13 + $0x270] ss:$8 sps:$4 sm:$0xff]  }
  0x66   : > { %1360 = vmatpush1.bf16.msra.mxu0 %v2022_v24  ;;  %950 = vmatprep.subr.bf16.mxu1 %v2027_v1  ;;  %v2108_v24 = vld [vmem:[%s2284_s13 + $0x470] ss:$8 sps:$4 sm:$0xff]   ;;  %v2115_v1 = vld [vmem:[%s2284_s13 + $0x284] ss:$8 sps:$4 sm:$0xff]  }
  0x67   : > { %1361 = vmatprep.subr.bf16.mxu0 %v2030_v25  ;;  %v1097_v25 = vrot.slane %v2116_v20, 1 }
  0x69   : > { %951 = vmatpush1.bf16.msra.mxu1 %v2025_v26  ;;  %v688_v26 = vor.u32 %v687_v22, %v683_v21 }
  0x6a   : > { %1362 = vmatpush1.bf16.msra.mxu0 %v2028_v27  ;;  %952 = vmatprep.subr.bf16.mxu1 %v2033_v28  ;;  %v2113_v27 = vld [vmem:[%s2284_s13 + $0x280] ss:$8 sps:$4 sm:$0xff]   ;;  %v2119_v28 = vld [vmem:[%s2284_s13 + $0x294] ss:$8 sps:$4 sm:$0xff]  }
  0x6b   : > { %1363 = vmatprep.subr.bf16.mxu0 %v2036_v29  ;;  %v2117_v29 = vld [vmem:[%s2284_s13 + $0x290] ss:$8 sps:$4 sm:$0xff]  }
  0x6d   : > { %953 = vmatpush1.bf16.msra.mxu1 %v2031_v30  ;;  %v2122_v30 = vld [vmem:[%s2284_s13 + $0x2a4] ss:$8 sps:$4 sm:$0xff]  }
  0x6e   : > { %1364 = vmatpush1.bf16.msra.mxu0 %v2034_v31  ;;  %954 = vmatprep.subr.bf16.mxu1 %v2039_v32  ;;  %v2120_v31 = vld [vmem:[%s2284_s13 + $0x2a0] ss:$8 sps:$4 sm:$0xff]   ;;  %v2125_v32 = vld [vmem:[%s2284_s13 + $0x2b4] ss:$8 sps:$4 sm:$0xff]  }
  0x6f   : > { %1365 = vmatprep.subr.bf16.mxu0 %v2042_v33  ;;  %v2123_v33 = vld [vmem:[%s2284_s13 + $0x2b0] ss:$8 sps:$4 sm:$0xff]  }
  0x71   : > { %955 = vmatpush1.bf16.msra.mxu1 %v2037_v35  ;;  %v2128_v35 = vld [vmem:[%s2284_s13 + $0x2c4] ss:$8 sps:$4 sm:$0xff]  }
  0x72   : > { %1366 = vmatpush1.bf16.msra.mxu0 %v2040_v36  ;;  %956 = vmatprep.subr.bf16.mxu1 %v2045_v37  ;;  %v2126_v36 = vld [vmem:[%s2284_s13 + $0x2c0] ss:$8 sps:$4 sm:$0xff]   ;;  %v2131_v37 = vld [vmem:[%s2284_s13 + $0x2d4] ss:$8 sps:$4 sm:$0xff]  }
  0x73   : > { %1367 = vmatprep.subr.bf16.mxu0 %v2048_v38  ;;  %v2129_v38 = vld [vmem:[%s2284_s13 + $0x2d0] ss:$8 sps:$4 sm:$0xff]  }
  0x75   : > { %957 = vmatpush1.bf16.msra.mxu1 %v2043_v39  ;;  %v2134_v39 = vld [vmem:[%s2284_s13 + $0x2e4] ss:$8 sps:$4 sm:$0xff]  }
  0x76   : > { %1368 = vmatpush1.bf16.msra.mxu0 %v2046_v40  ;;  %958 = vmatprep.subr.bf16.mxu1 %v2051_v41  ;;  %v2132_v41 = vld [vmem:[%s2284_s13 + $0x2e0] ss:$8 sps:$4 sm:$0xff]  }
  0x77   : > { %1369 = vmatprep.subr.bf16.mxu0 %v2054_v42  ;;  %v2137_v42 = vld [vmem:[%s2284_s13 + $0x2f4] ss:$8 sps:$4 sm:$0xff]  }
  0x79   : > { %959 = vmatpush1.bf16.msra.mxu1 %v2049_v43 }
  0x7a   : > { %1370 = vmatpush1.bf16.msra.mxu0 %v2052_v44  ;;  %960 = vmatprep.subr.bf16.mxu1 %v2057_v45  ;;  %v2135_v45 = vld [vmem:[%s2284_s13 + $0x2f0] ss:$8 sps:$4 sm:$0xff]  }
  0x7b   : > { %1371 = vmatprep.subr.bf16.mxu0 %v2060_v46 }
  0x7d   : > { %961 = vmatpush1.bf16.msra.mxu1 %v2055_v47 }
  0x7e   : > { %1372 = vmatpush1.bf16.msra.mxu0 %v2058_v49  ;;  %962 = vmatprep.subr.bf16.mxu1 %v2063_v50 }
  0x7f   : > { %1382 = vmatprep.subr.bf16.mxu0 %v2068_v51 }
  0x81   : > { %1374 = vmatmul.mubr.bf16.vlgmr.msra.gmra.mrb[4].mxu0 %v1095_v52  ;;  %963 = vmatpush1.bf16.msra.mxu1 %v2061_v53 }
  0x82   : > { %1383 = vmatpush1.bf16.msra.mxu0 %v2066_v54  ;;  %964 = vmatprep.subr.bf16.mxu1 %v2071_v34 }
  0x83   : > { %1384 = vmatprep.subr.bf16.mxu0 %v2074_v55  ;;  %1414 = vmatprep.mubr.bf16.mxu0 %v2196_v2 }
  0x85   : > { %965 = vmatpush1.bf16.msra.mxu1 %v2069_v56 }
  0x86   : > { %1385 = vmatpush1.bf16.msra.mxu0 %v2072_v57  ;;  %966 = vmatprep.subr.bf16.mxu1 %v2077_v58 }
  0x87   : > { %1386 = vmatprep.subr.bf16.mxu0 %v2080_v59 }
  0x89   : > { %967 = vmatpush1.bf16.msra.mxu1 %v2075_v60 }
  0x8a   : > { %1387 = vmatpush1.bf16.msra.mxu0 %v2078_v61  ;;  %968 = vmatprep.subr.bf16.mxu1 %v2083_v63  ;;  %v227_v63 = vld [vmem:[#allocation2] sm:$0x77] }
  0x8b   : > { %1388 = vmatprep.subr.bf16.mxu0 %v2086_v0 }
  0x8d   : > { %969 = vmatpush1.bf16.msra.mxu1 %v2081_v3 }
  0x8e   : > { %1389 = vmatpush1.bf16.msra.mxu0 %v2084_v4  ;;  %970 = vmatprep.subr.bf16.mxu1 %v2089_v5 }
  0x8f   : > { %1390 = vmatprep.subr.bf16.mxu0 %v2092_v6 }
  0x91   : > { %971 = vmatpush1.bf16.msra.mxu1 %v2087_v7 }
  0x92   : > { %1391 = vmatpush1.bf16.msra.mxu0 %v2090_v8  ;;  %972 = vmatprep.subr.bf16.mxu1 %v2095_v9 }
  0x93   : > { %1392 = vmatprep.subr.bf16.mxu0 %v2098_v10  ;;  %v1436_v10 = vlaneseq (!%p1838_p10) }
  0x95   : > { %973 = vmatpush1.bf16.msra.mxu1 %v2093_v12  ;;  %v1437_v11 = vshrl.u32 (!%p1838_p10), %v1436_v10, 7  ;;  %v1434_v12 = vld [vmem:[%s2480_s2] sm:$0x3] (!%p1838_p10) }
  0x96   : > { %1393 = vmatpush1.bf16.msra.mxu0 %v2096_v13  ;;  %974 = vmatprep.subr.bf16.mxu1 %v2101_v14 }
  0x97   : > { %1394 = vmatprep.subr.bf16.mxu0 %v2104_v15  ;;  %v1438_v13 = vsub.s32 (!%p1838_p10), 0, %v1437_v11  ;;  %v1442_v14 = vsub.s32 (!%p1838_p10), 1, %v1437_v11 }
  0x99   : > { %975 = vmatpush1.bf16.msra.mxu1 %v2099_v17  ;;  %v1439_v15 = vrot.slane (!%p1838_p10), %v1434_v12, %v1438_v13  ;;  %v1443_v16 = vrot.slane (!%p1838_p10), %v1434_v12, %v1442_v14  ;;  %v2197_v17 = vmov (!%p1838_p10), 1983009808  }
  0x9a   : > { %1395 = vmatpush1.bf16.msra.mxu0 %v2102_v18  ;;  %976 = vmatprep.subr.bf16.mxu1 %v2107_v62  ;;  %v1457_v18 = vunpack.c.l.s4 (!%p1838_p10), %v2197_v17 }
  0x9b   : > { %1396 = vmatprep.subr.bf16.mxu0 %v2110_v19  ;;  %v1444_v19 = vcombine.low (!%p1838_p10), %v1439_v15, %v1443_v16 }
  0x9c   : > { %v1458_v21 = vunpack.c.0.s8 (!%p1838_p10), %v1457_v18 }
  0x9d   : > { %977 = vmatpush1.bf16.msra.mxu1 %v2105_v23 }
  0x9e   : > { %1397 = vmatpush1.bf16.msra.mxu0 %v2108_v24  ;;  %987 = vmatprep.subr.bf16.mxu1 %v2115_v1  ;;  %v1461_v24 = vsub.s32 (!%p1838_p10), %v1458_v21, %v1437_v11 }
  0xa0   : > { %979 = vmatmul.mubr.bf16.vlgmr.msra.gmra.mrb[4].mxu1 %v688_v26 }
  0xa1   : > { %1415 = vmatmul.mubr.bf16.vlgmr.msra.gmra.mrb[4].mxu0 %v1097_v25  ;;  %988 = vmatpush1.bf16.msra.mxu1 %v2113_v27  ;;  %v1471_v25 = vld [vmem:[%s2271_s8] sm:$0xf] (!%p1838_p10) }
  0xa2   : > { %1019 = vmatprep.mubr.bf16.mxu1 %v2196_v2  ;;  %989 = vmatprep.subr.bf16.mxu1 %v2119_v28  ;;  %v2138_v2 = vld [vmem:[%s2266_s30 + $0x8] ss:$0 sps:$4 sm:$0x33]  }
  0xa3   : > { %v699_v40 = vshll.u32 %v2138_v2, 16  ;;  %v697_v43 = vshrl.u32 %v2138_v2, 16 }
  0xa5   : > { %990 = vmatpush1.bf16.msra.mxu1 %v2117_v29  ;;  %v701_v44 = vrot.slane %v699_v40, 1 }
  0xa6   : > { %991 = vmatprep.subr.bf16.mxu1 %v2122_v30 }
  0xa7   : > { %v702_v46 = vor.u32 %v701_v44, %v697_v43 }
  0xa9   : > { %992 = vmatpush1.bf16.msra.mxu1 %v2120_v31 }
  0xaa   : > { %993 = vmatprep.subr.bf16.mxu1 %v2125_v32 }
  0xad   : > { %994 = vmatpush1.bf16.msra.mxu1 %v2123_v33 }
  0xae   : > { %995 = vmatprep.subr.bf16.mxu1 %v2128_v35 }
  0xb1   : > { %996 = vmatpush1.bf16.msra.mxu1 %v2126_v36 }
  0xb2   : > { %997 = vmatprep.subr.bf16.mxu1 %v2131_v37 }
  0xb5   : > { %998 = vmatpush1.bf16.msra.mxu1 %v2129_v38 }
  0xb6   : > { %999 = vmatprep.subr.bf16.mxu1 %v2134_v39 }
  0xb9   : > { %1000 = vmatpush1.bf16.msra.mxu1 %v2132_v41 }
  0xba   : > { %1001 = vmatprep.subr.bf16.mxu1 %v2137_v42 }
  0xbd   : > { %1002 = vmatpush1.bf16.msra.mxu1 %v2135_v45 }
  0xc0   : > { %1020 = vmatmul.mubr.bf16.vlgmr.msra.gmra.mrb[4].mxu1 %v702_v46 }
 0x114   : > { %v608_v47 = vpop.f32.mrb[0].mxu0 }
 0x115   : > { %v610_v48 = vpop.f32.mrb[1].mxu0 }
 0x116   : > { %v612_v49 = vpop.f32.mrb[2].mxu0 }
 0x117   : > { %v613_v50 = vpop.f32.mrb[3].mxu0 }
 0x133   : > { %v567_v51 = vpop.f32.mrb[0].mxu1 }
 0x134   : > { %v609_v52 = vadd.f32 %v608_v47, %v567_v51  ;;  %v569_v53 = vpop.f32.mrb[1].mxu1 }
 0x135   : > { %v611_v54 = vadd.f32 %v610_v48, %v569_v53  ;;  %v571_v34 = vpop.f32.mrb[2].mxu1 }
 0x136   : > { %v572_v55 = vpop.f32.mrb[3].mxu1 }
 0x137   : > { %v617_v56 = vcombine.low %v609_v52, %v611_v54 }
 0x139   : > { %v619_v4 = vadd.f32 %v617_v56, %v227_v63 }
 0x174   : > { %v1416_v57 = vpop.f32.mrb[4].mxu0 }
 0x175   : > { %v1418_v58 = vpop.f32.mrb[5].mxu0 }
 0x176   : > { %v1425_v59 = vcombine.low %v1416_v57, %v1418_v58  ;;  %v1420_v60 = vpop.f32.mrb[6].mxu0 }
 0x177   : > { %v1421_v61 = vpop.f32.mrb[7].mxu0 }
 0x193   : > { %v1021_v0 = vpop.f32.mrb[4].mxu1 }
 0x194   : > { %v1023_v3 = vpop.f32.mrb[5].mxu1 }
 0x195   : > { %v1030_v5 = vcombine.low %v1021_v0, %v1023_v3  ;;  %v1025_v6 = vpop.f32.mrb[6].mxu1  ;;  %1432 = sbr.rel (%p1838_p10) target bundleno = 431 (0x1af), region = 40 }
 0x196   : > { %v1026_v7 = vpop.f32.mrb[7].mxu1 }
 0x197   : > { %v1032_v8 = vadd.f32 %v1030_v5, %v619_v4 }
 0x199   : > { %v1427_v9 = vadd.f32 %v1425_v59, %v1032_v8 }
 0x19b   : > { %1428 = vst [vmem:[#allocation2] sm:$0x77] %v1427_v9 }
 0x1a2   : > { %v1433_v62 = vld [vmem:[#allocation2] sm:$0x77] }
 0x1a3   : > { %v1446_v20 = vadd.f32 %v1444_v19, %v1433_v62 }
 0x1a5   : > { %v1447_v22 = vmax.f32 %v1446_v20, 0.0 }
 0x1a7   : > { %v1449_v23 = vcombine.high %v1447_v22, %v1447_v22 }
 0x1a9   : > { %v1839_v1 = vpack.c.bf16 %v1449_v23, %v1447_v22 }
 0x1ab   : > { %v1462_v26 = vrot.slane %v1839_v1, %v1461_v24 }
 0x1ad   : > { %v1472_v27 = vsel %vm1470_vm6, %v1462_v26, %v1471_v25 }
 0x1ae   : > { %1473 = vst [vmem:[%s2271_s8] sm:$0xf] %v1472_v27 }
 0x1af PF: > { %s13_s18 = sadd.s32 1, %s2193_s18   ;;  %s2482_s12 = smov %s2181_s15 }
 0x1b0   : > { %p10_p11 = scmp.ge.s32.totalorder %s13_s18, 20   ;;  %s2483_s13 = smov %s2185_s16 }
 0x1b1   : > { %s2484_s14 = smov %s2189_s17  ;;  %s2485_s15 = smov %s2489_s19 }
 0x1b2   : > { %s2486_s16 = smov %s2493_s20  ;;  %s2487_s17 = smov %s2497_s21 }
 0x1b3   :  { %12 = sbr.rel (!%p10_p11) target bundleno = 4 (0x4), region = 73 }

// kernel: alexnet_fe_forward.13
= control target key start
LH: loop header
LB: loop body
LE: loop exit
PB: predicated region body
PF: predicated region fallthrough
CT: control target
= control target key end

     0   :  { %s1585_s12 = smov 0   ;;  %s1587_s13 = smov 0   ;;  %s1790_s0 = inlined_call_operand.vmem [shape: bf16[10,1,5,256], index: 0, kind: input, shape index: {}]   ;;  %s1791_s1 = inlined_call_operand.vmem [shape: bf16[9,256,256], index: 1, kind: input, shape index: {}]   ;;  %s1792_s2 = inlined_call_operand.vmem [shape: f32[1,256], index: 2, kind: input, shape index: {}]   ;;  %s1793_s3 = inlined_call_operand.vmem [shape: f32[2,3,3,256], index: 3, kind: output, shape index: {}]  }
   0x1   :  { %s1589_s14 = smov 0   ;;  %s1591_s15 = smov 0  }
   0x2   :  { %s1593_s16 = smov 0   ;;  %s1595_s17 = smov 0  }
   0x3   :  { %s1597_s18 = smov 0  }
   0x4 LB: > { %s25_s19 = sadd.s32 1, %s1550_s15  ;;  %s28_s20 = sadd.s32 1, %s1554_s16  ;;  %s1562_s18 = sphi %s1597_s18, %s13_s18   ;;  %s1558_s17 = sphi %s1595_s17, %s1799_s17   ;;  %s1554_s16 = sphi %s1593_s16, %s1798_s16   ;;  %s1550_s15 = sphi %s1591_s15, %s1797_s15   ;;  %s1546_s14 = sphi %s1589_s14, %s1796_s14   ;;  %s1542_s13 = sphi %s1587_s13, %s1795_s13   ;;  %s1538_s12 = sphi %s1585_s12, %s1794_s12  }
   0x5   : > { %p26_p0 = scmp.ge.s32.totalorder %s25_s19, 3  ;;  %p1119_p1 = scmp.ge.s32.totalorder %s1562_s18, 1 }
   0x6   : > { %p170_p2 = scmp.lt.s32.totalorder %s1562_s18, 19  ;;  %s32_s21 = sadd.s32 1, %s1558_s17 }
   0x7   : > { %s1801_s19 = smov (%p26_p0, %s25_s19), 0  ;;  %s1803_s20 = smov (!%p26_p0, %s28_s20), %s1554_s16 }
   0x8   : > { %p171_p3 = pnand %p1119_p1, %p170_p2  ;;  %p30_p4 = scmp.ge.s32.totalorder %s1803_s20, 3 }
   0x9   : > { %s201_s22 = smul.u32 (!%p171_p3), 5, %s1546_s14  ;;  %p212_p6 = scmp.lt.s32.totalorder (!%p171_p3), %s1546_s14, 1 }
   0xa   : > { %s1805_s20 = smov (%p30_p4, %s1803_s20), 0  ;;  %s1807_s21 = smov (!%p30_p4, %s32_s21), %s1558_s17 }
   0xb   : > { %p34_p5 = scmp.ge.s32.totalorder %s1807_s21, 2  ;;  %174 = sbr.rel (%p171_p3) target bundleno = 388 (0x184), region = 32 }
   0xc   : > { %s202_s23 = sadd.s32 (!%p171_p3), %s1542_s13, %s201_s22  ;;  %p214_p7 = scmp.lt.s32.totalorder (!%p171_p3), %s1542_s13, 2 }
   0xd   : > { %s1809_s21 = smov (%p34_p5, %s1807_s21), 0  ;;  %s203_s24 = sadd.s32 (!%p171_p3), %s1538_s12, %s202_s23 }
   0xe   : > { %p204_p8 = scmp.lt.s32.totalorder (!%p171_p3), %s203_s24, 9  ;;  %p1124_p9 = scmp.ne.s32.totalorder (!%p171_p3), %s1538_s12, 0 }
  0x12   : > { %s1811_s14 = smov (!%p212_p6, %s1546_s14), 1  ;;  %s1813_s24 = smov (!%p204_p8, %s203_s24), 9 }
  0x13   : > { %s1815_s13 = smov (!%p214_p7, %s1542_s13), 2  ;;  %s1298_s25 = sshll.u32 %s1813_s24, 3  ;;  %v1564_v0 = vmov (!%p1124_p9), 0.0  }
  0x14   : > { %s1300_s26 = smul.u32 6, %s1811_s14  ;;  %s1633_s29 = scalar_lea.vmem %s1790_s0, %s1298_s25  ;;  %225 = vst [vmem:[#allocation2] sm:$0x77] (!%p1124_p9), %v1564_v0 }
  0x15   : > { %s1122_s30 = sshll.u32 %s1815_s13, 1  ;;  %224 = sbr.rel (%p1124_p9) target bundleno = 28 (0x1c), region = 36 }
  0x16   : > { %s218_s4 = sadd.s32 %s1300_s26, %s1122_s30 }
  0x17   : > { %s1123_s5 = sshll.u32 %s218_s4, 2 }
  0x18   : > { %s1638_s8 = scalar_lea.vmem %s1793_s3, %s1123_s5 }
  0x1c PF: > { %s1299_s9 = smul.u32 768, %s1538_s12  ;;  %v1643_v1 = vld [vmem:[%s1633_s29] sm:$0x33]  ;;  %p1295_p10 = scmp.ne.s32.totalorder %s1538_s12, 2 }
  0x1d   : > { %v1646_v2 = vld [vmem:[%s1633_s29] sm:$0x33]  ;;  %v1128_v3 = vcombine.high %v1643_v1, %v1643_v1 }
  0x1e   : > { %v1195_v4 = vcombine.high %v1646_v2, %v1646_v2  ;;  %s1655_s13 = scalar_lea.vmem %s1791_s1, %s1299_s9 }
  0x1f   : > { %v1358_v5 = vld [vmem:[%s1655_s13 + $0x4] ss:$8 sps:$4 sm:$0xff]   ;;  %463 = vmatprep.mubr.bf16.mxu0 %v1128_v3  ;;  %v1360_v8 = vld [vmem:[%s1655_s13] ss:$8 sps:$4 sm:$0xff]   ;;  %v1364_v12 = vld [vmem:[%s1655_s13 + $0x14] ss:$8 sps:$4 sm:$0xff]   ;;  %v1194_v3 = vcombine.low %v1646_v2, %v1646_v2 }
  0x20   : > { %v527_v6 = vshrl.u32 %v1195_v4, 16  ;;  %v529_v7 = vshll.u32 %v1195_v4, 16  ;;  %431 = vmatprep.subr.bf16.mxu0 %v1358_v5  ;;  %v1361_v9 = vld [vmem:[%s1655_s13 + $0x104] ss:$8 sps:$4 sm:$0xff]   ;;  %v1363_v10 = vld [vmem:[%s1655_s13 + $0x100] ss:$8 sps:$4 sm:$0xff]  }
  0x21   : > { %432 = vmatpush1.bf16.msra.mxu0 %v1360_v8  ;;  %v1366_v13 = vld [vmem:[%s1655_s13 + $0x10] ss:$8 sps:$4 sm:$0xff]   ;;  %695 = vmatprep.subr.bf16.mxu1 %v1361_v9  ;;  %v1367_v14 = vld [vmem:[%s1655_s13 + $0x114] ss:$8 sps:$4 sm:$0xff]   ;;  %v1370_v17 = vld [vmem:[%s1655_s13 + $0x24] ss:$8 sps:$4 sm:$0xff]  }
  0x22   : > { %v531_v11 = vrot.slane %v529_v7, 1  ;;  %696 = vmatpush1.bf16.msra.mxu1 %v1363_v10  ;;  %433 = vmatprep.subr.bf16.mxu0 %v1364_v12  ;;  %v1369_v16 = vld [vmem:[%s1655_s13 + $0x110] ss:$8 sps:$4 sm:$0xff]   ;;  %v1372_v18 = vld [vmem:[%s1655_s13 + $0x20] ss:$8 sps:$4 sm:$0xff]   ;;  %v522_v9 = vshll.u32 %v1194_v3, 16 }
  0x23   : > { %697 = vmatprep.subr.bf16.mxu1 %v1367_v14  ;;  %v1373_v19 = vld [vmem:[%s1655_s13 + $0x124] ss:$8 sps:$4 sm:$0xff]   ;;  %v1376_v20 = vld [vmem:[%s1655_s13 + $0x34] ss:$8 sps:$4 sm:$0xff]   ;;  %v1375_v21 = vld [vmem:[%s1655_s13 + $0x120] ss:$8 sps:$4 sm:$0xff]  }
  0x24   : > { %v532_v15 = vor.u32 %v531_v11, %v527_v6  ;;  %v1379_v22 = vld [vmem:[%s1655_s13 + $0x134] ss:$8 sps:$4 sm:$0xff]   ;;  %v1378_v23 = vld [vmem:[%s1655_s13 + $0x30] ss:$8 sps:$4 sm:$0xff]   ;;  %v1382_v24 = vld [vmem:[%s1655_s13 + $0x44] ss:$8 sps:$4 sm:$0xff]  }
  0x25   : > { %434 = vmatpush1.bf16.msra.mxu0 %v1366_v13  ;;  %v1381_v25 = vld [vmem:[%s1655_s13 + $0x130] ss:$8 sps:$4 sm:$0xff]   ;;  %v1385_v26 = vld [vmem:[%s1655_s13 + $0x144] ss:$8 sps:$4 sm:$0xff]   ;;  %v1384_v27 = vld [vmem:[%s1655_s13 + $0x40] ss:$8 sps:$4 sm:$0xff]  }
  0x26   : > { %727 = vmatprep.mubr.bf16.mxu1 %v532_v15  ;;  %435 = vmatprep.subr.bf16.mxu0 %v1370_v17  ;;  %v1388_v28 = vld [vmem:[%s1655_s13 + $0x54] ss:$8 sps:$4 sm:$0xff]   ;;  %v1387_v29 = vld [vmem:[%s1655_s13 + $0x140] ss:$8 sps:$4 sm:$0xff]   ;;  %v1390_v31 = vld [vmem:[%s1655_s13 + $0x50] ss:$8 sps:$4 sm:$0xff]   ;;  %v1127_v17 = vcombine.low %v1643_v1, %v1643_v1 }
  0x27   : > { %698 = vmatpush1.bf16.msra.mxu1 %v1369_v16  ;;  %v1391_v30 = vld [vmem:[%s1655_s13 + $0x154] ss:$8 sps:$4 sm:$0xff]   ;;  %v1394_v32 = vld [vmem:[%s1655_s13 + $0x64] ss:$8 sps:$4 sm:$0xff]   ;;  %v1393_v33 = vld [vmem:[%s1655_s13 + $0x150] ss:$8 sps:$4 sm:$0xff]  }
  0x28   : > { %699 = vmatprep.subr.bf16.mxu1 %v1373_v19  ;;  %v1397_v34 = vld [vmem:[%s1655_s13 + $0x164] ss:$8 sps:$4 sm:$0xff]   ;;  %v1396_v35 = vld [vmem:[%s1655_s13 + $0x60] ss:$8 sps:$4 sm:$0xff]   ;;  %v1400_v36 = vld [vmem:[%s1655_s13 + $0x74] ss:$8 sps:$4 sm:$0xff]  }
  0x29   : > { %436 = vmatpush1.bf16.msra.mxu0 %v1372_v18  ;;  %v1399_v37 = vld [vmem:[%s1655_s13 + $0x160] ss:$8 sps:$4 sm:$0xff]   ;;  %v1403_v38 = vld [vmem:[%s1655_s13 + $0x174] ss:$8 sps:$4 sm:$0xff]   ;;  %v1402_v39 = vld [vmem:[%s1655_s13 + $0x70] ss:$8 sps:$4 sm:$0xff]  }
  0x2a   : > { %437 = vmatprep.subr.bf16.mxu0 %v1376_v20  ;;  %v1406_v40 = vld [vmem:[%s1655_s13 + $0x84] ss:$8 sps:$4 sm:$0xff]   ;;  %v1405_v41 = vld [vmem:[%s1655_s13 + $0x170] ss:$8 sps:$4 sm:$0xff]   ;;  %v1408_v43 = vld [vmem:[%s1655_s13 + $0x80] ss:$8 sps:$4 sm:$0xff]  }
  0x2b   : > { %700 = vmatpush1.bf16.msra.mxu1 %v1375_v21  ;;  %v1409_v42 = vld [vmem:[%s1655_s13 + $0x184] ss:$8 sps:$4 sm:$0xff]   ;;  %v1412_v44 = vld [vmem:[%s1655_s13 + $0x94] ss:$8 sps:$4 sm:$0xff]   ;;  %v1411_v45 = vld [vmem:[%s1655_s13 + $0x180] ss:$8 sps:$4 sm:$0xff]  }
  0x2c   : > { %701 = vmatprep.subr.bf16.mxu1 %v1379_v22  ;;  %v1415_v46 = vld [vmem:[%s1655_s13 + $0x194] ss:$8 sps:$4 sm:$0xff]   ;;  %v1414_v47 = vld [vmem:[%s1655_s13 + $0x90] ss:$8 sps:$4 sm:$0xff]   ;;  %v1418_v48 = vld [vmem:[%s1655_s13 + $0xa4] ss:$8 sps:$4 sm:$0xff]  }
  0x2d   : > { %438 = vmatpush1.bf16.msra.mxu0 %v1378_v23  ;;  %v1417_v49 = vld [vmem:[%s1655_s13 + $0x190] ss:$8 sps:$4 sm:$0xff]   ;;  %v1421_v50 = vld [vmem:[%s1655_s13 + $0x1a4] ss:$8 sps:$4 sm:$0xff]   ;;  %v1420_v51 = vld [vmem:[%s1655_s13 + $0xa0] ss:$8 sps:$4 sm:$0xff]  }
  0x2e   : > { %439 = vmatprep.subr.bf16.mxu0 %v1382_v24  ;;  %v1424_v52 = vld [vmem:[%s1655_s13 + $0xb4] ss:$8 sps:$4 sm:$0xff]   ;;  %v1423_v53 = vld [vmem:[%s1655_s13 + $0x1a0] ss:$8 sps:$4 sm:$0xff]   ;;  %v1426_v55 = vld [vmem:[%s1655_s13 + $0xb0] ss:$8 sps:$4 sm:$0xff]  }
  0x2f   : > { %702 = vmatpush1.bf16.msra.mxu1 %v1381_v25  ;;  %v1427_v54 = vld [vmem:[%s1655_s13 + $0x1b4] ss:$8 sps:$4 sm:$0xff]   ;;  %v1430_v56 = vld [vmem:[%s1655_s13 + $0xc4] ss:$8 sps:$4 sm:$0xff]   ;;  %v1429_v57 = vld [vmem:[%s1655_s13 + $0x1b0] ss:$8 sps:$4 sm:$0xff]  }
  0x30   : > { %703 = vmatprep.subr.bf16.mxu1 %v1385_v26  ;;  %v1433_v58 = vld [vmem:[%s1655_s13 + $0x1c4] ss:$8 sps:$4 sm:$0xff]   ;;  %v1432_v59 = vld [vmem:[%s1655_s13 + $0xc0] ss:$8 sps:$4 sm:$0xff]   ;;  %v1436_v60 = vld [vmem:[%s1655_s13 + $0xd4] ss:$8 sps:$4 sm:$0xff]  }
  0x31   : > { %440 = vmatpush1.bf16.msra.mxu0 %v1384_v27  ;;  %v1435_v61 = vld [vmem:[%s1655_s13 + $0x1c0] ss:$8 sps:$4 sm:$0xff]   ;;  %v1439_v62 = vld [vmem:[%s1655_s13 + $0x1d4] ss:$8 sps:$4 sm:$0xff]   ;;  %v1438_v63 = vld [vmem:[%s1655_s13 + $0xd0] ss:$8 sps:$4 sm:$0xff]  }
  0x32   : > { %441 = vmatprep.subr.bf16.mxu0 %v1388_v28  ;;  %v1442_v0 = vld [vmem:[%s1655_s13 + $0xe4] ss:$8 sps:$4 sm:$0xff]   ;;  %v1441_v4 = vld [vmem:[%s1655_s13 + $0x1d0] ss:$8 sps:$4 sm:$0xff]   ;;  %v1444_v6 = vld [vmem:[%s1655_s13 + $0xe0] ss:$8 sps:$4 sm:$0xff]  }
  0x33   : > { %704 = vmatpush1.bf16.msra.mxu1 %v1387_v29  ;;  %v1445_v5 = vld [vmem:[%s1655_s13 + $0x1e4] ss:$8 sps:$4 sm:$0xff]   ;;  %v1448_v8 = vld [vmem:[%s1655_s13 + $0xf4] ss:$8 sps:$4 sm:$0xff]   ;;  %v1447_v10 = vld [vmem:[%s1655_s13 + $0x1e0] ss:$8 sps:$4 sm:$0xff]  }
  0x34   : > { %705 = vmatprep.subr.bf16.mxu1 %v1391_v30  ;;  %v1719_v7 = vld [vmem:[%s1633_s29] sm:$0x66]  ;;  %v1451_v11 = vld [vmem:[%s1655_s13 + $0x1f4] ss:$8 sps:$4 sm:$0xff]   ;;  %v1450_v2 = vld [vmem:[%s1655_s13 + $0xf0] ss:$8 sps:$4 sm:$0xff]  }
  0x35   : > { %442 = vmatpush1.bf16.msra.mxu0 %v1390_v31  ;;  %v1262_v12 = vcombine.high %v1719_v7, %v1719_v7  ;;  %v1458_v13 = vld [vmem:[%s1655_s13 + $0x204] ss:$8 sps:$4 sm:$0xff]   ;;  %v520_v14 = vshrl.u32 %v1194_v3, 16  ;;  %v524_v15 = vrot.slane %v522_v9, 1  ;;  %v1455_v16 = vld [vmem:[%s1655_s13 + $0x1f0] ss:$8 sps:$4 sm:$0xff]   ;;  %v1001_v9 = vlaneseq (!%p1295_p10) }
  0x36   : > { %443 = vmatprep.subr.bf16.mxu0 %v1394_v32  ;;  %v1456_v18 = vld [vmem:[%s1655_s13 + $0x200] ss:$8 sps:$4 sm:$0xff]   ;;  %v1463_v21 = vld [vmem:[%s1655_s13 + $0x214] ss:$8 sps:$4 sm:$0xff]   ;;  %v1461_v22 = vld [vmem:[%s1655_s13 + $0x210] ss:$8 sps:$4 sm:$0xff]  }
  0x37   : > { %706 = vmatpush1.bf16.msra.mxu1 %v1393_v33  ;;  %v784_v19 = vrot.slane %v1262_v12, 1  ;;  %v525_v20 = vor.u32 %v524_v15, %v520_v14  ;;  %v1466_v1 = vld [vmem:[%s1655_s13 + $0x224] ss:$8 sps:$4 sm:$0xff]   ;;  %v1464_v23 = vld [vmem:[%s1655_s13 + $0x220] ss:$8 sps:$4 sm:$0xff]  }
  0x38   : > { %707 = vmatprep.subr.bf16.mxu1 %v1397_v34  ;;  %v1469_v24 = vld [vmem:[%s1655_s13 + $0x234] ss:$8 sps:$4 sm:$0xff]   ;;  %v1467_v25 = vld [vmem:[%s1655_s13 + $0x230] ss:$8 sps:$4 sm:$0xff]   ;;  %v1472_v26 = vld [vmem:[%s1655_s13 + $0x244] ss:$8 sps:$4 sm:$0xff]  }
  0x39   : > { %444 = vmatpush1.bf16.msra.mxu0 %v1396_v35  ;;  %v1470_v27 = vld [vmem:[%s1655_s13 + $0x240] ss:$8 sps:$4 sm:$0xff]   ;;  %v1475_v28 = vld [vmem:[%s1655_s13 + $0x254] ss:$8 sps:$4 sm:$0xff]   ;;  %v1473_v29 = vld [vmem:[%s1655_s13 + $0x250] ss:$8 sps:$4 sm:$0xff]  }
  0x3a   : > { %445 = vmatprep.subr.bf16.mxu0 %v1400_v36  ;;  %v1478_v30 = vld [vmem:[%s1655_s13 + $0x264] ss:$8 sps:$4 sm:$0xff]   ;;  %v1476_v31 = vld [vmem:[%s1655_s13 + $0x260] ss:$8 sps:$4 sm:$0xff]   ;;  %v1481_v32 = vld [vmem:[%s1655_s13 + $0x274] ss:$8 sps:$4 sm:$0xff]  }
  0x3b   : > { %708 = vmatpush1.bf16.msra.mxu1 %v1399_v37  ;;  %v1479_v33 = vld [vmem:[%s1655_s13 + $0x270] ss:$8 sps:$4 sm:$0xff]   ;;  %v1484_v34 = vld [vmem:[%s1655_s13 + $0x284] ss:$8 sps:$4 sm:$0xff]   ;;  %v1482_v35 = vld [vmem:[%s1655_s13 + $0x280] ss:$8 sps:$4 sm:$0xff]  }
  0x3c   : > { %709 = vmatprep.subr.bf16.mxu1 %v1403_v38  ;;  %v1487_v36 = vld [vmem:[%s1655_s13 + $0x294] ss:$8 sps:$4 sm:$0xff]   ;;  %v1485_v37 = vld [vmem:[%s1655_s13 + $0x290] ss:$8 sps:$4 sm:$0xff]   ;;  %v1490_v38 = vld [vmem:[%s1655_s13 + $0x2a4] ss:$8 sps:$4 sm:$0xff]  }
  0x3d   : > { %446 = vmatpush1.bf16.msra.mxu0 %v1402_v39  ;;  %v1488_v39 = vld [vmem:[%s1655_s13 + $0x2a0] ss:$8 sps:$4 sm:$0xff]  }
  0x3e   : > { %447 = vmatprep.subr.bf16.mxu0 %v1406_v40  ;;  %v1493_v40 = vld [vmem:[%s1655_s13 + $0x2b4] ss:$8 sps:$4 sm:$0xff]  }
  0x3f   : > { %710 = vmatpush1.bf16.msra.mxu1 %v1405_v41  ;;  %v1491_v41 = vld [vmem:[%s1655_s13 + $0x2b0] ss:$8 sps:$4 sm:$0xff]  }
  0x40   : > { %711 = vmatprep.subr.bf16.mxu1 %v1409_v42  ;;  %v1496_v42 = vld [vmem:[%s1655_s13 + $0x2c4] ss:$8 sps:$4 sm:$0xff]  }
  0x41   : > { %448 = vmatpush1.bf16.msra.mxu0 %v1408_v43  ;;  %v1494_v43 = vld [vmem:[%s1655_s13 + $0x2c0] ss:$8 sps:$4 sm:$0xff]  }
  0x42   : > { %449 = vmatprep.subr.bf16.mxu0 %v1412_v44  ;;  %v1499_v44 = vld [vmem:[%s1655_s13 + $0x2d4] ss:$8 sps:$4 sm:$0xff]  }
  0x43   : > { %712 = vmatpush1.bf16.msra.mxu1 %v1411_v45  ;;  %v1497_v45 = vld [vmem:[%s1655_s13 + $0x2d0] ss:$8 sps:$4 sm:$0xff]  }
  0x44   : > { %713 = vmatprep.subr.bf16.mxu1 %v1415_v46  ;;  %v1502_v46 = vld [vmem:[%s1655_s13 + $0x2e4] ss:$8 sps:$4 sm:$0xff]  }
  0x45   : > { %450 = vmatpush1.bf16.msra.mxu0 %v1414_v47  ;;  %v1500_v47 = vld [vmem:[%s1655_s13 + $0x2e0] ss:$8 sps:$4 sm:$0xff]  }
  0x46   : > { %451 = vmatprep.subr.bf16.mxu0 %v1418_v48  ;;  %v1505_v48 = vld [vmem:[%s1655_s13 + $0x2f4] ss:$8 sps:$4 sm:$0xff]  }
  0x47   : > { %714 = vmatpush1.bf16.msra.mxu1 %v1417_v49  ;;  %v1261_v49 = vcombine.low %v1719_v7, %v1719_v7 }
  0x48   : > { %715 = vmatprep.subr.bf16.mxu1 %v1421_v50  ;;  %v1503_v50 = vld [vmem:[%s1655_s13 + $0x2f0] ss:$8 sps:$4 sm:$0xff]  }
  0x49   : > { %452 = vmatpush1.bf16.msra.mxu0 %v1420_v51  ;;  %v783_v51 = vrot.slane %v1261_v49, 1 }
  0x4a   : > { %453 = vmatprep.subr.bf16.mxu0 %v1424_v52 }
  0x4b   : > { %716 = vmatpush1.bf16.msra.mxu1 %v1423_v53  ;;  %v226_v53 = vld [vmem:[#allocation2] sm:$0x77] }
  0x4c   : > { %717 = vmatprep.subr.bf16.mxu1 %v1427_v54 }
  0x4d   : > { %454 = vmatpush1.bf16.msra.mxu0 %v1426_v55 }
  0x4e   : > { %455 = vmatprep.subr.bf16.mxu0 %v1430_v56 }
  0x4f   : > { %718 = vmatpush1.bf16.msra.mxu1 %v1429_v57 }
  0x50   : > { %719 = vmatprep.subr.bf16.mxu1 %v1433_v58 }
  0x51   : > { %456 = vmatpush1.bf16.msra.mxu0 %v1432_v59 }
  0x52   : > { %457 = vmatprep.subr.bf16.mxu0 %v1436_v60 }
  0x53   : > { %720 = vmatpush1.bf16.msra.mxu1 %v1435_v61 }
  0x54   : > { %721 = vmatprep.subr.bf16.mxu1 %v1439_v62 }
  0x55   : > { %458 = vmatpush1.bf16.msra.mxu0 %v1438_v63 }
  0x56   : > { %459 = vmatprep.subr.bf16.mxu0 %v1442_v0 }
  0x57   : > { %722 = vmatpush1.bf16.msra.mxu1 %v1441_v4 }
  0x58   : > { %723 = vmatprep.subr.bf16.mxu1 %v1445_v5 }
  0x59   : > { %460 = vmatpush1.bf16.msra.mxu0 %v1444_v6 }
  0x5a   : > { %461 = vmatprep.subr.bf16.mxu0 %v1448_v8 }
  0x5b   : > { %724 = vmatpush1.bf16.msra.mxu1 %v1447_v10  ;;  %v1002_v10 = vshrl.u32 (!%p1295_p10), %v1001_v9, 7 }
  0x5c   : > { %725 = vmatprep.subr.bf16.mxu1 %v1451_v11  ;;  %v999_v11 = vld [vmem:[%s1792_s2] sm:$0x3] (!%p1295_p10) }
  0x5d   : > { %462 = vmatpush1.bf16.msra.mxu0 %v1450_v2  ;;  %v1003_v2 = vsub.s32 (!%p1295_p10), 0, %v1002_v10  ;;  %v1007_v12 = vsub.s32 (!%p1295_p10), 1, %v1002_v10 }
  0x5e   : > { %947 = vmatprep.subr.bf16.mxu0 %v1458_v13 }
  0x5f   : > { %726 = vmatpush1.bf16.msra.mxu1 %v1455_v16  ;;  %v1004_v13 = vrot.slane (!%p1295_p10), %v999_v11, %v1003_v2  ;;  %v1008_v14 = vrot.slane (!%p1295_p10), %v999_v11, %v1007_v12 }
  0x60   : > { %464 = vmatmul.mubr.bf16.vlgmr.msra.gmra.mrb[0].mxu0 %v1127_v17 }
  0x61   : > { %948 = vmatpush1.bf16.msra.mxu0 %v1456_v18  ;;  %979 = vmatprep.mubr.bf16.mxu0 %v784_v19  ;;  %v1009_v16 = vcombine.low (!%p1295_p10), %v1004_v13, %v1008_v14 }
  0x62   : > { %728 = vmatmul.mubr.bf16.vlgmr.msra.gmra.mrb[0].mxu1 %v525_v20  ;;  %949 = vmatprep.subr.bf16.mxu0 %v1463_v21 }
  0x65   : > { %950 = vmatpush1.bf16.msra.mxu0 %v1461_v22 }
  0x66   : > { %951 = vmatprep.subr.bf16.mxu0 %v1466_v1 }
  0x69   : > { %952 = vmatpush1.bf16.msra.mxu0 %v1464_v23 }
  0x6a   : > { %953 = vmatprep.subr.bf16.mxu0 %v1469_v24 }
  0x6d   : > { %954 = vmatpush1.bf16.msra.mxu0 %v1467_v25 }
  0x6e   : > { %955 = vmatprep.subr.bf16.mxu0 %v1472_v26 }
  0x71   : > { %956 = vmatpush1.bf16.msra.mxu0 %v1470_v27 }
  0x72   : > { %957 = vmatprep.subr.bf16.mxu0 %v1475_v28 }
  0x75   : > { %958 = vmatpush1.bf16.msra.mxu0 %v1473_v29 }
  0x76   : > { %959 = vmatprep.subr.bf16.mxu0 %v1478_v30 }
  0x79   : > { %960 = vmatpush1.bf16.msra.mxu0 %v1476_v31 }
  0x7a   : > { %961 = vmatprep.subr.bf16.mxu0 %v1481_v32 }
  0x7d   : > { %962 = vmatpush1.bf16.msra.mxu0 %v1479_v33 }
  0x7e   : > { %963 = vmatprep.subr.bf16.mxu0 %v1484_v34 }
  0x81   : > { %964 = vmatpush1.bf16.msra.mxu0 %v1482_v35 }
  0x82   : > { %965 = vmatprep.subr.bf16.mxu0 %v1487_v36 }
  0x85   : > { %966 = vmatpush1.bf16.msra.mxu0 %v1485_v37 }
  0x86   : > { %967 = vmatprep.subr.bf16.mxu0 %v1490_v38 }
  0x89   : > { %968 = vmatpush1.bf16.msra.mxu0 %v1488_v39 }
  0x8a   : > { %969 = vmatprep.subr.bf16.mxu0 %v1493_v40 }
  0x8d   : > { %970 = vmatpush1.bf16.msra.mxu0 %v1491_v41 }
  0x8e   : > { %971 = vmatprep.subr.bf16.mxu0 %v1496_v42 }
  0x91   : > { %972 = vmatpush1.bf16.msra.mxu0 %v1494_v43 }
  0x92   : > { %973 = vmatprep.subr.bf16.mxu0 %v1499_v44 }
  0x95   : > { %974 = vmatpush1.bf16.msra.mxu0 %v1497_v45 }
  0x96   : > { %975 = vmatprep.subr.bf16.mxu0 %v1502_v46 }
  0x99   : > { %976 = vmatpush1.bf16.msra.mxu0 %v1500_v47 }
  0x9a   : > { %977 = vmatprep.subr.bf16.mxu0 %v1505_v48 }
  0x9d   : > { %978 = vmatpush1.bf16.msra.mxu0 %v1503_v50 }
  0xa0   : > { %980 = vmatmul.mubr.bf16.vlgmr.msra.gmra.mrb[4].mxu0 %v783_v51 }
 0x133   : > { %v465_v52 = vpop.f32.mrb[0].mxu0 }
 0x134   : > { %v467_v54 = vpop.f32.mrb[1].mxu0 }
 0x135   : > { %v474_v55 = vcombine.low %v465_v52, %v467_v54  ;;  %v469_v56 = vpop.f32.mrb[2].mxu0  ;;  %v729_v57 = vpop.f32.mrb[0].mxu1 }
 0x136   : > { %v470_v58 = vpop.f32.mrb[3].mxu0  ;;  %v731_v59 = vpop.f32.mrb[1].mxu1 }
 0x137   : > { %v476_v60 = vadd.f32 %v474_v55, %v226_v53  ;;  %v738_v61 = vcombine.low %v729_v57, %v731_v59  ;;  %v733_v62 = vpop.f32.mrb[2].mxu1 }
 0x138   : > { %v734_v63 = vpop.f32.mrb[3].mxu1 }
 0x139   : > { %v740_v0 = vadd.f32 %v738_v61, %v476_v60 }
 0x173   : > { %v981_v3 = vpop.f32.mrb[4].mxu0  ;;  %997 = sbr.rel (%p1295_p10) target bundleno = 388 (0x184), region = 40 }
 0x174   : > { %v983_v4 = vpop.f32.mrb[5].mxu0 }
 0x175   : > { %v990_v5 = vcombine.low %v981_v3, %v983_v4  ;;  %v985_v6 = vpop.f32.mrb[6].mxu0 }
 0x176   : > { %v986_v7 = vpop.f32.mrb[7].mxu0 }
 0x177   : > { %v992_v8 = vadd.f32 %v990_v5, %v740_v0 }
 0x179   : > { %993 = vst [vmem:[#allocation2] sm:$0x77] %v992_v8 }
 0x180   : > { %v998_v15 = vld [vmem:[#allocation2] sm:$0x77] }
 0x181   : > { %v1011_v17 = vadd.f32 %v1009_v16, %v998_v15 }
 0x183   : > { %1012 = vst [vmem:[%s1638_s8] sm:$0x77] %v1011_v17 }
 0x184 PF: > { %s13_s18 = sadd.s32 1, %s1562_s18   ;;  %s1794_s12 = smov %s1550_s15 }
 0x185   : > { %p10_p11 = scmp.ge.s32.totalorder %s13_s18, 20   ;;  %s1795_s13 = smov %s1554_s16 }
 0x186   : > { %s1796_s14 = smov %s1558_s17  ;;  %s1797_s15 = smov %s1801_s19 }
 0x187   : > { %s1798_s16 = smov %s1805_s20  ;;  %s1799_s17 = smov %s1809_s21 }
 0x188   :  { %12 = sbr.rel (!%p10_p11) target bundleno = 4 (0x4), region = 73 }

</bundles_post_ra>
